<compile_context>
chip_gen: v5e
topology: v5e:2x2
jax: 0.10.0
libtpu: 0.0.40
codegen_flags: <defaults>
</compile_context>

<pallas_src>
import functools

import numpy as np
import jax
import jax.numpy as jnp
from jax.experimental import pallas as pl
from jax.experimental.pallas import tpu as pltpu


# Matmul operand dtype for the LSTM dots.  Keep f32 for bit-faithfulness vs the
# f32 reference; switch to jnp.bfloat16 on v6e/v7x for ~2x MXU throughput
# (on v5e keep elementwise math in f32 either way — no bf16 VPU/EUP there).
_MM_DTYPE = jnp.float32

_BATCH_BLOCK = 8  # sublane-aligned batch tile


def _round_up(x, m):
    return ((x + m - 1) // m) * m


# ----------------------------------------------------------------------------
# In-kernel bidirectional LSTM with running masked max-pool
# ----------------------------------------------------------------------------
def _bilstm_pooled(x_ref, mask_ref, wih_ref, whh_ref, b_ref, p_scr, H):
    """x_ref: (T, Bb, D) time-major, mask_ref: (T, Bb, 1).

    Weights are packed with gate blocks of width Hp = round_up(2H, 128):
      columns [g*Hp : g*Hp+H]     -> forward-direction gate g  (g in i,f,g,o)
      columns [g*Hp+H : g*Hp+2H]  -> backward-direction gate g
      remaining columns are zero padding.
    Whh is block-diagonal over directions (rows 0:H drive fwd, H:2H drive bwd).
    Returns the masked max-pool over time, shape (Bb, Hp) with lanes
    [0:H]=fwd, [H:2H]=bwd, rest zero-weighted padding.
    """
    T, Bb, D = x_ref.shape
    GW = wih_ref.shape[1]
    Hp = GW // 4

    # (1) Hoisted input projection: one (T*Bb, D) x (D, 4*Hp) matmul covering
    # BOTH directions, bias folded in, stored time-major in VMEM scratch.
    x_flat = x_ref[...].reshape(T * Bb, D)
    p = jnp.dot(x_flat.astype(_MM_DTYPE), wih_ref[...].astype(_MM_DTYPE),
                preferred_element_type=jnp.float32) + b_ref[...]
    p_scr[...] = p.reshape(T, Bb, GW)

    whh = whh_ref[...].astype(_MM_DTYPE)  # (Hp, GW), block-diag over directions

    # Lane masks built once (hoisted out of the loop).
    lane_g = jax.lax.broadcasted_iota(jnp.int32, (1, GW), 1)
    fwd_gate = (lane_g % Hp) < H          # fwd-direction lanes in each gate block
    lane_s = jax.lax.broadcasted_iota(jnp.int32, (1, Hp), 1)
    fwd_state = lane_s < H                # fwd half of the stacked state

    neg = jnp.float32(-10000.0)

    def step(s, carry):
        h, c, pool = carry
        sr = T - 1 - s
        # fwd lanes use the projection at time s, bwd lanes at time T-1-s
        xg = jnp.where(fwd_gate, p_scr[s], p_scr[sr])            # (Bb, GW)
        g = xg + jnp.dot(h.astype(_MM_DTYPE), whh,
                         preferred_element_type=jnp.float32)     # (Bb, GW)
        # 128-aligned lane slices (no sub-tile shuffles in the loop).
        i_g = jax.nn.sigmoid(g[:, 0 * Hp:1 * Hp])
        f_g = jax.nn.sigmoid(g[:, 1 * Hp:2 * Hp])
        g_g = jnp.tanh(g[:, 2 * Hp:3 * Hp])
        o_g = jax.nn.sigmoid(g[:, 3 * Hp:4 * Hp])
        c_new = f_g * c + i_g * g_g
        h_new = o_g * jnp.tanh(c_new)
        # per-direction validity mask (packed-sequence semantics)
        m = jnp.where(fwd_state, mask_ref[s], mask_ref[sr])      # (Bb, Hp)
        h_next = m * h_new + (1.0 - m) * h
        c_next = m * c_new + (1.0 - m) * c
        # running masked max-pool (replaces materializing (B,T,2H) outputs)
        pool_next = jnp.maximum(pool, m * h_new + neg * (1.0 - m))
        return h_next, c_next, pool_next

    zeros = jnp.zeros((Bb, Hp), jnp.float32)
    pool0 = jnp.full((Bb, Hp), neg, jnp.float32)
    _, _, pooled = jax.lax.fori_loop(0, T, step, (zeros, zeros, pool0))
    return pooled


# ----------------------------------------------------------------------------
# Fused kernel: audio biLSTM + text biLSTM + heads + gate MLP + merge
# ----------------------------------------------------------------------------
def _fused_kernel(a_x_ref, a_mask_ref, t_x_ref, t_mask_ref,
                  a_wih_ref, a_whh_ref, a_b_ref,
                  t_wih_ref, t_whh_ref, t_b_ref,
                  wp_ref, bp_ref, wa_ref, ba_ref,
                  g1wa_ref, g1wt_ref, g1b_ref,
                  g2w_ref, g2b_ref, g3w_ref, g3b_ref,
                  main_ref, asr_ref,
                  pa_scr, pt_scr, *, audio_hidden, text_hidden):
    a_pool = _bilstm_pooled(a_x_ref, a_mask_ref, a_wih_ref, a_whh_ref, a_b_ref,
                            pa_scr, audio_hidden)                 # (Bb, Hp_a)
    t_pool = _bilstm_pooled(t_x_ref, t_mask_ref, t_wih_ref, t_whh_ref, t_b_ref,
                            pt_scr, text_hidden)                  # (Bb, Hp_t)

    # prediction heads (head weights are zero-padded to the padded pool width)
    logits = jnp.dot(a_pool, wp_ref[...],
                     preferred_element_type=jnp.float32) + bp_ref[...]
    asr_logits = jnp.dot(t_pool, wa_ref[...],
                         preferred_element_type=jnp.float32) + ba_ref[...]

    # gate MLP on the (unmasked, as in the reference) max-over-time of the raw
    # audio features and text embeddings; g1 is split to avoid a lane concat.
    a_max = jnp.max(a_x_ref[...], axis=0)                         # (Bb, AD)
    t_max = jnp.max(t_x_ref[...], axis=0)                         # (Bb, TD)
    h1 = jnp.maximum(
        jnp.dot(a_max, g1wa_ref[...], preferred_element_type=jnp.float32)
        + jnp.dot(t_max, g1wt_ref[...], preferred_element_type=jnp.float32)
        + g1b_ref[...], 0.0)
    h2 = jnp.maximum(jnp.dot(h1, g2w_ref[...],
                             preferred_element_type=jnp.float32) + g2b_ref[...],
                     0.0)
    gl = jnp.dot(h2, g3w_ref[...], preferred_element_type=jnp.float32) + g3b_ref[...]
    gl = gl - jnp.max(gl, axis=1, keepdims=True)
    ge = jnp.exp(gl)
    gate = ge * pl.reciprocal(jnp.sum(ge, axis=1, keepdims=True), approx=True)

    main_ref[...] = logits * gate[:, 0:1] + asr_logits * gate[:, 1:2]
    asr_ref[...] = asr_logits


# ----------------------------------------------------------------------------
# Parameter packing (done once, outside the forward hot path)
# ----------------------------------------------------------------------------
def _pack_bilstm(wih_f, whh_f, b_f, wih_b, whh_b, b_b):
    """Pack per-direction LSTM weights into the fused lane layout.

    Raw: wih_* (D, 4H), whh_* (H, 4H), b_* (1, 4H) with gate order [i, f, g, o].
    Packed: wih (D, 4*Hp), whh (Hp, 4*Hp) block-diag, b (1, 4*Hp),
            Hp = round_up(2H, 128).
    """
    D, four_h = wih_f.shape
    H = four_h // 4
    Hp = _round_up(2 * H, 128)
    pad_w = Hp - 2 * H
    wih_blocks, whh_blocks, b_blocks = [], [], []
    for g in range(4):
        sl = slice(g * H, (g + 1) * H)
        wih_blocks.append(jnp.concatenate(
            [wih_f[:, sl], wih_b[:, sl], jnp.zeros((D, pad_w), jnp.float32)],
            axis=1))
        b_blocks.append(jnp.concatenate(
            [b_f[:, sl], b_b[:, sl], jnp.zeros((1, pad_w), jnp.float32)],
            axis=1))
        col_f = jnp.concatenate(
            [whh_f[:, sl], jnp.zeros((Hp - H, H), jnp.float32)], axis=0)
        col_b = jnp.concatenate(
            [jnp.zeros((H, H), jnp.float32), whh_b[:, sl],
             jnp.zeros((Hp - 2 * H, H), jnp.float32)], axis=0)
        whh_blocks.append(jnp.concatenate(
            [col_f, col_b, jnp.zeros((Hp, pad_w), jnp.float32)], axis=1))
    return (jnp.concatenate(wih_blocks, axis=1),
            jnp.concatenate(whh_blocks, axis=1),
            jnp.concatenate(b_blocks, axis=1))


def prepare_params(params):
    """Convert raw (reference-layout) params into the kernel-ready layout."""
    audio_dim = params["audio_lstm"][0].shape[0]
    a_wih, a_whh, a_b = _pack_bilstm(*params["audio_lstm"])
    t_wih, t_whh, t_b = _pack_bilstm(*params["text_lstm"])
    g1w, g1b, g2w, g2b, g3w, g3b = params["gate"]
    return dict(
        emb=params["emb"],
        audio_lstm=(a_wih, a_whh, a_b),
        text_lstm=(t_wih, t_whh, t_b),
        pred=params["pred"],   # kept raw (2H, C); padded inside forward
        aux=params["aux"],
        gate=(g1w[:audio_dim], g1w[audio_dim:], g1b, g2w, g2b, g3w, g3b),
    )


# ----------------------------------------------------------------------------
# Forward pass (thin JAX wrapper around the single fused pallas_call)
# ----------------------------------------------------------------------------
def forward(params, audio_inputs, audio_length, text_inputs, text_length):
    B, Ta, AD = audio_inputs.shape
    Tt = text_inputs.shape[1]

    wp, bp = params["pred"]
    wa, ba = params["aux"]
    H_a = wp.shape[0] // 2
    H_t = wa.shape[0] // 2
    C = wp.shape[1]
    a_wih, a_whh, a_b = params["audio_lstm"]
    t_wih, t_whh, t_b = params["text_lstm"]
    Hp_a, GWa = a_whh.shape
    Hp_t, GWt = t_whh.shape
    g1w_a, g1w_t, g1b, g2w, g2b, g3w, g3b = params["gate"]
    TD = params["emb"].shape[1]

    # TODO(synk): embedding gather stays in plain JAX (jnp.take); a Pallas
    # gather would need manual DMA indexing and is not on the hot path.
    text_embedding = jnp.take(params["emb"], text_inputs, axis=0)

    # Pad head weights to the padded (128-aligned) pooled-state width so the
    # kernel never slices the pooled vector.
    wp_p = jnp.concatenate([wp, jnp.zeros((Hp_a - 2 * H_a, C), jnp.float32)], 0)
    wa_p = jnp.concatenate([wa, jnp.zeros((Hp_t - 2 * H_t, C), jnp.float32)], 0)

    # Pad batch to a multiple of 8 (full sublane rows) and go time-major so the
    # recurrence reads contiguous (8, D) slabs per step.
    bb = _BATCH_BLOCK
    B_pad = _round_up(B, bb)
    pad = B_pad - B
    a_x = jnp.transpose(jnp.pad(audio_inputs, ((0, pad), (0, 0), (0, 0))), (1, 0, 2))
    t_x = jnp.transpose(jnp.pad(text_embedding, ((0, pad), (0, 0), (0, 0))), (1, 0, 2))
    a_len = jnp.pad(audio_length, (0, pad))
    t_len = jnp.pad(text_length, (0, pad))
    a_mask = (jnp.arange(Ta)[:, None] < a_len[None, :]).astype(jnp.float32)[:, :, None]
    t_mask = (jnp.arange(Tt)[:, None] < t_len[None, :]).astype(jnp.float32)[:, :, None]

    kernel = functools.partial(_fused_kernel,
                               audio_hidden=H_a, text_hidden=H_t)

    def batched3(T, D):
        return pl.BlockSpec((T, bb, D), lambda i: (0, i, 0))

    def full(shape):
        return pl.BlockSpec(shape, lambda i: tuple(0 for _ in shape))

    main_p, asr_p = pl.pallas_call(
        kernel,
        grid=(B_pad // bb,),
        in_specs=[
            batched3(Ta, AD), batched3(Ta, 1),
            batched3(Tt, TD), batched3(Tt, 1),
            full(a_wih.shape), full(a_whh.shape), full(a_b.shape),
            full(t_wih.shape), full(t_whh.shape), full(t_b.shape),
            full(wp_p.shape), full(bp.shape),
            full(wa_p.shape), full(ba.shape),
            full(g1w_a.shape), full(g1w_t.shape), full(g1b.shape),
            full(g2w.shape), full(g2b.shape),
            full(g3w.shape), full(g3b.shape),
        ],
        out_specs=(pl.BlockSpec((bb, C), lambda i: (i, 0)),
                   pl.BlockSpec((bb, C), lambda i: (i, 0))),
        out_shape=(jax.ShapeDtypeStruct((B_pad, C), jnp.float32),
                   jax.ShapeDtypeStruct((B_pad, C), jnp.float32)),
        scratch_shapes=[pltpu.VMEM((Ta, bb, GWa), jnp.float32),
                        pltpu.VMEM((Tt, bb, GWt), jnp.float32)],
        compiler_params=pltpu.CompilerParams(
            dimension_semantics=("parallel",)),   # batch blocks -> 2 TCs on v7x
    )(a_x, a_mask, t_x, t_mask,
      a_wih, a_whh, a_b, t_wih, t_whh, t_b,
      wp_p, bp, wa_p, ba,
      g1w_a, g1w_t, g1b, g2w, g2b, g3w, g3b)

    return main_p[:B], asr_p[:B]


# ----------------------------------------------------------------------------
# Deterministic parameter init (PyTorch-like ranges; weights stored transposed)
# ----------------------------------------------------------------------------
def _uniform(key, shape, scale):
    return jax.random.uniform(key, shape, jnp.float32, minval=-scale, maxval=scale)


def init_lstm(key, D, H):
    ks = jax.random.split(key, 8)
    s = 1.0 / float(np.sqrt(H))

    def one_dir(k4):
        wih_t = _uniform(k4[0], (D, 4 * H), s)        # transposed weight_ih
        whh_t = _uniform(k4[1], (H, 4 * H), s)        # transposed weight_hh
        b = _uniform(k4[2], (1, 4 * H), s) + _uniform(k4[3], (1, 4 * H), s)
        return wih_t, whh_t, b

    return one_dir(ks[0:4]) + one_dir(ks[4:8])


def init_linear(key, din, dout):
    k1, k2 = jax.random.split(key)
    s = 1.0 / float(np.sqrt(din))
    return _uniform(k1, (din, dout), s), _uniform(k2, (1, dout), s)


def init_params(key, *, audio_dim, text_dim, audio_hidden, text_hidden,
                class_num, vocab_size):
    ks = jax.random.split(key, 8)
    emb = jax.random.normal(ks[0], (vocab_size + 1, text_dim), jnp.float32)
    audio_lstm = init_lstm(ks[1], audio_dim, audio_hidden)
    text_lstm = init_lstm(ks[2], text_dim, text_hidden)
    pred = init_linear(ks[3], 2 * audio_hidden, class_num)
    aux = init_linear(ks[4], 2 * text_hidden, class_num)
    G = audio_dim + text_dim
    g1 = init_linear(ks[5], G, G)
    g2 = init_linear(ks[6], G, G)
    g3 = init_linear(ks[7], G, 2)
    return dict(emb=emb, audio_lstm=audio_lstm, text_lstm=text_lstm,
                pred=pred, aux=aux, gate=g1 + g2 + g3)


# ----------------------------------------------------------------------------
# Pure-JAX reference (same math) for a correctness check
# ----------------------------------------------------------------------------
def _ref_lstm_dir(x, mask, wih_t, whh_t, b, reverse):
    B, T, _ = x.shape
    H = whh_t.shape[0]
    hp = jax.lax.Precision.HIGHEST

    def step(carry, inp):
        h, c = carry
        xt, mt = inp
        g = jnp.dot(xt, wih_t, precision=hp) + jnp.dot(h, whh_t, precision=hp) + b
        i = jax.nn.sigmoid(g[:, 0:H])
        f = jax.nn.sigmoid(g[:, H:2 * H])
        gg = jnp.tanh(g[:, 2 * H:3 * H])
        o = jax.nn.sigmoid(g[:, 3 * H:4 * H])
        c_new = f * c + i * gg
        h_new = o * jnp.tanh(c_new)
        h2 = mt * h_new + (1.0 - mt) * h
        c2 = mt * c_new + (1.0 - mt) * c
        return (h2, c2), h_new * mt

    xs = jnp.transpose(x, (1, 0, 2))
    ms = jnp.transpose(mask)[:, :, None]
    if reverse:
        xs, ms = xs[::-1], ms[::-1]
    (_, _), outs = jax.lax.scan(step, (jnp.zeros((B, H)), jnp.zeros((B, H))), (xs, ms))
    if reverse:
        outs = outs[::-1]
    return jnp.transpose(outs, (1, 0, 2))


def reference_forward(params, audio_inputs, audio_length, text_inputs, text_length):
    hp = jax.lax.Precision.HIGHEST
    B, Ta, _ = audio_inputs.shape
    Tt = text_inputs.shape[1]
    audio_mask = (jnp.arange(Ta)[None, :] < audio_length[:, None]).astype(jnp.float32)
    text_mask = (jnp.arange(Tt)[None, :] < text_length[:, None]).astype(jnp.float32)
    text_embedding = jnp.take(params["emb"], text_inputs, axis=0)

    wf, hf, bf, wb, hb, bb = params["audio_lstm"]
    audio_encode = jnp.concatenate(
        [_ref_lstm_dir(audio_inputs, audio_mask, wf, hf, bf, False),
         _ref_lstm_dir(audio_inputs, audio_mask, wb, hb, bb, True)], axis=-1)
    wf, hf, bf, wb, hb, bb = params["text_lstm"]
    text_encode = jnp.concatenate(
        [_ref_lstm_dir(text_embedding, text_mask, wf, hf, bf, False),
         _ref_lstm_dir(text_embedding, text_mask, wb, hb, bb, True)], axis=-1)

    am = audio_mask[:, :, None]
    tm = text_mask[:, :, None]
    a_pool = jnp.max(audio_encode * am - 10000.0 * (1.0 - am), axis=1)
    t_pool = jnp.max(text_encode * tm - 10000.0 * (1.0 - tm), axis=1)
    wp, bp = params["pred"]
    wa, ba = params["aux"]
    logits = jnp.dot(a_pool, wp, precision=hp) + bp
    asr_logits = jnp.dot(t_pool, wa, precision=hp) + ba

    g1w, g1b, g2w, g2b, g3w, g3b = params["gate"]
    gate_in = jnp.concatenate([jnp.max(audio_inputs, axis=1),
                               jnp.max(text_embedding, axis=1)], axis=1)
    h1 = jnp.maximum(jnp.dot(gate_in, g1w, precision=hp) + g1b, 0.0)
    h2 = jnp.maximum(jnp.dot(h1, g2w, precision=hp) + g2b, 0.0)
    gate = jax.nn.softmax(jnp.dot(h2, g3w, precision=hp) + g3b, axis=1)
    main = logits * gate[:, 0:1] + asr_logits * gate[:, 1:2]
    return main, asr_logits


# ----------------------------------------------------------------------------
if __name__ == "__main__":
    # small config consistent with the module's __init__
    B, Ta, Tt = 2, 16, 8
    AUDIO_DIM = TEXT_DIM = 32
    AUDIO_HIDDEN = TEXT_HIDDEN = 32
    CLASS_NUM = 4
    VOCAB = 50

    key = jax.random.PRNGKey(0)
    k_audio, k_text, k_params = jax.random.split(key, 3)

    audio_inputs = jax.random.normal(k_audio, (B, Ta, AUDIO_DIM), jnp.float32)
    audio_length = jnp.array([Ta, 11], jnp.int32)
    text_length = jnp.array([Tt, 5], jnp.int32)
    text_ids = jax.random.randint(k_text, (B, Tt), 1, VOCAB + 1)
    text_inputs = jnp.where(jnp.arange(Tt)[None, :] < text_length[:, None],
                            text_ids, 0).astype(jnp.int32)

    params = init_params(k_params, audio_dim=AUDIO_DIM, text_dim=TEXT_DIM,
                         audio_hidden=AUDIO_HIDDEN, text_hidden=TEXT_HIDDEN,
                         class_num=CLASS_NUM, vocab_size=VOCAB)
    kernel_params = prepare_params(params)   # one-time packing, off the hot path

    fwd = jax.jit(forward)
    main_out, asr_out = fwd(kernel_params, audio_inputs, audio_length,
                            text_inputs, text_length)
    jax.block_until_ready((main_out, asr_out))

    ref_main, ref_asr = reference_forward(params, audio_inputs, audio_length,
                                          text_inputs, text_length)
    np.testing.assert_allclose(np.asarray(main_out), np.asarray(ref_main),
                               rtol=2e-2, atol=2e-2)
    np.testing.assert_allclose(np.asarray(asr_out), np.asarray(ref_asr),
                               rtol=2e-2, atol=2e-2)

    print("KERNEL_OK")
</pallas_src>

<mosaic_0001>
module attributes {stable_mosaic.version = 11 : i64} {
  func.func @_fused_kernel(%arg0: i32, %arg1: memref<16x8x32xf32, #tpu.memory_space<vmem>>, %arg2: memref<16x8x1xf32, #tpu.memory_space<vmem>>, %arg3: memref<8x8x32xf32, #tpu.memory_space<vmem>>, %arg4: memref<8x8x1xf32, #tpu.memory_space<vmem>>, %arg5: memref<32x512xf32, #tpu.memory_space<vmem>>, %arg6: memref<128x512xf32, #tpu.memory_space<vmem>>, %arg7: memref<1x512xf32, #tpu.memory_space<vmem>>, %arg8: memref<32x512xf32, #tpu.memory_space<vmem>>, %arg9: memref<128x512xf32, #tpu.memory_space<vmem>>, %arg10: memref<1x512xf32, #tpu.memory_space<vmem>>, %arg11: memref<128x4xf32, #tpu.memory_space<vmem>>, %arg12: memref<1x4xf32, #tpu.memory_space<vmem>>, %arg13: memref<128x4xf32, #tpu.memory_space<vmem>>, %arg14: memref<1x4xf32, #tpu.memory_space<vmem>>, %arg15: memref<32x64xf32, #tpu.memory_space<vmem>>, %arg16: memref<32x64xf32, #tpu.memory_space<vmem>>, %arg17: memref<1x64xf32, #tpu.memory_space<vmem>>, %arg18: memref<64x64xf32, #tpu.memory_space<vmem>>, %arg19: memref<1x64xf32, #tpu.memory_space<vmem>>, %arg20: memref<64x2xf32, #tpu.memory_space<vmem>>, %arg21: memref<1x2xf32, #tpu.memory_space<vmem>>, %arg22: memref<8x4xf32, #tpu.memory_space<vmem>>, %arg23: memref<8x4xf32, #tpu.memory_space<vmem>>, %arg24: memref<16x8x512xf32, #tpu.memory_space<vmem>>, %arg25: memref<8x8x512xf32, #tpu.memory_space<vmem>>) attributes {dimension_semantics = [#tpu.dimension_semantics<parallel>], iteration_bounds = array<i64: 1>, scalar_prefetch = 0 : i64, scratch_operands = 2 : i64, tpu.core_type = #tpu.core_type<tc>, window_params = [{transform_indices = @transform_0, window_bounds = array<i64: 16, 8, 32>}, {transform_indices = @transform_1, window_bounds = array<i64: 16, 8, 1>}, {transform_indices = @transform_2, window_bounds = array<i64: 8, 8, 32>}, {transform_indices = @transform_3, window_bounds = array<i64: 8, 8, 1>}, {pipeline_mode = #tpu.pipeline_mode<synchronous>, transform_indices = @transform_4, window_bounds = array<i64: 32, 512>}, {pipeline_mode = #tpu.pipeline_mode<synchronous>, transform_indices = @transform_5, window_bounds = array<i64: 128, 512>}, {pipeline_mode = #tpu.pipeline_mode<synchronous>, transform_indices = @transform_6, window_bounds = array<i64: 1, 512>}, {pipeline_mode = #tpu.pipeline_mode<synchronous>, transform_indices = @transform_7, window_bounds = array<i64: 32, 512>}, {pipeline_mode = #tpu.pipeline_mode<synchronous>, transform_indices = @transform_8, window_bounds = array<i64: 128, 512>}, {pipeline_mode = #tpu.pipeline_mode<synchronous>, transform_indices = @transform_9, window_bounds = array<i64: 1, 512>}, {pipeline_mode = #tpu.pipeline_mode<synchronous>, transform_indices = @transform_10, window_bounds = array<i64: 128, 4>}, {pipeline_mode = #tpu.pipeline_mode<synchronous>, transform_indices = @transform_11, window_bounds = array<i64: 1, 4>}, {pipeline_mode = #tpu.pipeline_mode<synchronous>, transform_indices = @transform_12, window_bounds = array<i64: 128, 4>}, {pipeline_mode = #tpu.pipeline_mode<synchronous>, transform_indices = @transform_13, window_bounds = array<i64: 1, 4>}, {pipeline_mode = #tpu.pipeline_mode<synchronous>, transform_indices = @transform_14, window_bounds = array<i64: 32, 64>}, {pipeline_mode = #tpu.pipeline_mode<synchronous>, transform_indices = @transform_15, window_bounds = array<i64: 32, 64>}, {pipeline_mode = #tpu.pipeline_mode<synchronous>, transform_indices = @transform_16, window_bounds = array<i64: 1, 64>}, {pipeline_mode = #tpu.pipeline_mode<synchronous>, transform_indices = @transform_17, window_bounds = array<i64: 64, 64>}, {pipeline_mode = #tpu.pipeline_mode<synchronous>, transform_indices = @transform_18, window_bounds = array<i64: 1, 64>}, {pipeline_mode = #tpu.pipeline_mode<synchronous>, transform_indices = @transform_19, window_bounds = array<i64: 64, 2>}, {pipeline_mode = #tpu.pipeline_mode<synchronous>, transform_indices = @transform_20, window_bounds = array<i64: 1, 2>}, {transform_indices = @transform_21, window_bounds = array<i64: 8, 4>}, {transform_indices = @transform_22, window_bounds = array<i64: 8, 4>}]} {
    %c0 = arith.constant 0 : index
    %c0_0 = arith.constant 0 : index
    %c0_1 = arith.constant 0 : index
    %0 = vector.load %arg1[%c0, %c0_0, %c0_1] : memref<16x8x32xf32, #tpu.memory_space<vmem>>, vector<16x8x32xf32>
    %1 = vector.shape_cast %0 : vector<16x8x32xf32> to vector<128x32xf32>
    %c0_2 = arith.constant 0 : index
    %c0_3 = arith.constant 0 : index
    %2 = vector.load %arg5[%c0_2, %c0_3] : memref<32x512xf32, #tpu.memory_space<vmem>>, vector<32x512xf32>
    %cst = arith.constant dense<0.000000e+00> : vector<128x512xf32>
    %3 = tpu.matmul %1, %2, %cst {dimension_numbers = #tpu.dot_dimension_numbers<[1], [0], [0], [1], [0, 0, 1, 1], [], []>} : vector<128x32xf32>, vector<32x512xf32>, vector<128x512xf32> -> vector<128x512xf32>
    %c0_4 = arith.constant 0 : index
    %c0_5 = arith.constant 0 : index
    %4 = vector.load %arg7[%c0_4, %c0_5] : memref<1x512xf32, #tpu.memory_space<vmem>>, vector<1x512xf32>
    %5 = vector.broadcast %4 : vector<1x512xf32> to vector<128x512xf32>
    %6 = arith.addf %3, %5 : vector<128x512xf32>
    %7 = vector.shape_cast %6 : vector<128x512xf32> to vector<16x8x512xf32>
    %c0_6 = arith.constant 0 : index
    %c0_7 = arith.constant 0 : index
    %c0_8 = arith.constant 0 : index
    %8 = vector.load %arg24[%c0_6, %c0_7, %c0_8] : memref<16x8x512xf32, #tpu.memory_space<vmem>>, vector<16x8x512xf32>
    tpu.vector_store %arg24[%c0_6, %c0_7, %c0_8], %7 {strides = array<i32>} : memref<16x8x512xf32, #tpu.memory_space<vmem>>, vector<16x8x512xf32>,
    %c0_9 = arith.constant 0 : index
    %c0_10 = arith.constant 0 : index
    %9 = vector.load %arg6[%c0_9, %c0_10] : memref<128x512xf32, #tpu.memory_space<vmem>>, vector<128x512xf32>
    %10 = tpu.iota {dimensions = array<i32: 1>} : vector<1x512xi32>
    %c128_i32 = arith.constant 128 : i32
    %c0_i32 = arith.constant 0 : i32
    %11 = arith.cmpi eq, %c128_i32, %c0_i32 : i32
    %c1_i32 = arith.constant 1 : i32
    %12 = arith.select %11, %c1_i32, %c128_i32 : i32
    %13 = vector.broadcast %12 : i32 to vector<1x512xi32>
    %14 = arith.remsi %10, %13 : vector<1x512xi32>
    %c0_i32_11 = arith.constant 0 : i32
    %15 = vector.broadcast %c0_i32_11 : i32 to vector<1x512xi32>
    %16 = arith.cmpi ne, %14, %15 : vector<1x512xi32>
    %c0_i32_12 = arith.constant 0 : i32
    %17 = vector.broadcast %c0_i32_12 : i32 to vector<1x512xi32>
    %18 = arith.cmpi slt, %14, %17 : vector<1x512xi32>
    %c0_i32_13 = arith.constant 0 : i32
    %19 = arith.cmpi slt, %12, %c0_i32_13 : i32
    %20 = vector.broadcast %19 : i1 to vector<1x512xi1>
    %21 = vector.broadcast %20 : vector<1x512xi1> to vector<1x512xi1>
    %22 = arith.xori %18, %21 : vector<1x512xi1>
    %23 = arith.andi %22, %16 : vector<1x512xi1>
    %24 = vector.broadcast %12 : i32 to vector<1x512xi32>
    %25 = arith.addi %14, %24 : vector<1x512xi32>
    %26 = arith.select %23, %25, %14 : vector<1x512xi1>, vector<1x512xi32>
    %c32_i32 = arith.constant 32 : i32
    %27 = vector.broadcast %c32_i32 : i32 to vector<1x512xi32>
    %28 = arith.cmpi slt, %26, %27 : vector<1x512xi32>
    %29 = tpu.iota {dimensions = array<i32: 1>} : vector<1x128xi32>
    %c32_i32_14 = arith.constant 32 : i32
    %30 = vector.broadcast %c32_i32_14 : i32 to vector<1x128xi32>
    %31 = arith.cmpi slt, %29, %30 : vector<1x128xi32>
    %cst_15 = arith.constant 0.000000e+00 : f32
    %32 = vector.broadcast %cst_15 : f32 to vector<8x128xf32>
    %cst_16 = arith.constant -1.000000e+04 : f32
    %33 = vector.broadcast %cst_16 : f32 to vector<8x128xf32>
    %cst_17 = arith.constant -1.000000e+04 : f32
    %c0_i32_18 = arith.constant 0 : i32
    %c16_i32 = arith.constant 16 : i32
    %34 = arith.addi %c0_i32_18, %c16_i32 : i32
    %c1_i32_19 = arith.constant 1 : i32
    %35:3 = scf.for %arg26 = %c0_i32_18 to %34 step %c1_i32_19 iter_args(%arg27 = %32, %arg28 = %32, %arg29 = %33) -> (vector<8x128xf32>, vector<8x128xf32>, vector<8x128xf32>)  : i32 {
      %c15_i32 = arith.constant 15 : i32
      %127 = arith.subi %c15_i32, %arg26 : i32
      %128 = arith.index_cast %arg26 : i32 to index
      %c0_92 = arith.constant 0 : index
      %c0_93 = arith.constant 0 : index
      %129 = vector.load %arg24[%128, %c0_92, %c0_93] : memref<16x8x512xf32, #tpu.memory_space<vmem>>, vector<1x8x512xf32>
      %130 = vector.shape_cast %129 : vector<1x8x512xf32> to vector<8x512xf32>
      %131 = arith.index_cast %127 : i32 to index
      %c0_94 = arith.constant 0 : index
      %c0_95 = arith.constant 0 : index
      %132 = vector.load %arg24[%131, %c0_94, %c0_95] : memref<16x8x512xf32, #tpu.memory_space<vmem>>, vector<1x8x512xf32>
      %133 = vector.shape_cast %132 : vector<1x8x512xf32> to vector<8x512xf32>
      %134 = vector.shape_cast %28 : vector<1x512xi1> to vector<1x512xi1>
      %135 = vector.broadcast %134 : vector<1x512xi1> to vector<8x512xi1>
      %136 = arith.select %135, %130, %133 : vector<8x512xi1>, vector<8x512xf32>
      %cst_96 = arith.constant dense<0.000000e+00> : vector<8x512xf32>
      %137 = tpu.matmul %arg27, %9, %cst_96 {dimension_numbers = #tpu.dot_dimension_numbers<[1], [0], [0], [1], [0, 0, 1, 1], [], []>} : vector<8x128xf32>, vector<128x512xf32>, vector<8x512xf32> -> vector<8x512xf32>
      %138 = arith.addf %136, %137 : vector<8x512xf32>
      %139 = vector.extract_strided_slice %138 {offsets = [0, 0], sizes = [8, 128], strides = [1, 1]} : vector<8x512xf32> to vector<8x128xf32>
      %140 = arith.negf %139 : vector<8x128xf32>
      %141 = math.exp %140 : vector<8x128xf32>
      %cst_97 = arith.constant 1.000000e+00 : f32
      %142 = vector.broadcast %cst_97 : f32 to vector<8x128xf32>
      %143 = arith.addf %142, %141 : vector<8x128xf32>
      %144 = arith.divf %142, %143 : vector<8x128xf32>
      %145 = vector.extract_strided_slice %138 {offsets = [0, 128], sizes = [8, 128], strides = [1, 1]} : vector<8x512xf32> to vector<8x128xf32>
      %146 = arith.negf %145 : vector<8x128xf32>
      %147 = math.exp %146 : vector<8x128xf32>
      %cst_98 = arith.constant 1.000000e+00 : f32
      %148 = vector.broadcast %cst_98 : f32 to vector<8x128xf32>
      %149 = arith.addf %148, %147 : vector<8x128xf32>
      %150 = arith.divf %148, %149 : vector<8x128xf32>
      %151 = vector.extract_strided_slice %138 {offsets = [0, 256], sizes = [8, 128], strides = [1, 1]} : vector<8x512xf32> to vector<8x128xf32>
      %152 = math.tanh %151 : vector<8x128xf32>
      %153 = vector.extract_strided_slice %138 {offsets = [0, 384], sizes = [8, 128], strides = [1, 1]} : vector<8x512xf32> to vector<8x128xf32>
      %154 = arith.negf %153 : vector<8x128xf32>
      %155 = math.exp %154 : vector<8x128xf32>
      %cst_99 = arith.constant 1.000000e+00 : f32
      %156 = vector.broadcast %cst_99 : f32 to vector<8x128xf32>
      %157 = arith.addf %156, %155 : vector<8x128xf32>
      %158 = arith.divf %156, %157 : vector<8x128xf32>
      %159 = arith.mulf %150, %arg28 : vector<8x128xf32>
      %160 = arith.mulf %144, %152 : vector<8x128xf32>
      %161 = arith.addf %159, %160 : vector<8x128xf32>
      %162 = math.tanh %161 : vector<8x128xf32>
      %163 = arith.mulf %158, %162 : vector<8x128xf32>
      %164 = arith.index_cast %arg26 : i32 to index
      %c0_100 = arith.constant 0 : index
      %c0_101 = arith.constant 0 : index
      %165 = vector.load %arg2[%164, %c0_100, %c0_101] : memref<16x8x1xf32, #tpu.memory_space<vmem>>, vector<1x8x1xf32>
      %166 = vector.shape_cast %165 : vector<1x8x1xf32> to vector<8x1xf32>
      %167 = arith.index_cast %127 : i32 to index
      %c0_102 = arith.constant 0 : index
      %c0_103 = arith.constant 0 : index
      %168 = vector.load %arg2[%167, %c0_102, %c0_103] : memref<16x8x1xf32, #tpu.memory_space<vmem>>, vector<1x8x1xf32>
      %169 = vector.shape_cast %168 : vector<1x8x1xf32> to vector<8x1xf32>
      %170 = vector.shape_cast %31 : vector<1x128xi1> to vector<1x128xi1>
      %171 = vector.broadcast %170 : vector<1x128xi1> to vector<8x128xi1>
      %172 = vector.shape_cast %166 : vector<8x1xf32> to vector<8x1xf32>
      %173 = vector.broadcast %172 : vector<8x1xf32> to vector<8x128xf32>
      %174 = vector.shape_cast %169 : vector<8x1xf32> to vector<8x1xf32>
      %175 = vector.broadcast %174 : vector<8x1xf32> to vector<8x128xf32>
      %176 = arith.select %171, %173, %175 : vector<8x128xi1>, vector<8x128xf32>
      %177 = arith.mulf %176, %163 : vector<8x128xf32>
      %cst_104 = arith.constant 1.000000e+00 : f32
      %178 = vector.broadcast %cst_104 : f32 to vector<8x128xf32>
      %179 = arith.subf %178, %176 : vector<8x128xf32>
      %180 = arith.mulf %179, %arg27 : vector<8x128xf32>
      %181 = arith.addf %177, %180 : vector<8x128xf32>
      %182 = arith.mulf %176, %161 : vector<8x128xf32>
      %cst_105 = arith.constant 1.000000e+00 : f32
      %183 = vector.broadcast %cst_105 : f32 to vector<8x128xf32>
      %184 = arith.subf %183, %176 : vector<8x128xf32>
      %185 = arith.mulf %184, %arg28 : vector<8x128xf32>
      %186 = arith.addf %182, %185 : vector<8x128xf32>
      %187 = arith.mulf %176, %163 : vector<8x128xf32>
      %cst_106 = arith.constant 1.000000e+00 : f32
      %188 = vector.broadcast %cst_106 : f32 to vector<8x128xf32>
      %189 = arith.subf %188, %176 : vector<8x128xf32>
      %190 = vector.broadcast %cst_17 : f32 to vector<8x128xf32>
      %191 = arith.mulf %190, %189 : vector<8x128xf32>
      %192 = arith.addf %187, %191 : vector<8x128xf32>
      %193 = arith.maximumf %arg29, %192 : vector<8x128xf32>
      scf.yield %181, %186, %193 : vector<8x128xf32>, vector<8x128xf32>, vector<8x128xf32>
    }
    %c16_i32_20 = arith.constant 16 : i32
    %c0_21 = arith.constant 0 : index
    %c0_22 = arith.constant 0 : index
    %c0_23 = arith.constant 0 : index
    %36 = vector.load %arg3[%c0_21, %c0_22, %c0_23] : memref<8x8x32xf32, #tpu.memory_space<vmem>>, vector<8x8x32xf32>
    %37 = vector.shape_cast %36 : vector<8x8x32xf32> to vector<64x32xf32>
    %c0_24 = arith.constant 0 : index
    %c0_25 = arith.constant 0 : index
    %38 = vector.load %arg8[%c0_24, %c0_25] : memref<32x512xf32, #tpu.memory_space<vmem>>, vector<32x512xf32>
    %cst_26 = arith.constant dense<0.000000e+00> : vector<64x512xf32>
    %39 = tpu.matmul %37, %38, %cst_26 {dimension_numbers = #tpu.dot_dimension_numbers<[1], [0], [0], [1], [0, 0, 1, 1], [], []>} : vector<64x32xf32>, vector<32x512xf32>, vector<64x512xf32> -> vector<64x512xf32>
    %c0_27 = arith.constant 0 : index
    %c0_28 = arith.constant 0 : index
    %40 = vector.load %arg10[%c0_27, %c0_28] : memref<1x512xf32, #tpu.memory_space<vmem>>, vector<1x512xf32>
    %41 = vector.broadcast %40 : vector<1x512xf32> to vector<64x512xf32>
    %42 = arith.addf %39, %41 : vector<64x512xf32>
    %43 = vector.shape_cast %42 : vector<64x512xf32> to vector<8x8x512xf32>
    %c0_29 = arith.constant 0 : index
    %c0_30 = arith.constant 0 : index
    %c0_31 = arith.constant 0 : index
    %44 = vector.load %arg25[%c0_29, %c0_30, %c0_31] : memref<8x8x512xf32, #tpu.memory_space<vmem>>, vector<8x8x512xf32>
    tpu.vector_store %arg25[%c0_29, %c0_30, %c0_31], %43 {strides = array<i32>} : memref<8x8x512xf32, #tpu.memory_space<vmem>>, vector<8x8x512xf32>,
    %c0_32 = arith.constant 0 : index
    %c0_33 = arith.constant 0 : index
    %45 = vector.load %arg9[%c0_32, %c0_33] : memref<128x512xf32, #tpu.memory_space<vmem>>, vector<128x512xf32>
    %46 = tpu.iota {dimensions = array<i32: 1>} : vector<1x512xi32>
    %c128_i32_34 = arith.constant 128 : i32
    %c0_i32_35 = arith.constant 0 : i32
    %47 = arith.cmpi eq, %c128_i32_34, %c0_i32_35 : i32
    %c1_i32_36 = arith.constant 1 : i32
    %48 = arith.select %47, %c1_i32_36, %c128_i32_34 : i32
    %49 = vector.broadcast %48 : i32 to vector<1x512xi32>
    %50 = arith.remsi %46, %49 : vector<1x512xi32>
    %c0_i32_37 = arith.constant 0 : i32
    %51 = vector.broadcast %c0_i32_37 : i32 to vector<1x512xi32>
    %52 = arith.cmpi ne, %50, %51 : vector<1x512xi32>
    %c0_i32_38 = arith.constant 0 : i32
    %53 = vector.broadcast %c0_i32_38 : i32 to vector<1x512xi32>
    %54 = arith.cmpi slt, %50, %53 : vector<1x512xi32>
    %c0_i32_39 = arith.constant 0 : i32
    %55 = arith.cmpi slt, %48, %c0_i32_39 : i32
    %56 = vector.broadcast %55 : i1 to vector<1x512xi1>
    %57 = vector.broadcast %56 : vector<1x512xi1> to vector<1x512xi1>
    %58 = arith.xori %54, %57 : vector<1x512xi1>
    %59 = arith.andi %58, %52 : vector<1x512xi1>
    %60 = vector.broadcast %48 : i32 to vector<1x512xi32>
    %61 = arith.addi %50, %60 : vector<1x512xi32>
    %62 = arith.select %59, %61, %50 : vector<1x512xi1>, vector<1x512xi32>
    %c32_i32_40 = arith.constant 32 : i32
    %63 = vector.broadcast %c32_i32_40 : i32 to vector<1x512xi32>
    %64 = arith.cmpi slt, %62, %63 : vector<1x512xi32>
    %65 = tpu.iota {dimensions = array<i32: 1>} : vector<1x128xi32>
    %c32_i32_41 = arith.constant 32 : i32
    %66 = vector.broadcast %c32_i32_41 : i32 to vector<1x128xi32>
    %67 = arith.cmpi slt, %65, %66 : vector<1x128xi32>
    %cst_42 = arith.constant 0.000000e+00 : f32
    %68 = vector.broadcast %cst_42 : f32 to vector<8x128xf32>
    %cst_43 = arith.constant -1.000000e+04 : f32
    %69 = vector.broadcast %cst_43 : f32 to vector<8x128xf32>
    %cst_44 = arith.constant -1.000000e+04 : f32
    %c0_i32_45 = arith.constant 0 : i32
    %c8_i32 = arith.constant 8 : i32
    %70 = arith.addi %c0_i32_45, %c8_i32 : i32
    %c1_i32_46 = arith.constant 1 : i32
    %71:3 = scf.for %arg26 = %c0_i32_45 to %70 step %c1_i32_46 iter_args(%arg27 = %68, %arg28 = %68, %arg29 = %69) -> (vector<8x128xf32>, vector<8x128xf32>, vector<8x128xf32>)  : i32 {
      %c7_i32 = arith.constant 7 : i32
      %127 = arith.subi %c7_i32, %arg26 : i32
      %128 = arith.index_cast %arg26 : i32 to index
      %c0_92 = arith.constant 0 : index
      %c0_93 = arith.constant 0 : index
      %129 = vector.load %arg25[%128, %c0_92, %c0_93] : memref<8x8x512xf32, #tpu.memory_space<vmem>>, vector<1x8x512xf32>
      %130 = vector.shape_cast %129 : vector<1x8x512xf32> to vector<8x512xf32>
      %131 = arith.index_cast %127 : i32 to index
      %c0_94 = arith.constant 0 : index
      %c0_95 = arith.constant 0 : index
      %132 = vector.load %arg25[%131, %c0_94, %c0_95] : memref<8x8x512xf32, #tpu.memory_space<vmem>>, vector<1x8x512xf32>
      %133 = vector.shape_cast %132 : vector<1x8x512xf32> to vector<8x512xf32>
      %134 = vector.shape_cast %64 : vector<1x512xi1> to vector<1x512xi1>
      %135 = vector.broadcast %134 : vector<1x512xi1> to vector<8x512xi1>
      %136 = arith.select %135, %130, %133 : vector<8x512xi1>, vector<8x512xf32>
      %cst_96 = arith.constant dense<0.000000e+00> : vector<8x512xf32>
      %137 = tpu.matmul %arg27, %45, %cst_96 {dimension_numbers = #tpu.dot_dimension_numbers<[1], [0], [0], [1], [0, 0, 1, 1], [], []>} : vector<8x128xf32>, vector<128x512xf32>, vector<8x512xf32> -> vector<8x512xf32>
      %138 = arith.addf %136, %137 : vector<8x512xf32>
      %139 = vector.extract_strided_slice %138 {offsets = [0, 0], sizes = [8, 128], strides = [1, 1]} : vector<8x512xf32> to vector<8x128xf32>
      %140 = arith.negf %139 : vector<8x128xf32>
      %141 = math.exp %140 : vector<8x128xf32>
      %cst_97 = arith.constant 1.000000e+00 : f32
      %142 = vector.broadcast %cst_97 : f32 to vector<8x128xf32>
      %143 = arith.addf %142, %141 : vector<8x128xf32>
      %144 = arith.divf %142, %143 : vector<8x128xf32>
      %145 = vector.extract_strided_slice %138 {offsets = [0, 128], sizes = [8, 128], strides = [1, 1]} : vector<8x512xf32> to vector<8x128xf32>
      %146 = arith.negf %145 : vector<8x128xf32>
      %147 = math.exp %146 : vector<8x128xf32>
      %cst_98 = arith.constant 1.000000e+00 : f32
      %148 = vector.broadcast %cst_98 : f32 to vector<8x128xf32>
      %149 = arith.addf %148, %147 : vector<8x128xf32>
      %150 = arith.divf %148, %149 : vector<8x128xf32>
      %151 = vector.extract_strided_slice %138 {offsets = [0, 256], sizes = [8, 128], strides = [1, 1]} : vector<8x512xf32> to vector<8x128xf32>
      %152 = math.tanh %151 : vector<8x128xf32>
      %153 = vector.extract_strided_slice %138 {offsets = [0, 384], sizes = [8, 128], strides = [1, 1]} : vector<8x512xf32> to vector<8x128xf32>
      %154 = arith.negf %153 : vector<8x128xf32>
      %155 = math.exp %154 : vector<8x128xf32>
      %cst_99 = arith.constant 1.000000e+00 : f32
      %156 = vector.broadcast %cst_99 : f32 to vector<8x128xf32>
      %157 = arith.addf %156, %155 : vector<8x128xf32>
      %158 = arith.divf %156, %157 : vector<8x128xf32>
      %159 = arith.mulf %150, %arg28 : vector<8x128xf32>
      %160 = arith.mulf %144, %152 : vector<8x128xf32>
      %161 = arith.addf %159, %160 : vector<8x128xf32>
      %162 = math.tanh %161 : vector<8x128xf32>
      %163 = arith.mulf %158, %162 : vector<8x128xf32>
      %164 = arith.index_cast %arg26 : i32 to index
      %c0_100 = arith.constant 0 : index
      %c0_101 = arith.constant 0 : index
      %165 = vector.load %arg4[%164, %c0_100, %c0_101] : memref<8x8x1xf32, #tpu.memory_space<vmem>>, vector<1x8x1xf32>
      %166 = vector.shape_cast %165 : vector<1x8x1xf32> to vector<8x1xf32>
      %167 = arith.index_cast %127 : i32 to index
      %c0_102 = arith.constant 0 : index
      %c0_103 = arith.constant 0 : index
      %168 = vector.load %arg4[%167, %c0_102, %c0_103] : memref<8x8x1xf32, #tpu.memory_space<vmem>>, vector<1x8x1xf32>
      %169 = vector.shape_cast %168 : vector<1x8x1xf32> to vector<8x1xf32>
      %170 = vector.shape_cast %67 : vector<1x128xi1> to vector<1x128xi1>
      %171 = vector.broadcast %170 : vector<1x128xi1> to vector<8x128xi1>
      %172 = vector.shape_cast %166 : vector<8x1xf32> to vector<8x1xf32>
      %173 = vector.broadcast %172 : vector<8x1xf32> to vector<8x128xf32>
      %174 = vector.shape_cast %169 : vector<8x1xf32> to vector<8x1xf32>
      %175 = vector.broadcast %174 : vector<8x1xf32> to vector<8x128xf32>
      %176 = arith.select %171, %173, %175 : vector<8x128xi1>, vector<8x128xf32>
      %177 = arith.mulf %176, %163 : vector<8x128xf32>
      %cst_104 = arith.constant 1.000000e+00 : f32
      %178 = vector.broadcast %cst_104 : f32 to vector<8x128xf32>
      %179 = arith.subf %178, %176 : vector<8x128xf32>
      %180 = arith.mulf %179, %arg27 : vector<8x128xf32>
      %181 = arith.addf %177, %180 : vector<8x128xf32>
      %182 = arith.mulf %176, %161 : vector<8x128xf32>
      %cst_105 = arith.constant 1.000000e+00 : f32
      %183 = vector.broadcast %cst_105 : f32 to vector<8x128xf32>
      %184 = arith.subf %183, %176 : vector<8x128xf32>
      %185 = arith.mulf %184, %arg28 : vector<8x128xf32>
      %186 = arith.addf %182, %185 : vector<8x128xf32>
      %187 = arith.mulf %176, %163 : vector<8x128xf32>
      %cst_106 = arith.constant 1.000000e+00 : f32
      %188 = vector.broadcast %cst_106 : f32 to vector<8x128xf32>
      %189 = arith.subf %188, %176 : vector<8x128xf32>
      %190 = vector.broadcast %cst_44 : f32 to vector<8x128xf32>
      %191 = arith.mulf %190, %189 : vector<8x128xf32>
      %192 = arith.addf %187, %191 : vector<8x128xf32>
      %193 = arith.maximumf %arg29, %192 : vector<8x128xf32>
      scf.yield %181, %186, %193 : vector<8x128xf32>, vector<8x128xf32>, vector<8x128xf32>
    }
    %c8_i32_47 = arith.constant 8 : i32
    %c0_48 = arith.constant 0 : index
    %c0_49 = arith.constant 0 : index
    %72 = vector.load %arg11[%c0_48, %c0_49] : memref<128x4xf32, #tpu.memory_space<vmem>>, vector<128x4xf32>
    %cst_50 = arith.constant dense<0.000000e+00> : vector<8x4xf32>
    %73 = tpu.matmul %35#2, %72, %cst_50 {dimension_numbers = #tpu.dot_dimension_numbers<[1], [0], [0], [1], [0, 0, 1, 1], [], []>} : vector<8x128xf32>, vector<128x4xf32>, vector<8x4xf32> -> vector<8x4xf32>
    %c0_51 = arith.constant 0 : index
    %c0_52 = arith.constant 0 : index
    %74 = vector.load %arg12[%c0_51, %c0_52] : memref<1x4xf32, #tpu.memory_space<vmem>>, vector<1x4xf32>
    %75 = vector.broadcast %74 : vector<1x4xf32> to vector<8x4xf32>
    %76 = arith.addf %73, %75 : vector<8x4xf32>
    %c0_53 = arith.constant 0 : index
    %c0_54 = arith.constant 0 : index
    %77 = vector.load %arg13[%c0_53, %c0_54] : memref<128x4xf32, #tpu.memory_space<vmem>>, vector<128x4xf32>
    %cst_55 = arith.constant dense<0.000000e+00> : vector<8x4xf32>
    %78 = tpu.matmul %71#2, %77, %cst_55 {dimension_numbers = #tpu.dot_dimension_numbers<[1], [0], [0], [1], [0, 0, 1, 1], [], []>} : vector<8x128xf32>, vector<128x4xf32>, vector<8x4xf32> -> vector<8x4xf32>
    %c0_56 = arith.constant 0 : index
    %c0_57 = arith.constant 0 : index
    %79 = vector.load %arg14[%c0_56, %c0_57] : memref<1x4xf32, #tpu.memory_space<vmem>>, vector<1x4xf32>
    %80 = vector.broadcast %79 : vector<1x4xf32> to vector<8x4xf32>
    %81 = arith.addf %78, %80 : vector<8x4xf32>
    %c0_58 = arith.constant 0 : index
    %c0_59 = arith.constant 0 : index
    %c0_60 = arith.constant 0 : index
    %82 = vector.load %arg1[%c0_58, %c0_59, %c0_60] : memref<16x8x32xf32, #tpu.memory_space<vmem>>, vector<16x8x32xf32>
    %cst_61 = arith.constant dense<0xFF800000> : vector<8x32xf32>
    %83 = vector.multi_reduction <maximumf>, %82, %cst_61 [0] : vector<16x8x32xf32> to vector<8x32xf32>
    %c0_62 = arith.constant 0 : index
    %c0_63 = arith.constant 0 : index
    %c0_64 = arith.constant 0 : index
    %84 = vector.load %arg3[%c0_62, %c0_63, %c0_64] : memref<8x8x32xf32, #tpu.memory_space<vmem>>, vector<8x8x32xf32>
    %cst_65 = arith.constant dense<0xFF800000> : vector<8x32xf32>
    %85 = vector.multi_reduction <maximumf>, %84, %cst_65 [0] : vector<8x8x32xf32> to vector<8x32xf32>
    %c0_66 = arith.constant 0 : index
    %c0_67 = arith.constant 0 : index
    %86 = vector.load %arg15[%c0_66, %c0_67] : memref<32x64xf32, #tpu.memory_space<vmem>>, vector<32x64xf32>
    %cst_68 = arith.constant dense<0.000000e+00> : vector<8x64xf32>
    %87 = tpu.matmul %83, %86, %cst_68 {dimension_numbers = #tpu.dot_dimension_numbers<[1], [0], [0], [1], [0, 0, 1, 1], [], []>} : vector<8x32xf32>, vector<32x64xf32>, vector<8x64xf32> -> vector<8x64xf32>
    %c0_69 = arith.constant 0 : index
    %c0_70 = arith.constant 0 : index
    %88 = vector.load %arg16[%c0_69, %c0_70] : memref<32x64xf32, #tpu.memory_space<vmem>>, vector<32x64xf32>
    %cst_71 = arith.constant dense<0.000000e+00> : vector<8x64xf32>
    %89 = tpu.matmul %85, %88, %cst_71 {dimension_numbers = #tpu.dot_dimension_numbers<[1], [0], [0], [1], [0, 0, 1, 1], [], []>} : vector<8x32xf32>, vector<32x64xf32>, vector<8x64xf32> -> vector<8x64xf32>
    %90 = arith.addf %87, %89 : vector<8x64xf32>
    %c0_72 = arith.constant 0 : index
    %c0_73 = arith.constant 0 : index
    %91 = vector.load %arg17[%c0_72, %c0_73] : memref<1x64xf32, #tpu.memory_space<vmem>>, vector<1x64xf32>
    %92 = vector.broadcast %91 : vector<1x64xf32> to vector<8x64xf32>
    %93 = arith.addf %90, %92 : vector<8x64xf32>
    %cst_74 = arith.constant 0.000000e+00 : f32
    %94 = vector.broadcast %cst_74 : f32 to vector<8x64xf32>
    %95 = arith.maximumf %93, %94 : vector<8x64xf32>
    %c0_75 = arith.constant 0 : index
    %c0_76 = arith.constant 0 : index
    %96 = vector.load %arg18[%c0_75, %c0_76] : memref<64x64xf32, #tpu.memory_space<vmem>>, vector<64x64xf32>
    %cst_77 = arith.constant dense<0.000000e+00> : vector<8x64xf32>
    %97 = tpu.matmul %95, %96, %cst_77 {dimension_numbers = #tpu.dot_dimension_numbers<[1], [0], [0], [1], [0, 0, 1, 1], [], []>} : vector<8x64xf32>, vector<64x64xf32>, vector<8x64xf32> -> vector<8x64xf32>
    %c0_78 = arith.constant 0 : index
    %c0_79 = arith.constant 0 : index
    %98 = vector.load %arg19[%c0_78, %c0_79] : memref<1x64xf32, #tpu.memory_space<vmem>>, vector<1x64xf32>
    %99 = vector.broadcast %98 : vector<1x64xf32> to vector<8x64xf32>
    %100 = arith.addf %97, %99 : vector<8x64xf32>
    %cst_80 = arith.constant 0.000000e+00 : f32
    %101 = vector.broadcast %cst_80 : f32 to vector<8x64xf32>
    %102 = arith.maximumf %100, %101 : vector<8x64xf32>
    %c0_81 = arith.constant 0 : index
    %c0_82 = arith.constant 0 : index
    %103 = vector.load %arg20[%c0_81, %c0_82] : memref<64x2xf32, #tpu.memory_space<vmem>>, vector<64x2xf32>
    %cst_83 = arith.constant dense<0.000000e+00> : vector<8x2xf32>
    %104 = tpu.matmul %102, %103, %cst_83 {dimension_numbers = #tpu.dot_dimension_numbers<[1], [0], [0], [1], [0, 0, 1, 1], [], []>} : vector<8x64xf32>, vector<64x2xf32>, vector<8x2xf32> -> vector<8x2xf32>
    %c0_84 = arith.constant 0 : index
    %c0_85 = arith.constant 0 : index
    %105 = vector.load %arg21[%c0_84, %c0_85] : memref<1x2xf32, #tpu.memory_space<vmem>>, vector<1x2xf32>
    %106 = vector.broadcast %105 : vector<1x2xf32> to vector<8x2xf32>
    %107 = arith.addf %104, %106 : vector<8x2xf32>
    %cst_86 = arith.constant dense<0xFF800000> : vector<8xf32>
    %108 = vector.multi_reduction <maximumf>, %107, %cst_86 [1] : vector<8x2xf32> to vector<8xf32>
    %109 = vector.shape_cast %108 : vector<8xf32> to vector<8x1xf32>
    %110 = vector.broadcast %109 : vector<8x1xf32> to vector<8x2xf32>
    %111 = arith.subf %107, %110 : vector<8x2xf32>
    %112 = math.exp %111 : vector<8x2xf32>
    %cst_87 = arith.constant dense<0.000000e+00> : vector<8xf32>
    %113 = vector.multi_reduction <add>, %112, %cst_87 [1] : vector<8x2xf32> to vector<8xf32>
    %114 = vector.shape_cast %113 : vector<8xf32> to vector<8x1xf32>
    %115 = tpu.reciprocal %114 {approx = true} : vector<8x1xf32> -> vector<8x1xf32>
    %116 = vector.broadcast %115 : vector<8x1xf32> to vector<8x2xf32>
    %117 = arith.mulf %112, %116 : vector<8x2xf32>
    %118 = vector.extract_strided_slice %117 {offsets = [0, 0], sizes = [8, 1], strides = [1, 1]} : vector<8x2xf32> to vector<8x1xf32>
    %119 = vector.broadcast %118 : vector<8x1xf32> to vector<8x4xf32>
    %120 = arith.mulf %76, %119 : vector<8x4xf32>
    %121 = vector.extract_strided_slice %117 {offsets = [0, 1], sizes = [8, 1], strides = [1, 1]} : vector<8x2xf32> to vector<8x1xf32>
    %122 = vector.broadcast %121 : vector<8x1xf32> to vector<8x4xf32>
    %123 = arith.mulf %81, %122 : vector<8x4xf32>
    %124 = arith.addf %120, %123 : vector<8x4xf32>
    %c0_88 = arith.constant 0 : index
    %c0_89 = arith.constant 0 : index
    %125 = vector.load %arg22[%c0_88, %c0_89] : memref<8x4xf32, #tpu.memory_space<vmem>>, vector<8x4xf32>
    tpu.vector_store %arg22[%c0_88, %c0_89], %124 {strides = array<i32>} : memref<8x4xf32, #tpu.memory_space<vmem>>, vector<8x4xf32>,
    %c0_90 = arith.constant 0 : index
    %c0_91 = arith.constant 0 : index
    %126 = vector.load %arg23[%c0_90, %c0_91] : memref<8x4xf32, #tpu.memory_space<vmem>>, vector<8x4xf32>
    tpu.vector_store %arg23[%c0_90, %c0_91], %81 {strides = array<i32>} : memref<8x4xf32, #tpu.memory_space<vmem>>, vector<8x4xf32>,
    return
  }
  func.func @transform_0(%arg0: i32) -> (i32, i32, i32) {
    %c0_i32 = arith.constant 0 : i32
    %c0_i32_0 = arith.constant 0 : i32
    %c0_i32_1 = arith.constant 0 : i32
    return %c0_i32, %arg0, %c0_i32_0 : i32, i32, i32
  }
  func.func @transform_1(%arg0: i32) -> (i32, i32, i32) {
    %c0_i32 = arith.constant 0 : i32
    %c0_i32_0 = arith.constant 0 : i32
    %c0_i32_1 = arith.constant 0 : i32
    return %c0_i32, %arg0, %c0_i32_0 : i32, i32, i32
  }
  func.func @transform_2(%arg0: i32) -> (i32, i32, i32) {
    %c0_i32 = arith.constant 0 : i32
    %c0_i32_0 = arith.constant 0 : i32
    %c0_i32_1 = arith.constant 0 : i32
    return %c0_i32, %arg0, %c0_i32_0 : i32, i32, i32
  }
  func.func @transform_3(%arg0: i32) -> (i32, i32, i32) {
    %c0_i32 = arith.constant 0 : i32
    %c0_i32_0 = arith.constant 0 : i32
    %c0_i32_1 = arith.constant 0 : i32
    return %c0_i32, %arg0, %c0_i32_0 : i32, i32, i32
  }
  func.func @transform_4(%arg0: i32) -> (i32, i32) {
    %c0_i32 = arith.constant 0 : i32
    %c0_i32_0 = arith.constant 0 : i32
    %c0_i32_1 = arith.constant 0 : i32
    return %c0_i32, %c0_i32_0 : i32, i32
  }
  func.func @transform_5(%arg0: i32) -> (i32, i32) {
    %c0_i32 = arith.constant 0 : i32
    %c0_i32_0 = arith.constant 0 : i32
    %c0_i32_1 = arith.constant 0 : i32
    return %c0_i32, %c0_i32_0 : i32, i32
  }
  func.func @transform_6(%arg0: i32) -> (i32, i32) {
    %c0_i32 = arith.constant 0 : i32
    %c0_i32_0 = arith.constant 0 : i32
    %c0_i32_1 = arith.constant 0 : i32
    return %c0_i32, %c0_i32_0 : i32, i32
  }
  func.func @transform_7(%arg0: i32) -> (i32, i32) {
    %c0_i32 = arith.constant 0 : i32
    %c0_i32_0 = arith.constant 0 : i32
    %c0_i32_1 = arith.constant 0 : i32
    return %c0_i32, %c0_i32_0 : i32, i32
  }
  func.func @transform_8(%arg0: i32) -> (i32, i32) {
    %c0_i32 = arith.constant 0 : i32
    %c0_i32_0 = arith.constant 0 : i32
    %c0_i32_1 = arith.constant 0 : i32
    return %c0_i32, %c0_i32_0 : i32, i32
  }
  func.func @transform_9(%arg0: i32) -> (i32, i32) {
    %c0_i32 = arith.constant 0 : i32
    %c0_i32_0 = arith.constant 0 : i32
    %c0_i32_1 = arith.constant 0 : i32
    return %c0_i32, %c0_i32_0 : i32, i32
  }
  func.func @transform_10(%arg0: i32) -> (i32, i32) {
    %c0_i32 = arith.constant 0 : i32
    %c0_i32_0 = arith.constant 0 : i32
    %c0_i32_1 = arith.constant 0 : i32
    return %c0_i32, %c0_i32_0 : i32, i32
  }
  func.func @transform_11(%arg0: i32) -> (i32, i32) {
    %c0_i32 = arith.constant 0 : i32
    %c0_i32_0 = arith.constant 0 : i32
    %c0_i32_1 = arith.constant 0 : i32
    return %c0_i32, %c0_i32_0 : i32, i32
  }
  func.func @transform_12(%arg0: i32) -> (i32, i32) {
    %c0_i32 = arith.constant 0 : i32
    %c0_i32_0 = arith.constant 0 : i32
    %c0_i32_1 = arith.constant 0 : i32
    return %c0_i32, %c0_i32_0 : i32, i32
  }
  func.func @transform_13(%arg0: i32) -> (i32, i32) {
    %c0_i32 = arith.constant 0 : i32
    %c0_i32_0 = arith.constant 0 : i32
    %c0_i32_1 = arith.constant 0 : i32
    return %c0_i32, %c0_i32_0 : i32, i32
  }
  func.func @transform_14(%arg0: i32) -> (i32, i32) {
    %c0_i32 = arith.constant 0 : i32
    %c0_i32_0 = arith.constant 0 : i32
    %c0_i32_1 = arith.constant 0 : i32
    return %c0_i32, %c0_i32_0 : i32, i32
  }
  func.func @transform_15(%arg0: i32) -> (i32, i32) {
    %c0_i32 = arith.constant 0 : i32
    %c0_i32_0 = arith.constant 0 : i32
    %c0_i32_1 = arith.constant 0 : i32
    return %c0_i32, %c0_i32_0 : i32, i32
  }
  func.func @transform_16(%arg0: i32) -> (i32, i32) {
    %c0_i32 = arith.constant 0 : i32
    %c0_i32_0 = arith.constant 0 : i32
    %c0_i32_1 = arith.constant 0 : i32
    return %c0_i32, %c0_i32_0 : i32, i32
  }
  func.func @transform_17(%arg0: i32) -> (i32, i32) {
    %c0_i32 = arith.constant 0 : i32
    %c0_i32_0 = arith.constant 0 : i32
    %c0_i32_1 = arith.constant 0 : i32
    return %c0_i32, %c0_i32_0 : i32, i32
  }
  func.func @transform_18(%arg0: i32) -> (i32, i32) {
    %c0_i32 = arith.constant 0 : i32
    %c0_i32_0 = arith.constant 0 : i32
    %c0_i32_1 = arith.constant 0 : i32
    return %c0_i32, %c0_i32_0 : i32, i32
  }
  func.func @transform_19(%arg0: i32) -> (i32, i32) {
    %c0_i32 = arith.constant 0 : i32
    %c0_i32_0 = arith.constant 0 : i32
    %c0_i32_1 = arith.constant 0 : i32
    return %c0_i32, %c0_i32_0 : i32, i32
  }
  func.func @transform_20(%arg0: i32) -> (i32, i32) {
    %c0_i32 = arith.constant 0 : i32
    %c0_i32_0 = arith.constant 0 : i32
    %c0_i32_1 = arith.constant 0 : i32
    return %c0_i32, %c0_i32_0 : i32, i32
  }
  func.func @transform_21(%arg0: i32) -> (i32, i32) {
    %c0_i32 = arith.constant 0 : i32
    %c0_i32_0 = arith.constant 0 : i32
    return %arg0, %c0_i32 : i32, i32
  }
  func.func @transform_22(%arg0: i32) -> (i32, i32) {
    %c0_i32 = arith.constant 0 : i32
    %c0_i32_0 = arith.constant 0 : i32
    return %arg0, %c0_i32 : i32, i32
  }
}

</mosaic_0001>

<bundles_post_ra>
// kernel: forward.1
= control target key start
LH: loop header
LB: loop body
LE: loop exit
PB: predicated region body
PF: predicated region fallthrough
CT: control target
= control target key end

     0   :  { %s3604_s0 = inlined_call_operand.vmem [shape: f32[16,8,32], index: 0, kind: input, shape index: {}]   ;;  %s3605_s1 = inlined_call_operand.vmem [shape: f32[16,8,1], index: 1, kind: input, shape index: {}]   ;;  %s3606_s2 = inlined_call_operand.vmem [shape: f32[8,8,32], index: 2, kind: input, shape index: {}]   ;;  %s3607_s3 = inlined_call_operand.vmem [shape: f32[8,8,1], index: 3, kind: input, shape index: {}]   ;;  %s3608_s4 = inlined_call_operand.vmem [shape: f32[32,512], index: 4, kind: input, shape index: {}]   ;;  %s3609_s5 = inlined_call_operand.vmem [shape: f32[128,512], index: 5, kind: input, shape index: {}]   ;;  %s3610_s6 = inlined_call_operand.vmem [shape: f32[1,512], index: 6, kind: input, shape index: {}]   ;;  %s3611_s7 = inlined_call_operand.vmem [shape: f32[32,512], index: 7, kind: input, shape index: {}]   ;;  %s3612_s8 = inlined_call_operand.hbm [shape: f32[128,512], index: 8, kind: input, shape index: {}]   ;;  %s3613_s9 = inlined_call_operand.vmem [shape: f32[1,512], index: 9, kind: input, shape index: {}]   ;;  %s3614_s10 = inlined_call_operand.vmem [shape: f32[128,4], index: 10, kind: input, shape index: {}]   ;;  %s3615_s11 = inlined_call_operand.vmem [shape: f32[1,4], index: 11, kind: input, shape index: {}]   ;;  %s3616_s12 = inlined_call_operand.vmem [shape: f32[128,4], index: 12, kind: input, shape index: {}]   ;;  %s3617_s13 = inlined_call_operand.vmem [shape: f32[1,4], index: 13, kind: input, shape index: {}]   ;;  %s3618_s14 = inlined_call_operand.vmem [shape: f32[32,64], index: 14, kind: input, shape index: {}]   ;;  %s3619_s15 = inlined_call_operand.vmem [shape: f32[32,64], index: 15, kind: input, shape index: {}]   ;;  %s3620_s16 = inlined_call_operand.vmem [shape: f32[1,64], index: 16, kind: input, shape index: {}]   ;;  %s3621_s17 = inlined_call_operand.vmem [shape: f32[64,64], index: 17, kind: input, shape index: {}]   ;;  %s3622_s18 = inlined_call_operand.vmem [shape: f32[1,64], index: 18, kind: input, shape index: {}]   ;;  %s3623_s19 = inlined_call_operand.vmem [shape: f32[64,2], index: 19, kind: input, shape index: {}]   ;;  %s3624_s20 = inlined_call_operand.vmem [shape: f32[1,2], index: 20, kind: input, shape index: {}]   ;;  %s3625_s21 = inlined_call_operand.vmem [shape: f32[8,4], index: 21, kind: output, shape index: {0}]   ;;  %s3626_s22 = inlined_call_operand.vmem [shape: f32[8,4], index: 22, kind: output, shape index: {1}]  }
   0x1   :  { %3641 = sst [smem:[#allocation45_spill]] %s3604_s0 }
   0x2   :  { %3642 = sst [smem:[#allocation46_spill]] %s3605_s1 }
   0x3   :  { %3643 = sst [smem:[#allocation47_spill]] %s3606_s2 }
   0x4   :  { %3644 = sst [smem:[#allocation48_spill]] %s3607_s3 }
   0x5   :  { %3645 = sst [smem:[#allocation49_spill]] %s3608_s4 }
   0x6   :  { %3646 = sst [smem:[#allocation50_spill]] %s3609_s5 }
   0x7   :  { %3647 = sst [smem:[#allocation51_spill]] %s3610_s6 }
   0x8   :  { %28 = vsyncpa [#allocation5], 0  ;;  %s49_s29 = sshll.u32 %s3612_s8, 4  ;;  %s2056_s30 = smov [#allocation4]   ;;  %s50_s29 = int_to_ptr.hbm [resolvable:$true] %s49_s29 }
   0x9   :  { %s51_s4 = sshll.u32 %s2056_s30, 4  ;;  %s2057_s0 = smov 512   ;;  %s52_s4 = int_to_ptr.vmem [resolvable:$true] %s51_s4 }
   0xa   :  { %s2058_s23 = smov 32  }
   0xb   :  { %57 = dma.hbm_to_vmem [thread:$0]  %s50_s29, 8192, %s52_s4, [#allocation5], %s2057_s0, %s2057_s0, %s2058_s23  }
   0xc   :  { %2022 = dma.done.wait [#allocation5], 8192  }
   0xd   :  { %2023 = vsyncadd [#allocation5], 4294959104  ;;  %s3648_s24 = sld [smem:[#allocation50_spill]]  ;;  %vm128_vm0 = vcmask 261120  }
   0xe   :  { %s3682_s29 = sld [smem:[#allocation49_spill]] }
   0xf   :  { %s3683_s8 = sld [smem:[#allocation45_spill]] }
  0x13   :  { %v2184_v0 = vld [vmem:[%s3648_s24] sm:$0xff]  ;;  %v2189_v1 = vld [vmem:[%s3648_s24 + $0x8] sm:$0xff]  ;;  %v2194_v2 = vld [vmem:[%s3648_s24 + $0x10] sm:$0xff] }
  0x14   :  { %3649 = vst [vmem:[#allocation7_spill] sm:$0xff] %v2184_v0  ;;  %v2199_v3 = vld [vmem:[%s3648_s24 + $0x18] sm:$0xff]  ;;  %v2204_v4 = vld [vmem:[%s3648_s24 + $0x20] sm:$0xff]  ;;  %v2209_v5 = vld [vmem:[%s3648_s24 + $0x28] sm:$0xff] }
  0x15   :  { %3650 = vst [vmem:[#allocation8_spill] sm:$0xff] %v2189_v1  ;;  %v2214_v6 = vld [vmem:[%s3648_s24 + $0x30] sm:$0xff]  ;;  %v2219_v7 = vld [vmem:[%s3648_s24 + $0x38] sm:$0xff]  ;;  %v2224_v8 = vld [vmem:[%s3648_s24 + $0x40] sm:$0xff] }
  0x16   :  { %3651 = vst [vmem:[#allocation9_spill] sm:$0xff] %v2194_v2  ;;  %v2229_v9 = vld [vmem:[%s3648_s24 + $0x48] sm:$0xff]  ;;  %v2234_v10 = vld [vmem:[%s3648_s24 + $0x50] sm:$0xff]  ;;  %v2239_v11 = vld [vmem:[%s3648_s24 + $0x58] sm:$0xff] }
  0x17   :  { %3652 = vst [vmem:[#allocation10_spill] sm:$0xff] %v2199_v3  ;;  %v2244_v12 = vld [vmem:[%s3648_s24 + $0x60] sm:$0xff]  ;;  %v2249_v13 = vld [vmem:[%s3648_s24 + $0x68] sm:$0xff]  ;;  %v2254_v14 = vld [vmem:[%s3648_s24 + $0x70] sm:$0xff] }
  0x18   :  { %3653 = vst [vmem:[#allocation11_spill] sm:$0xff] %v2204_v4  ;;  %v2259_v15 = vld [vmem:[%s3648_s24 + $0x78] sm:$0xff]  ;;  %v2264_v16 = vld [vmem:[%s3648_s24 + $0x80] sm:$0xff]  ;;  %v2269_v17 = vld [vmem:[%s3648_s24 + $0x88] sm:$0xff] }
  0x19   :  { %3654 = vst [vmem:[#allocation12_spill] sm:$0xff] %v2209_v5  ;;  %v2274_v18 = vld [vmem:[%s3648_s24 + $0x90] sm:$0xff]  ;;  %v2279_v19 = vld [vmem:[%s3648_s24 + $0x98] sm:$0xff]  ;;  %v2284_v20 = vld [vmem:[%s3648_s24 + $0xa0] sm:$0xff] }
  0x1a   :  { %3655 = vst [vmem:[#allocation13_spill] sm:$0xff] %v2214_v6  ;;  %v2289_v21 = vld [vmem:[%s3648_s24 + $0xa8] sm:$0xff]  ;;  %v2294_v22 = vld [vmem:[%s3648_s24 + $0xb0] sm:$0xff]  ;;  %v2299_v23 = vld [vmem:[%s3648_s24 + $0xb8] sm:$0xff] }
  0x1b   :  { %3656 = vst [vmem:[#allocation14_spill] sm:$0xff] %v2219_v7  ;;  %v2304_v24 = vld [vmem:[%s3648_s24 + $0xc0] sm:$0xff]  ;;  %v2309_v25 = vld [vmem:[%s3648_s24 + $0xc8] sm:$0xff]  ;;  %v2314_v26 = vld [vmem:[%s3648_s24 + $0xd0] sm:$0xff] }
  0x1c   :  { %3657 = vst [vmem:[#allocation15_spill] sm:$0xff] %v2224_v8  ;;  %v2319_v27 = vld [vmem:[%s3648_s24 + $0xd8] sm:$0xff]  ;;  %v2324_v28 = vld [vmem:[%s3648_s24 + $0xe0] sm:$0xff]  ;;  %v2329_v29 = vld [vmem:[%s3648_s24 + $0xe8] sm:$0xff] }
  0x1d   :  { %3658 = vst [vmem:[#allocation16_spill] sm:$0xff] %v2229_v9  ;;  %v2334_v30 = vld [vmem:[%s3648_s24 + $0xf0] sm:$0xff]  ;;  %v2339_v31 = vld [vmem:[%s3648_s24 + $0xf8] sm:$0xff]  ;;  %v2344_v32 = vld [vmem:[%s3648_s24 + $0x100] sm:$0xff] }
  0x1e   :  { %3659 = vst [vmem:[#allocation17_spill] sm:$0xff] %v2234_v10  ;;  %v2349_v33 = vld [vmem:[%s3648_s24 + $0x108] sm:$0xff]  ;;  %v2354_v34 = vld [vmem:[%s3648_s24 + $0x110] sm:$0xff]  ;;  %v2359_v35 = vld [vmem:[%s3648_s24 + $0x118] sm:$0xff] }
  0x1f   :  { %3660 = vst [vmem:[#allocation18_spill] sm:$0xff] %v2239_v11  ;;  %v2364_v36 = vld [vmem:[%s3648_s24 + $0x120] sm:$0xff]  ;;  %v2369_v37 = vld [vmem:[%s3648_s24 + $0x128] sm:$0xff]  ;;  %v2374_v38 = vld [vmem:[%s3648_s24 + $0x130] sm:$0xff] }
  0x20   :  { %3661 = vst [vmem:[#allocation19_spill] sm:$0xff] %v2244_v12  ;;  %v2379_v39 = vld [vmem:[%s3648_s24 + $0x138] sm:$0xff]  ;;  %v2384_v40 = vld [vmem:[%s3648_s24 + $0x140] sm:$0xff]  ;;  %v2389_v41 = vld [vmem:[%s3648_s24 + $0x148] sm:$0xff] }
  0x21   :  { %3662 = vst [vmem:[#allocation20_spill] sm:$0xff] %v2249_v13  ;;  %v2394_v42 = vld [vmem:[%s3648_s24 + $0x150] sm:$0xff]  ;;  %v2399_v43 = vld [vmem:[%s3648_s24 + $0x158] sm:$0xff]  ;;  %v2404_v44 = vld [vmem:[%s3648_s24 + $0x160] sm:$0xff] }
  0x22   :  { %3663 = vst [vmem:[#allocation21_spill] sm:$0xff] %v2254_v14  ;;  %v2409_v45 = vld [vmem:[%s3648_s24 + $0x168] sm:$0xff]  ;;  %v2414_v46 = vld [vmem:[%s3648_s24 + $0x170] sm:$0xff]  ;;  %v2419_v47 = vld [vmem:[%s3648_s24 + $0x178] sm:$0xff] }
  0x23   :  { %3664 = vst [vmem:[#allocation22_spill] sm:$0xff] %v2259_v15  ;;  %v2424_v48 = vld [vmem:[%s3648_s24 + $0x180] sm:$0xff]  ;;  %v2429_v49 = vld [vmem:[%s3648_s24 + $0x188] sm:$0xff]  ;;  %v2434_v50 = vld [vmem:[%s3648_s24 + $0x190] sm:$0xff] }
  0x24   :  { %3665 = vst [vmem:[#allocation23_spill] sm:$0xff] %v2264_v16  ;;  %v2439_v51 = vld [vmem:[%s3648_s24 + $0x198] sm:$0xff]  ;;  %v2444_v52 = vld [vmem:[%s3648_s24 + $0x1a0] sm:$0xff]  ;;  %v2449_v53 = vld [vmem:[%s3648_s24 + $0x1a8] sm:$0xff] }
  0x25   :  { %3666 = vst [vmem:[#allocation24_spill] sm:$0xff] %v2269_v17  ;;  %v2454_v54 = vld [vmem:[%s3648_s24 + $0x1b0] sm:$0xff]  ;;  %v2459_v55 = vld [vmem:[%s3648_s24 + $0x1b8] sm:$0xff]  ;;  %v2464_v56 = vld [vmem:[%s3648_s24 + $0x1c0] sm:$0xff] }
  0x26   :  { %3667 = vst [vmem:[#allocation25_spill] sm:$0xff] %v2274_v18  ;;  %v2469_v57 = vld [vmem:[%s3648_s24 + $0x1c8] sm:$0xff]  ;;  %v2474_v58 = vld [vmem:[%s3648_s24 + $0x1d0] sm:$0xff]  ;;  %v2479_v59 = vld [vmem:[%s3648_s24 + $0x1d8] sm:$0xff] }
  0x27   :  { %3668 = vst [vmem:[#allocation26_spill] sm:$0xff] %v2279_v19  ;;  %v2484_v60 = vld [vmem:[%s3648_s24 + $0x1e0] sm:$0xff]  ;;  %v2489_v61 = vld [vmem:[%s3648_s24 + $0x1e8] sm:$0xff]  ;;  %v2494_v62 = vld [vmem:[%s3648_s24 + $0x1f0] sm:$0xff] }
  0x28   :  { %3669 = vst [vmem:[#allocation27_spill] sm:$0xff] %v2284_v20  ;;  %v2499_v63 = vld [vmem:[%s3648_s24 + $0x1f8] sm:$0xff]  ;;  %v116_v2 = vld [vmem:[%s3682_s29 + $0x70] sm:$0xff]  ;;  %v110_v10 = vld [vmem:[%s3682_s29 + $0x40] sm:$0xff] }
  0x29   :  { %3670 = vst [vmem:[#allocation28_spill] sm:$0xff] %v2289_v21  ;;  %v117_v3 = vld [vmem:[%s3682_s29 + $0x78] sm:$0xff]  ;;  %319 = vmatpush.msra.mxu2 %v116_v2  ;;  %v112_v1 = vld [vmem:[%s3682_s29 + $0x50] sm:$0xff]  ;;  %v114_v2 = vld [vmem:[%s3682_s29 + $0x60] sm:$0xff] }
  0x2a   :  { %3671 = vst [vmem:[#allocation29_spill] sm:$0xff] %v2294_v22  ;;  %384 = vmatpush.msra.mxu3 %v117_v3  ;;  %v113_v0 = vld [vmem:[%s3682_s29 + $0x58] sm:$0xff]  ;;  %v108_v6 = vld [vmem:[%s3682_s29 + $0x30] sm:$0xff]  ;;  %v115_v3 = vld [vmem:[%s3682_s29 + $0x68] sm:$0xff]  ;;  %189 = vmatpush.msra.mxu0 %v114_v2 }
  0x2b   :  { %3672 = vst [vmem:[#allocation30_spill] sm:$0xff] %v2299_v23  ;;  %v109_v7 = vld [vmem:[%s3682_s29 + $0x38] sm:$0xff]  ;;  %320 = vmatpush.msra.mxu2 %v112_v1  ;;  %v104_v5 = vld [vmem:[%s3682_s29 + $0x10] sm:$0xff]  ;;  %254 = vmatpush.msra.mxu1 %v115_v3  ;;  %v111_v11 = vld [vmem:[%s3682_s29 + $0x48] sm:$0xff] }
  0x2c   :  { %3673 = vst [vmem:[#allocation31_spill] sm:$0xff] %v2304_v24  ;;  %385 = vmatpush.msra.mxu3 %v113_v0  ;;  %v105_v4 = vld [vmem:[%s3682_s29 + $0x18] sm:$0xff]  ;;  %v86_v0 = vld [vmem:[%s3683_s8] sm:$0xff]  ;;  %190 = vmatpush.msra.mxu0 %v110_v10  ;;  %v107_v2 = vld [vmem:[%s3682_s29 + $0x28] sm:$0xff] }
  0x2d   :  { %3674 = vst [vmem:[#allocation32_spill] sm:$0xff] %v2309_v25  ;;  %321 = vmatpush.msra.mxu2 %v108_v6  ;;  %255 = vmatpush.msra.mxu1 %v111_v11  ;;  %v106_v1 = vld [vmem:[%s3682_s29 + $0x20] sm:$0xff]  ;;  %v89_v10 = vld [vmem:[%s3683_s8 + $0x18] sm:$0xff]  ;;  %v91_v3 = vld [vmem:[%s3683_s8 + $0x28] sm:$0xff] }
  0x2e   :  { %3675 = vst [vmem:[#allocation33_spill] sm:$0xff] %v2314_v26  ;;  %386 = vmatpush.msra.mxu3 %v109_v7  ;;  %v102_v6 = vld [vmem:[%s3682_s29] sm:$0xff]  ;;  %v103_v7 = vld [vmem:[%s3682_s29 + $0x8] sm:$0xff]  ;;  %191 = vmatpush.msra.mxu0 %v106_v1  ;;  %v93_v1 = vld [vmem:[%s3683_s8 + $0x38] sm:$0xff]  ;;  %s3684_s29 = sld [smem:[#allocation51_spill]] }
  0x2f   :  { %3676 = vst [vmem:[#allocation34_spill] sm:$0xff] %v2319_v27  ;;  %322 = vmatpush.msra.mxu2 %v104_v5  ;;  %256 = vmatpush.msra.mxu1 %v107_v2  ;;  %v88_v5 = vld [vmem:[%s3683_s8 + $0x10] sm:$0xff]  ;;  %v90_v11 = vld [vmem:[%s3683_s8 + $0x20] sm:$0xff] }
  0x30   :  { %3677 = vst [vmem:[#allocation35_spill] sm:$0xff] %v2324_v28  ;;  %387 = vmatpush.msra.mxu3 %v105_v4  ;;  %1759 = vmatmul.msk.f32.vlgmr.msra.gmra.mxu2 %vm128_vm0, %v86_v0  ;;  %v87_v4 = vld [vmem:[%s3683_s8 + $0x8] sm:$0xff]  ;;  %v94_v2 = vld [vmem:[%s3683_s8 + $0x40] sm:$0xff] }
  0x31   :  { %3678 = vst [vmem:[#allocation36_spill] sm:$0xff] %v2329_v29  ;;  %1775 = vmatmul.msk.f32.vlgmr.msra.gmra.mxu3 %vm128_vm0, %v86_v0  ;;  %192 = vmatpush.msra.mxu0 %v102_v6  ;;  %v95_v6 = vld [vmem:[%s3683_s8 + $0x48] sm:$0xff] }
  0x32   :  { %3679 = vst [vmem:[#allocation37_spill] sm:$0xff] %v2334_v30  ;;  %257 = vmatpush.msra.mxu1 %v103_v7  ;;  %1727 = vmatmul.msk.f32.vlgmr.msra.gmra.mxu0 %vm128_vm0, %v86_v0  ;;  %v96_v7 = vld [vmem:[%s3683_s8 + $0x50] sm:$0xff] }
  0x33   :  { %3680 = vst [vmem:[#allocation38_spill] sm:$0xff] %v2339_v31  ;;  %1743 = vmatmul.msk.f32.vlgmr.msra.gmra.mxu1 %vm128_vm0, %v86_v0  ;;  %v92_v0 = vld [vmem:[%s3683_s8 + $0x30] sm:$0xff] }
  0x34   :  { %3681 = vst [vmem:[#allocation39_spill] sm:$0xff] %v2344_v32 }
  0x38   :  { %1760 = vmatmul.msk.f32.gmra.mxu2 %vm128_vm0, %v87_v4 }
  0x39   :  { %1776 = vmatmul.msk.f32.gmra.mxu3 %vm128_vm0, %v87_v4 }
  0x3a   :  { %1728 = vmatmul.msk.f32.gmra.mxu0 %vm128_vm0, %v87_v4 }
  0x3b   :  { %1744 = vmatmul.msk.f32.gmra.mxu1 %vm128_vm0, %v87_v4  ;;  %v97_v4 = vld [vmem:[%s3683_s8 + $0x58] sm:$0xff] }
  0x40   :  { %1761 = vmatmul.msk.f32.gmra.mxu2 %vm128_vm0, %v88_v5 }
  0x41   :  { %1777 = vmatmul.msk.f32.gmra.mxu3 %vm128_vm0, %v88_v5 }
  0x42   :  { %1729 = vmatmul.msk.f32.gmra.mxu0 %vm128_vm0, %v88_v5 }
  0x43   :  { %1745 = vmatmul.msk.f32.gmra.mxu1 %vm128_vm0, %v88_v5  ;;  %v98_v5 = vld [vmem:[%s3683_s8 + $0x60] sm:$0xff] }
  0x48   :  { %1762 = vmatmul.msk.f32.gmra.mxu2 %vm128_vm0, %v89_v10 }
  0x49   :  { %1778 = vmatmul.msk.f32.gmra.mxu3 %vm128_vm0, %v89_v10 }
  0x4a   :  { %1730 = vmatmul.msk.f32.gmra.mxu0 %vm128_vm0, %v89_v10 }
  0x4b   :  { %1746 = vmatmul.msk.f32.gmra.mxu1 %vm128_vm0, %v89_v10  ;;  %v99_v10 = vld [vmem:[%s3683_s8 + $0x68] sm:$0xff] }
  0x50   :  { %1763 = vmatmul.msk.f32.gmra.mxu2 %vm128_vm0, %v90_v11 }
  0x51   :  { %1779 = vmatmul.msk.f32.gmra.mxu3 %vm128_vm0, %v90_v11 }
  0x52   :  { %1731 = vmatmul.msk.f32.gmra.mxu0 %vm128_vm0, %v90_v11 }
  0x53   :  { %1747 = vmatmul.msk.f32.gmra.mxu1 %vm128_vm0, %v90_v11  ;;  %v100_v11 = vld [vmem:[%s3683_s8 + $0x70] sm:$0xff] }
  0x58   :  { %1764 = vmatmul.msk.f32.gmra.mxu2 %vm128_vm0, %v91_v3 }
  0x59   :  { %1780 = vmatmul.msk.f32.gmra.mxu3 %vm128_vm0, %v91_v3 }
  0x5a   :  { %1732 = vmatmul.msk.f32.gmra.mxu0 %vm128_vm0, %v91_v3 }
  0x5b   :  { %1748 = vmatmul.msk.f32.gmra.mxu1 %vm128_vm0, %v91_v3  ;;  %v101_v3 = vld [vmem:[%s3683_s8 + $0x78] sm:$0xff]  ;;  %s2760_s8 = smov 0  }
  0x60   :  { %1765 = vmatmul.msk.f32.gmra.mxu2 %vm128_vm0, %v92_v0 }
  0x61   :  { %1781 = vmatmul.msk.f32.gmra.mxu3 %vm128_vm0, %v92_v0 }
  0x62   :  { %1733 = vmatmul.msk.f32.gmra.mxu0 %vm128_vm0, %v92_v0 }
  0x63   :  { %1749 = vmatmul.msk.f32.gmra.mxu1 %vm128_vm0, %v92_v0  ;;  %v118_v0 = vld [vmem:[%s3684_s29] sm:$0xf] }
  0x68   :  { %1766 = vmatmul.msk.f32.gmra.mxu2 %vm128_vm0, %v93_v1 }
  0x69   :  { %1782 = vmatmul.msk.f32.gmra.mxu3 %vm128_vm0, %v93_v1 }
  0x6a   :  { %1734 = vmatmul.msk.f32.gmra.mxu0 %vm128_vm0, %v93_v1 }
  0x6b   :  { %1750 = vmatmul.msk.f32.gmra.mxu1 %vm128_vm0, %v93_v1  ;;  %v2664_v1 = vperm.slane %v118_v0, 0 }
  0x70   :  { %1767 = vmatmul.msk.f32.gmra.mxu2 %vm128_vm0, %v94_v2 }
  0x71   :  { %1783 = vmatmul.msk.f32.gmra.mxu3 %vm128_vm0, %v94_v2 }
  0x72   :  { %1735 = vmatmul.msk.f32.gmra.mxu0 %vm128_vm0, %v94_v2 }
  0x73   :  { %1751 = vmatmul.msk.f32.gmra.mxu1 %vm128_vm0, %v94_v2  ;;  %v2666_v2 = vperm.slane %v118_v0, 1 }
  0x78   :  { %1768 = vmatmul.msk.f32.gmra.mxu2 %vm128_vm0, %v95_v6 }
  0x79   :  { %1784 = vmatmul.msk.f32.gmra.mxu3 %vm128_vm0, %v95_v6 }
  0x7a   :  { %1736 = vmatmul.msk.f32.gmra.mxu0 %vm128_vm0, %v95_v6 }
  0x7b   :  { %1752 = vmatmul.msk.f32.gmra.mxu1 %vm128_vm0, %v95_v6  ;;  %v2668_v6 = vperm.slane %v118_v0, 2 }
  0x80   :  { %1769 = vmatmul.msk.f32.gmra.mxu2 %vm128_vm0, %v96_v7 }
  0x81   :  { %1785 = vmatmul.msk.f32.gmra.mxu3 %vm128_vm0, %v96_v7 }
  0x82   :  { %1737 = vmatmul.msk.f32.gmra.mxu0 %vm128_vm0, %v96_v7 }
  0x83   :  { %1753 = vmatmul.msk.f32.gmra.mxu1 %vm128_vm0, %v96_v7  ;;  %v2670_v7 = vperm.slane %v118_v0, 3 }
  0x88   :  { %1770 = vmatmul.msk.f32.gmra.mxu2 %vm128_vm0, %v97_v4 }
  0x89   :  { %1786 = vmatmul.msk.f32.gmra.mxu3 %vm128_vm0, %v97_v4 }
  0x8a   :  { %1738 = vmatmul.msk.f32.gmra.mxu0 %vm128_vm0, %v97_v4 }
  0x8b   :  { %1754 = vmatmul.msk.f32.gmra.mxu1 %vm128_vm0, %v97_v4 }
  0x90   :  { %1771 = vmatmul.msk.f32.gmra.mxu2 %vm128_vm0, %v98_v5 }
  0x91   :  { %1787 = vmatmul.msk.f32.gmra.mxu3 %vm128_vm0, %v98_v5 }
  0x92   :  { %1739 = vmatmul.msk.f32.gmra.mxu0 %vm128_vm0, %v98_v5 }
  0x93   :  { %1755 = vmatmul.msk.f32.gmra.mxu1 %vm128_vm0, %v98_v5 }
  0x98   :  { %1772 = vmatmul.msk.f32.gmra.mxu2 %vm128_vm0, %v99_v10 }
  0x99   :  { %1788 = vmatmul.msk.f32.gmra.mxu3 %vm128_vm0, %v99_v10 }
  0x9a   :  { %1740 = vmatmul.msk.f32.gmra.mxu0 %vm128_vm0, %v99_v10 }
  0x9b   :  { %1756 = vmatmul.msk.f32.gmra.mxu1 %vm128_vm0, %v99_v10 }
  0xa0   :  { %1773 = vmatmul.msk.f32.gmra.mxu2 %vm128_vm0, %v100_v11 }
  0xa1   :  { %1789 = vmatmul.msk.f32.gmra.mxu3 %vm128_vm0, %v100_v11 }
  0xa2   :  { %1741 = vmatmul.msk.f32.gmra.mxu0 %vm128_vm0, %v100_v11 }
  0xa3   :  { %1757 = vmatmul.msk.f32.gmra.mxu1 %vm128_vm0, %v100_v11 }
  0xa8   :  { %1774 = vmatmul.msk.f32.gmra.mxu2 %vm128_vm0, %v101_v3 }
  0xa9   :  { %1790 = vmatmul.msk.f32.gmra.mxu3 %vm128_vm0, %v101_v3 }
  0xaa   :  { %1742 = vmatmul.msk.f32.gmra.mxu0 %vm128_vm0, %v101_v3 }
  0xab   :  { %1758 = vmatmul.msk.f32.gmra.mxu1 %vm128_vm0, %v101_v3 }
  0xaf   :  { %v194_v4 = vpop.f32.mrf.mxu0 }
  0xb0   :  { %v259_v5 = vpop.f32.mrf.mxu1  ;;  %v195_v10 = vadd.f32 %v194_v4, %v2664_v1 }
  0xb1   :  { %v260_v11 = vadd.f32 %v259_v5, %v2666_v2 }
  0xb2   :  { %437 = vst [vmem:[#allocation2] sm:$0xff] %v195_v10 }
  0xb3   :  { %v324_v9 = vpop.f32.mrf.mxu2  ;;  %438 = vst [vmem:[#allocation2 + $0x8] sm:$0xff] %v260_v11 }
  0xb4   :  { %v389_v8 = vpop.f32.mrf.mxu3  ;;  %v325_v14 = vadd.f32 %v324_v9, %v2668_v6 }
  0xb5   :  { %v390_v3 = vadd.f32 %v389_v8, %v2670_v7 }
  0xb6   :  { %439 = vst [vmem:[#allocation2 + $0x10] sm:$0xff] %v325_v14 }
  0xb7   :  { %440 = vst [vmem:[#allocation2 + $0x18] sm:$0xff] %v390_v3  ;;  %v197_v15 = vpop.f32.mrf.mxu0 }
  0xb8   :  { %v262_v13 = vpop.f32.mrf.mxu1  ;;  %v198_v0 = vadd.f32 %v197_v15, %v2664_v1 }
  0xb9   :  { %v263_v12 = vadd.f32 %v262_v13, %v2666_v2 }
  0xba   :  { %441 = vst [vmem:[#allocation2 + $0x20] sm:$0xff] %v198_v0 }
  0xbb   :  { %v327_v18 = vpop.f32.mrf.mxu2  ;;  %442 = vst [vmem:[#allocation2 + $0x28] sm:$0xff] %v263_v12 }
  0xbc   :  { %v392_v4 = vpop.f32.mrf.mxu3  ;;  %v328_v5 = vadd.f32 %v327_v18, %v2668_v6 }
  0xbd   :  { %v393_v10 = vadd.f32 %v392_v4, %v2670_v7 }
  0xbe   :  { %443 = vst [vmem:[#allocation2 + $0x30] sm:$0xff] %v328_v5 }
  0xbf   :  { %444 = vst [vmem:[#allocation2 + $0x38] sm:$0xff] %v393_v10  ;;  %v200_v8 = vpop.f32.mrf.mxu0 }
  0xc0   :  { %v265_v9 = vpop.f32.mrf.mxu1  ;;  %v201_v14 = vadd.f32 %v200_v8, %v2664_v1 }
  0xc1   :  { %v266_v11 = vadd.f32 %v265_v9, %v2666_v2 }
  0xc2   :  { %445 = vst [vmem:[#allocation2 + $0x40] sm:$0xff] %v201_v14 }
  0xc3   :  { %v330_v3 = vpop.f32.mrf.mxu2  ;;  %446 = vst [vmem:[#allocation2 + $0x48] sm:$0xff] %v266_v11 }
  0xc4   :  { %v395_v15 = vpop.f32.mrf.mxu3  ;;  %v331_v13 = vadd.f32 %v330_v3, %v2668_v6 }
  0xc5   :  { %v396_v0 = vadd.f32 %v395_v15, %v2670_v7 }
  0xc6   :  { %447 = vst [vmem:[#allocation2 + $0x50] sm:$0xff] %v331_v13 }
  0xc7   :  { %448 = vst [vmem:[#allocation2 + $0x58] sm:$0xff] %v396_v0  ;;  %v203_v18 = vpop.f32.mrf.mxu0 }
  0xc8   :  { %v268_v12 = vpop.f32.mrf.mxu1  ;;  %v204_v4 = vadd.f32 %v203_v18, %v2664_v1 }
  0xc9   :  { %v269_v5 = vadd.f32 %v268_v12, %v2666_v2 }
  0xca   :  { %449 = vst [vmem:[#allocation2 + $0x60] sm:$0xff] %v204_v4 }
  0xcb   :  { %v333_v10 = vpop.f32.mrf.mxu2  ;;  %450 = vst [vmem:[#allocation2 + $0x68] sm:$0xff] %v269_v5 }
  0xcc   :  { %v398_v8 = vpop.f32.mrf.mxu3  ;;  %v334_v9 = vadd.f32 %v333_v10, %v2668_v6 }
  0xcd   :  { %v399_v14 = vadd.f32 %v398_v8, %v2670_v7 }
  0xce   :  { %451 = vst [vmem:[#allocation2 + $0x70] sm:$0xff] %v334_v9 }
  0xcf   :  { %452 = vst [vmem:[#allocation2 + $0x78] sm:$0xff] %v399_v14  ;;  %v206_v3 = vpop.f32.mrf.mxu0 }
  0xd0   :  { %v271_v11 = vpop.f32.mrf.mxu1  ;;  %v207_v15 = vadd.f32 %v206_v3, %v2664_v1 }
  0xd1   :  { %v272_v13 = vadd.f32 %v271_v11, %v2666_v2 }
  0xd2   :  { %453 = vst [vmem:[#allocation2 + $0x80] sm:$0xff] %v207_v15 }
  0xd3   :  { %v336_v0 = vpop.f32.mrf.mxu2  ;;  %454 = vst [vmem:[#allocation2 + $0x88] sm:$0xff] %v272_v13 }
  0xd4   :  { %v401_v18 = vpop.f32.mrf.mxu3  ;;  %v337_v12 = vadd.f32 %v336_v0, %v2668_v6 }
  0xd5   :  { %v402_v4 = vadd.f32 %v401_v18, %v2670_v7 }
  0xd6   :  { %455 = vst [vmem:[#allocation2 + $0x90] sm:$0xff] %v337_v12 }
  0xd7   :  { %456 = vst [vmem:[#allocation2 + $0x98] sm:$0xff] %v402_v4  ;;  %v209_v10 = vpop.f32.mrf.mxu0 }
  0xd8   :  { %v274_v5 = vpop.f32.mrf.mxu1  ;;  %v210_v8 = vadd.f32 %v209_v10, %v2664_v1 }
  0xd9   :  { %v275_v9 = vadd.f32 %v274_v5, %v2666_v2 }
  0xda   :  { %457 = vst [vmem:[#allocation2 + $0xa0] sm:$0xff] %v210_v8 }
  0xdb   :  { %v339_v14 = vpop.f32.mrf.mxu2  ;;  %458 = vst [vmem:[#allocation2 + $0xa8] sm:$0xff] %v275_v9 }
  0xdc   :  { %v404_v3 = vpop.f32.mrf.mxu3  ;;  %v340_v11 = vadd.f32 %v339_v14, %v2668_v6 }
  0xdd   :  { %v405_v15 = vadd.f32 %v404_v3, %v2670_v7 }
  0xde   :  { %459 = vst [vmem:[#allocation2 + $0xb0] sm:$0xff] %v340_v11 }
  0xdf   :  { %460 = vst [vmem:[#allocation2 + $0xb8] sm:$0xff] %v405_v15  ;;  %v212_v0 = vpop.f32.mrf.mxu0 }
  0xe0   :  { %v277_v13 = vpop.f32.mrf.mxu1  ;;  %v213_v18 = vadd.f32 %v212_v0, %v2664_v1 }
  0xe1   :  { %v278_v12 = vadd.f32 %v277_v13, %v2666_v2 }
  0xe2   :  { %461 = vst [vmem:[#allocation2 + $0xc0] sm:$0xff] %v213_v18 }
  0xe3   :  { %v342_v4 = vpop.f32.mrf.mxu2  ;;  %462 = vst [vmem:[#allocation2 + $0xc8] sm:$0xff] %v278_v12 }
  0xe4   :  { %v407_v10 = vpop.f32.mrf.mxu3  ;;  %v343_v5 = vadd.f32 %v342_v4, %v2668_v6 }
  0xe5   :  { %v408_v8 = vadd.f32 %v407_v10, %v2670_v7 }
  0xe6   :  { %463 = vst [vmem:[#allocation2 + $0xd0] sm:$0xff] %v343_v5 }
  0xe7   :  { %464 = vst [vmem:[#allocation2 + $0xd8] sm:$0xff] %v408_v8  ;;  %v215_v14 = vpop.f32.mrf.mxu0 }
  0xe8   :  { %v280_v9 = vpop.f32.mrf.mxu1  ;;  %v216_v3 = vadd.f32 %v215_v14, %v2664_v1 }
  0xe9   :  { %v281_v11 = vadd.f32 %v280_v9, %v2666_v2 }
  0xea   :  { %465 = vst [vmem:[#allocation2 + $0xe0] sm:$0xff] %v216_v3 }
  0xeb   :  { %v345_v15 = vpop.f32.mrf.mxu2  ;;  %466 = vst [vmem:[#allocation2 + $0xe8] sm:$0xff] %v281_v11 }
  0xec   :  { %v410_v0 = vpop.f32.mrf.mxu3  ;;  %v346_v13 = vadd.f32 %v345_v15, %v2668_v6 }
  0xed   :  { %v411_v18 = vadd.f32 %v410_v0, %v2670_v7 }
  0xee   :  { %467 = vst [vmem:[#allocation2 + $0xf0] sm:$0xff] %v346_v13 }
  0xef   :  { %468 = vst [vmem:[#allocation2 + $0xf8] sm:$0xff] %v411_v18  ;;  %v218_v4 = vpop.f32.mrf.mxu0 }
  0xf0   :  { %v283_v12 = vpop.f32.mrf.mxu1  ;;  %v219_v10 = vadd.f32 %v218_v4, %v2664_v1 }
  0xf1   :  { %v284_v5 = vadd.f32 %v283_v12, %v2666_v2 }
  0xf2   :  { %469 = vst [vmem:[#allocation2 + $0x100] sm:$0xff] %v219_v10 }
  0xf3   :  { %v348_v8 = vpop.f32.mrf.mxu2  ;;  %470 = vst [vmem:[#allocation2 + $0x108] sm:$0xff] %v284_v5 }
  0xf4   :  { %v413_v14 = vpop.f32.mrf.mxu3  ;;  %v349_v9 = vadd.f32 %v348_v8, %v2668_v6 }
  0xf5   :  { %v414_v3 = vadd.f32 %v413_v14, %v2670_v7 }
  0xf6   :  { %471 = vst [vmem:[#allocation2 + $0x110] sm:$0xff] %v349_v9 }
  0xf7   :  { %472 = vst [vmem:[#allocation2 + $0x118] sm:$0xff] %v414_v3  ;;  %v221_v15 = vpop.f32.mrf.mxu0 }
  0xf8   :  { %v286_v11 = vpop.f32.mrf.mxu1  ;;  %v222_v0 = vadd.f32 %v221_v15, %v2664_v1 }
  0xf9   :  { %v287_v13 = vadd.f32 %v286_v11, %v2666_v2 }
  0xfa   :  { %473 = vst [vmem:[#allocation2 + $0x120] sm:$0xff] %v222_v0 }
  0xfb   :  { %v351_v18 = vpop.f32.mrf.mxu2  ;;  %474 = vst [vmem:[#allocation2 + $0x128] sm:$0xff] %v287_v13 }
  0xfc   :  { %v416_v4 = vpop.f32.mrf.mxu3  ;;  %v352_v12 = vadd.f32 %v351_v18, %v2668_v6  ;;  %v565_v18 = vlaneseq }
  0xfd   :  { %v417_v10 = vadd.f32 %v416_v4, %v2670_v7 }
  0xfe   :  { %475 = vst [vmem:[#allocation2 + $0x130] sm:$0xff] %v352_v12  ;;  %v2716_v12 = vand.u32 127, %v565_v18 }
  0xff   :  { %476 = vst [vmem:[#allocation2 + $0x138] sm:$0xff] %v417_v10  ;;  %v224_v8 = vpop.f32.mrf.mxu0 }
 0x100   :  { %v289_v5 = vpop.f32.mrf.mxu1  ;;  %v225_v14 = vadd.f32 %v224_v8, %v2664_v1  ;;  %3685 = vst [vmem:[#allocation40_spill] sm:$0xff] %v2716_v12  ;;  %vm618_vm1 = vcmp.lt.s32.totalorder %v2716_v12, 32 }
 0x101   :  { %v290_v9 = vadd.f32 %v289_v5, %v2666_v2 }
 0x102   :  { %477 = vst [vmem:[#allocation2 + $0x140] sm:$0xff] %v225_v14  ;;  %v567_v14 = vadd.s32 128, %v2716_v12 }
 0x103   :  { %v354_v3 = vpop.f32.mrf.mxu2  ;;  %478 = vst [vmem:[#allocation2 + $0x148] sm:$0xff] %v290_v9 }
 0x104   :  { %v419_v15 = vpop.f32.mrf.mxu3  ;;  %v355_v11 = vadd.f32 %v354_v3, %v2668_v6  ;;  %v568_v3 = vadd.s32 256, %v2716_v12 }
 0x105   :  { %v420_v0 = vadd.f32 %v419_v15, %v2670_v7  ;;  %v569_v15 = vadd.s32 384, %v2716_v12 }
 0x106   :  { %479 = vst [vmem:[#allocation2 + $0x150] sm:$0xff] %v355_v11  ;;  %v588_v18 = vand.u32 127, %v568_v3 }
 0x107   :  { %480 = vst [vmem:[#allocation2 + $0x158] sm:$0xff] %v420_v0  ;;  %v227_v13 = vpop.f32.mrf.mxu0  ;;  %v581_v0 = vand.u32 127, %v567_v14  ;;  %v595_v17 = vand.u32 127, %v569_v15 }
 0x108   :  { %v292_v4 = vpop.f32.mrf.mxu1  ;;  %v228_v10 = vadd.f32 %v227_v13, %v2664_v1  ;;  %v3686_v13 = vmov 0  ;;  %vm2730_vm3 = vcmp.lt.s32.totalorder %v588_v18, 32 }
 0x109   :  { %v293_v8 = vadd.f32 %v292_v4, %v2666_v2  ;;  %vm2726_vm2 = vcmp.lt.s32.totalorder %v581_v0, 32  ;;  %v3689_v4 = vmov 0  ;;  %vm2734_vm4 = vcmp.lt.s32.totalorder %v595_v17, 32 }
 0x10a   :  { %481 = vst [vmem:[#allocation2 + $0x160] sm:$0xff] %v228_v10  ;;  %v3687_v13 = vsel %vm2726_vm2, 4294967295, %v3686_v13  ;;  %v3690_v4 = vsel %vm2730_vm3, 4294967295, %v3689_v4  ;;  %v3692_v10 = vmov 0 }
 0x10b   :  { %v357_v5 = vpop.f32.mrf.mxu2  ;;  %482 = vst [vmem:[#allocation2 + $0x168] sm:$0xff] %v293_v8  ;;  %v3693_v10 = vsel %vm2734_vm4, 4294967295, %v3692_v10 }
 0x10c   :  { %v422_v19 = vpop.f32.mrf.mxu3  ;;  %v358_v9 = vadd.f32 %v357_v5, %v2668_v6  ;;  %3688 = vst [vmem:[#allocation41_spill] sm:$0xff] %v3687_v13 }
 0x10d   :  { %v423_v11 = vadd.f32 %v422_v19, %v2670_v7  ;;  %3691 = vst [vmem:[#allocation42_spill] sm:$0xff] %v3690_v4 }
 0x10e   :  { %483 = vst [vmem:[#allocation2 + $0x170] sm:$0xff] %v358_v9 }
 0x10f   :  { %484 = vst [vmem:[#allocation2 + $0x178] sm:$0xff] %v423_v11  ;;  %v230_v19 = vpop.f32.mrf.mxu0 }
 0x110   :  { %3694 = vst [vmem:[#allocation43_spill] sm:$0xff] %v3693_v10  ;;  %v295_v8 = vpop.f32.mrf.mxu1  ;;  %v231_v5 = vadd.f32 %v230_v19, %v2664_v1 }
 0x111   :  { %v296_v14 = vadd.f32 %v295_v8, %v2666_v2 }
 0x112   :  { %485 = vst [vmem:[#allocation2 + $0x180] sm:$0xff] %v231_v5 }
 0x113   :  { %v360_v3 = vpop.f32.mrf.mxu2  ;;  %486 = vst [vmem:[#allocation2 + $0x188] sm:$0xff] %v296_v14 }
 0x114   :  { %v425_v15 = vpop.f32.mrf.mxu3  ;;  %v361_v9 = vadd.f32 %v360_v3, %v2668_v6 }
 0x115   :  { %v426_v11 = vadd.f32 %v425_v15, %v2670_v7 }
 0x116   :  { %487 = vst [vmem:[#allocation2 + $0x190] sm:$0xff] %v361_v9 }
 0x117   :  { %488 = vst [vmem:[#allocation2 + $0x198] sm:$0xff] %v426_v11  ;;  %v233_v17 = vpop.f32.mrf.mxu0 }
 0x118   :  { %v298_v0 = vpop.f32.mrf.mxu1  ;;  %v234_v18 = vadd.f32 %v233_v17, %v2664_v1 }
 0x119   :  { %v299_v4 = vadd.f32 %v298_v0, %v2666_v2 }
 0x11a   :  { %489 = vst [vmem:[#allocation2 + $0x1a0] sm:$0xff] %v234_v18 }
 0x11b   :  { %v363_v10 = vpop.f32.mrf.mxu2  ;;  %490 = vst [vmem:[#allocation2 + $0x1a8] sm:$0xff] %v299_v4 }
 0x11c   :  { %v428_v19 = vpop.f32.mrf.mxu3  ;;  %v364_v8 = vadd.f32 %v363_v10, %v2668_v6 }
 0x11d   :  { %v429_v5 = vadd.f32 %v428_v19, %v2670_v7 }
 0x11e   :  { %491 = vst [vmem:[#allocation2 + $0x1b0] sm:$0xff] %v364_v8 }
 0x11f   :  { %492 = vst [vmem:[#allocation2 + $0x1b8] sm:$0xff] %v429_v5  ;;  %v236_v3 = vpop.f32.mrf.mxu0 }
 0x120   :  { %v301_v14 = vpop.f32.mrf.mxu1  ;;  %v237_v15 = vadd.f32 %v236_v3, %v2664_v1 }
 0x121   :  { %v302_v9 = vadd.f32 %v301_v14, %v2666_v2 }
 0x122   :  { %493 = vst [vmem:[#allocation2 + $0x1c0] sm:$0xff] %v237_v15 }
 0x123   :  { %v366_v11 = vpop.f32.mrf.mxu2  ;;  %494 = vst [vmem:[#allocation2 + $0x1c8] sm:$0xff] %v302_v9  ;;  %v2756_v9 = vmov 0.0  }
 0x124   :  { %v431_v17 = vpop.f32.mrf.mxu3  ;;  %v367_v0 = vadd.f32 %v366_v11, %v2668_v6  ;;  %v2754_v11 = vmov -10000.0  }
 0x125   :  { %v432_v18 = vadd.f32 %v431_v17, %v2670_v7  ;;  %v2758_v17 = vmov 0.0  }
 0x126   :  { %495 = vst [vmem:[#allocation2 + $0x1d0] sm:$0xff] %v367_v0 }
 0x127   :  { %496 = vst [vmem:[#allocation2 + $0x1d8] sm:$0xff] %v432_v18  ;;  %v239_v10 = vpop.f32.mrf.mxu0 }
 0x128   :  { %v304_v4 = vpop.f32.mrf.mxu1  ;;  %v240_v19 = vadd.f32 %v239_v10, %v2664_v1 }
 0x129   :  { %v305_v8 = vadd.f32 %v304_v4, %v2666_v2 }
 0x12a   :  { %497 = vst [vmem:[#allocation2 + $0x1e0] sm:$0xff] %v240_v19 }
 0x12b   :  { %v369_v5 = vpop.f32.mrf.mxu2  ;;  %498 = vst [vmem:[#allocation2 + $0x1e8] sm:$0xff] %v305_v8 }
 0x12c   :  { %v434_v3 = vpop.f32.mrf.mxu3  ;;  %v370_v14 = vadd.f32 %v369_v5, %v2668_v6 }
 0x12d   :  { %v435_v15 = vadd.f32 %v434_v3, %v2670_v7 }
 0x12e   :  { %499 = vst [vmem:[#allocation2 + $0x1f0] sm:$0xff] %v370_v14 }
 0x12f   :  { %500 = vst [vmem:[#allocation2 + $0x1f8] sm:$0xff] %v435_v15 }
 0x130 LB: > { %659 = vmatpush.msra.mxu0 %v2484_v60  ;;  %679 = vmatpush.msra.mxu1 %v2489_v61  ;;  %s1845_s5 = sshll.u32 %s2038_s8, 5  ;;  %s632_s24 = ssub.s32 15, %s2038_s8  ;;  %v3695_v32 = vld [vmem:[#allocation39_spill] sm:$0xff]  ;;  %v3697_v29 = vld [vmem:[#allocation36_spill] sm:$0xff]  ;;  %v3698_v31 = vld [vmem:[#allocation38_spill] sm:$0xff]  ;;  %s2038_s8 = sphi %s2760_s8, %s628_s8   ;;  %v2034_v17 = vphi %v2758_v17, %v828_v17   ;;  %v2030_v9 = vphi %v2756_v9, %v831_v9   ;;  %v2026_v11 = vphi %v2754_v11, %v3733_v11  }
 0x131   : > { %719 = vmatpush.msra.mxu3 %v2499_v63  ;;  %699 = vmatpush.msra.mxu2 %v2494_v62  ;;  %s1846_s6 = sshll.u32 %s632_s24, 5  ;;  %s2800_s25 = scalar_lea.vmem [#allocation2], %s1845_s5  ;;  %v3696_v28 = vld [vmem:[#allocation35_spill] sm:$0xff]  ;;  %v3699_v30 = vld [vmem:[#allocation37_spill] sm:$0xff]  ;;  %v3701_v25 = vld [vmem:[#allocation32_spill] sm:$0xff] }
 0x132   : > { %660 = vmatpush.msra.mxu0 %v2464_v56  ;;  %680 = vmatpush.msra.mxu1 %v2469_v57  ;;  %s2803_s26 = scalar_lea.vmem [#allocation2], %s1846_s6  ;;  %v3700_v24 = vld [vmem:[#allocation31_spill] sm:$0xff]  ;;  %v3702_v27 = vld [vmem:[#allocation34_spill] sm:$0xff]  ;;  %v3703_v26 = vld [vmem:[#allocation33_spill] sm:$0xff]  ;;  %s1798_s2 = sshll.u32 %s2038_s8, 3 }
 0x133   : > { %720 = vmatpush.msra.mxu3 %v2479_v59  ;;  %700 = vmatpush.msra.mxu2 %v2474_v58  ;;  %v3704_v20 = vld [vmem:[#allocation27_spill] sm:$0xff]  ;;  %v3705_v21 = vld [vmem:[#allocation28_spill] sm:$0xff]  ;;  %v3706_v23 = vld [vmem:[#allocation30_spill] sm:$0xff]  ;;  %s3722_s28 = sld [smem:[#allocation46_spill]]  ;;  %s1799_s4 = sshll.u32 %s632_s24, 3 }
 0x134   : > { %661 = vmatpush.msra.mxu0 %v2444_v52  ;;  %681 = vmatpush.msra.mxu1 %v2449_v53  ;;  %v3707_v22 = vld [vmem:[#allocation29_spill] sm:$0xff]  ;;  %v3708_v16 = vld [vmem:[#allocation23_spill] sm:$0xff]  ;;  %v3709_v7 = vld [vmem:[#allocation24_spill] sm:$0xff]  ;;  %s628_s8 = sadd.s32 1, %s2038_s8  }
 0x135   : > { %721 = vmatpush.msra.mxu3 %v2459_v55  ;;  %701 = vmatpush.msra.mxu2 %v2454_v54  ;;  %v3710_v0 = vld [vmem:[#allocation26_spill] sm:$0xff]  ;;  %v3711_v18 = vld [vmem:[#allocation25_spill] sm:$0xff]  ;;  %v3712_v10 = vld [vmem:[#allocation19_spill] sm:$0xff]  ;;  %p625_p0 = scmp.ge.s32.totalorder %s628_s8, 16  }
 0x136   : > { %662 = vmatpush.msra.mxu0 %v2424_v48  ;;  %682 = vmatpush.msra.mxu1 %v2429_v49  ;;  %v636_v1 = vld [vmem:[%s2800_s25] sm:$0xff]  ;;  %v3713_v4 = vld [vmem:[#allocation20_spill] sm:$0xff]  ;;  %v3714_v19 = vld [vmem:[#allocation22_spill] sm:$0xff] }
 0x137   : > { %722 = vmatpush.msra.mxu3 %v2439_v51  ;;  %702 = vmatpush.msra.mxu2 %v2434_v50  ;;  %v643_v2 = vld [vmem:[%s2803_s26] sm:$0xff]  ;;  %v3715_v8 = vld [vmem:[#allocation21_spill] sm:$0xff]  ;;  %v3717_v3 = vld [vmem:[#allocation16_spill] sm:$0xff] }
 0x138   : > { %663 = vmatpush.msra.mxu0 %v2404_v44  ;;  %683 = vmatpush.msra.mxu1 %v2409_v45  ;;  %v2810_v6 = vsel %vm618_vm1, %v636_v1, %v643_v2  ;;  %v3716_v5 = vld [vmem:[#allocation15_spill] sm:$0xff]  ;;  %v3718_v14 = vld [vmem:[#allocation18_spill] sm:$0xff]  ;;  %v3719_v15 = vld [vmem:[#allocation17_spill] sm:$0xff] }
 0x139   : > { %723 = vmatpush.msra.mxu3 %v2419_v47  ;;  %703 = vmatpush.msra.mxu2 %v2414_v46  ;;  %v3720_v1 = vld [vmem:[#allocation11_spill] sm:$0xff]  ;;  %v3721_v2 = vld [vmem:[#allocation12_spill] sm:$0xff]  ;;  %s807_s30 = scalar_lea.vmem %s3722_s28, %s1798_s2  ;;  %s810_s1 = scalar_lea.vmem %s3722_s28, %s1799_s4  ;;  %v3145_v13 = vld [vmem:[#allocation4 + $0x1b8] sm:$0xff] (%p625_p0) }
 0x13a   : > { %664 = vmatpush.msra.mxu0 %v2384_v40  ;;  %684 = vmatpush.msra.mxu1 %v2389_v41  ;;  %v852_v40 = vld [vmem:[%s3611_s7 + $0x48] sm:$0xff] (%p625_p0)  ;;  %s3734_s28 = sld [smem:[#allocation47_spill]] (%p625_p0)  ;;  %v843_v44 = vld [vmem:[%s3611_s7] sm:$0xff] (%p625_p0)  ;;  %3763 = vst [vmem:[#allocation35_spill] sm:$0xff] (%p625_p0), %v3145_v13 }
 0x13b   : > { %724 = vmatpush.msra.mxu3 %v2399_v43  ;;  %704 = vmatpush.msra.mxu2 %v2394_v42  ;;  %v847_v42 = vld [vmem:[%s3611_s7 + $0x20] sm:$0xff] (%p625_p0)  ;;  %v848_v43 = vld [vmem:[%s3611_s7 + $0x28] sm:$0xff] (%p625_p0) }
 0x13c   : > { %665 = vmatpush.msra.mxu0 %v2364_v36  ;;  %685 = vmatpush.msra.mxu1 %v2369_v37  ;;  %v856_v36 = vld [vmem:[%s3611_s7 + $0x68] sm:$0xff] (%p625_p0)  ;;  %v851_v37 = vld [vmem:[%s3611_s7 + $0x40] sm:$0xff] (%p625_p0) }
 0x13d   : > { %725 = vmatpush.msra.mxu3 %v2379_v39  ;;  %705 = vmatpush.msra.mxu2 %v2374_v38  ;;  %v845_v38 = vld [vmem:[%s3611_s7 + $0x10] sm:$0xff] (%p625_p0)  ;;  %v846_v39 = vld [vmem:[%s3611_s7 + $0x18] sm:$0xff] (%p625_p0)  ;;  %v844_v45 = vld [vmem:[%s3611_s7 + $0x8] sm:$0xff] (%p625_p0) }
 0x13e   : > { %666 = vmatpush.msra.mxu0 %v3695_v32  ;;  %686 = vmatpush.msra.mxu1 %v2349_v33  ;;  %v849_v33 = vld [vmem:[%s3611_s7 + $0x30] sm:$0xff] (%p625_p0)  ;;  %v859_v53 = vld [vmem:[%s3613_s9] sm:$0xf] (%p625_p0)  ;;  %s3177_s9 = smov (%p625_p0), 0  }
 0x13f   : > { %726 = vmatpush.msra.mxu3 %v2359_v35  ;;  %706 = vmatpush.msra.mxu2 %v2354_v34  ;;  %v850_v34 = vld [vmem:[%s3611_s7 + $0x38] sm:$0xff] (%p625_p0)  ;;  %v855_v35 = vld [vmem:[%s3611_s7 + $0x60] sm:$0xff] (%p625_p0)  ;;  %v3003_v54 = vperm.slane (%p625_p0), %v859_v53, 0  ;;  %v3005_v55 = vperm.slane (%p625_p0), %v859_v53, 1  ;;  %v3007_v56 = vperm.slane (%p625_p0), %v859_v53, 2  ;;  %v3009_v57 = vperm.slane (%p625_p0), %v859_v53, 3 }
 0x140   : > { %667 = vmatpush.msra.mxu0 %v3696_v28  ;;  %687 = vmatpush.msra.mxu1 %v3697_v29  ;;  %v835_v41 = vld [vmem:[%s3734_s28] sm:$0xff] (%p625_p0)  ;;  %v836_v46 = vld [vmem:[%s3734_s28 + $0x8] sm:$0xff] (%p625_p0)  ;;  %v837_v47 = vld [vmem:[%s3734_s28 + $0x10] sm:$0xff] (%p625_p0) }
 0x141   : > { %727 = vmatpush.msra.mxu3 %v3698_v31  ;;  %707 = vmatpush.msra.mxu2 %v3699_v30  ;;  %v838_v48 = vld [vmem:[%s3734_s28 + $0x18] sm:$0xff] (%p625_p0)  ;;  %v839_v49 = vld [vmem:[%s3734_s28 + $0x20] sm:$0xff] (%p625_p0)  ;;  %v840_v50 = vld [vmem:[%s3734_s28 + $0x28] sm:$0xff] (%p625_p0) }
 0x142   : > { %668 = vmatpush.msra.mxu0 %v3700_v24  ;;  %688 = vmatpush.msra.mxu1 %v3701_v25  ;;  %v841_v51 = vld [vmem:[%s3734_s28 + $0x30] sm:$0xff] (%p625_p0)  ;;  %v842_v52 = vld [vmem:[%s3734_s28 + $0x38] sm:$0xff] (%p625_p0)  ;;  %v3063_v53 = vld [vmem:[#allocation4 + $0x80] sm:$0xff] (%p625_p0) }
 0x143   : > { %728 = vmatpush.msra.mxu3 %v3702_v27  ;;  %708 = vmatpush.msra.mxu2 %v3703_v26 }
 0x144   : > { %669 = vmatpush.msra.mxu0 %v3704_v20  ;;  %689 = vmatpush.msra.mxu1 %v3705_v21 }
 0x145   : > { %729 = vmatpush.msra.mxu3 %v3706_v23  ;;  %709 = vmatpush.msra.mxu2 %v3707_v22 }
 0x146   : > { %670 = vmatpush.msra.mxu0 %v3708_v16  ;;  %690 = vmatpush.msra.mxu1 %v3709_v7  ;;  %v3723_v7 = vld [vmem:[#allocation14_spill] sm:$0xff] }
 0x147   : > { %730 = vmatpush.msra.mxu3 %v3710_v0  ;;  %710 = vmatpush.msra.mxu2 %v3711_v18  ;;  %v3724_v0 = vld [vmem:[#allocation13_spill] sm:$0xff]  ;;  %v3725_v18 = vld [vmem:[#allocation7_spill] sm:$0xff] }
 0x148   : > { %671 = vmatpush.msra.mxu0 %v3712_v10  ;;  %691 = vmatpush.msra.mxu1 %v3713_v4  ;;  %v3726_v10 = vld [vmem:[#allocation8_spill] sm:$0xff]  ;;  %v3727_v4 = vld [vmem:[#allocation10_spill] sm:$0xff] }
 0x149   : > { %731 = vmatpush.msra.mxu3 %v3714_v19  ;;  %711 = vmatpush.msra.mxu2 %v3715_v8  ;;  %v808_v19 = vld [vmem:[%s807_s30] sm:$0xff]  ;;  %v3728_v8 = vld [vmem:[#allocation9_spill] sm:$0xff] }
 0x14a   : > { %672 = vmatpush.msra.mxu0 %v3716_v5  ;;  %692 = vmatpush.msra.mxu1 %v3717_v3  ;;  %v2059_v5 = vmov 0   ;;  %v811_v3 = vld [vmem:[%s810_s1] sm:$0xff] }
 0x14b   : > { %732 = vmatpush.msra.mxu3 %v3718_v14  ;;  %712 = vmatpush.msra.mxu2 %v3719_v15  ;;  %v637_v14 = vld [vmem:[%s2800_s25 + $0x8] sm:$0xff] }
 0x14c   : > { %673 = vmatpush.msra.mxu0 %v3720_v1  ;;  %693 = vmatpush.msra.mxu1 %v3721_v2  ;;  %v644_v15 = vld [vmem:[%s2803_s26 + $0x8] sm:$0xff]  ;;  %v639_v2 = vld [vmem:[%s2800_s25 + $0x18] sm:$0xff] }
 0x14d   : > { %733 = vmatpush.msra.mxu3 %v3723_v7  ;;  %713 = vmatpush.msra.mxu2 %v3724_v0  ;;  %v656_v1 = vsel %vm2726_vm2, %v637_v14, %v644_v15  ;;  %v646_v7 = vld [vmem:[%s2803_s26 + $0x18] sm:$0xff] }
 0x14e   : > { %674 = vmatpush.msra.mxu0 %v3725_v18  ;;  %694 = vmatpush.msra.mxu1 %v3726_v10  ;;  %v658_v18 = vsel %vm2734_vm4, %v639_v2, %v646_v7  ;;  %v638_v10 = vld [vmem:[%s2800_s25 + $0x10] sm:$0xff] }
 0x14f   : > { %734 = vmatpush.msra.mxu3 %v3727_v4  ;;  %675 = vmatmul.f32.vlgmr.msra.gmra.mxu0 %v2034_v17  ;;  %v645_v4 = vld [vmem:[%s2803_s26 + $0x10] sm:$0xff] }
 0x150   : > { %695 = vmatmul.f32.vlgmr.msra.gmra.mxu1 %v2034_v17  ;;  %735 = vmatmul.f32.vlgmr.msra.gmra.mxu3 %v2034_v17 }
 0x151   : > { %714 = vmatpush.msra.mxu2 %v3728_v8  ;;  %1920 = vset.pattern.permute.xlu0 %v2059_v5 }
 0x152   : > { %715 = vmatmul.f32.vlgmr.msra.gmra.mxu2 %v2034_v17  ;;  %816 = vperm.xlu0 %1920, %v808_v19   ;;  %v657_v19 = vsel %vm2730_vm3, %v638_v10, %v645_v4 }
 0x153   :  { %905 = vmatpush.msra.mxu0 (%p625_p0), %v855_v35  ;;  %946 = vmatpush.msra.mxu1 (%p625_p0), %v856_v36 }
 0x155   :  { %906 = vmatpush.msra.mxu0 (%p625_p0), %v851_v37  ;;  %947 = vmatpush.msra.mxu1 (%p625_p0), %v852_v40  ;;  %v3039_v37 = vld [vmem:[#allocation4 + $0x30] sm:$0xff] (%p625_p0) }
 0x156   :  { %3741 = vst [vmem:[#allocation13_spill] sm:$0xff] (%p625_p0), %v3039_v37  ;;  %v3155_v37 = vld [vmem:[#allocation4 + $0x1d8] sm:$0xff] (%p625_p0) }
 0x157   :  { %907 = vmatpush.msra.mxu0 (%p625_p0), %v847_v42  ;;  %948 = vmatpush.msra.mxu1 (%p625_p0), %v848_v43  ;;  %v3047_v42 = vld [vmem:[#allocation4 + $0x48] sm:$0xff] (%p625_p0)  ;;  %v3049_v43 = vld [vmem:[#allocation4 + $0x50] sm:$0xff] (%p625_p0) }
 0x158   :  { %3744 = vst [vmem:[#allocation16_spill] sm:$0xff] (%p625_p0), %v3047_v42 }
 0x159   :  { %908 = vmatpush.msra.mxu0 (%p625_p0), %v843_v44  ;;  %949 = vmatpush.msra.mxu1 (%p625_p0), %v844_v45  ;;  %3745 = vst [vmem:[#allocation17_spill] sm:$0xff] (%p625_p0), %v3049_v43  ;;  %v3051_v44 = vld [vmem:[#allocation4 + $0x58] sm:$0xff] (%p625_p0)  ;;  %v3159_v43 = vld [vmem:[#allocation4 + $0x1e8] sm:$0xff] (%p625_p0) }
 0x15a   : > { %821 = vperm.xlu0 %1920, %v811_v3   ;;  %1800 = vmatmul.msk.f32.vlgmr.msra.gmra.mxu0 (%p625_p0), %vm128_vm0, %v835_v41  ;;  %3746 = vst [vmem:[#allocation18_spill] sm:$0xff] (%p625_p0), %v3051_v44  ;;  %v3161_v44 = vld [vmem:[#allocation4 + $0x1f0] sm:$0xff] (%p625_p0) }
 0x15b   :  { %1808 = vmatmul.msk.f32.vlgmr.msra.gmra.mxu1 (%p625_p0), %vm128_vm0, %v835_v41 }
 0x162   :  { %1801 = vmatmul.msk.f32.gmra.mxu0 (%p625_p0), %vm128_vm0, %v836_v46 }
 0x163   :  { %1809 = vmatmul.msk.f32.gmra.mxu1 (%p625_p0), %vm128_vm0, %v836_v46 }
 0x16a   :  { %1802 = vmatmul.msk.f32.gmra.mxu0 (%p625_p0), %vm128_vm0, %v837_v47 }
 0x16b   :  { %1810 = vmatmul.msk.f32.gmra.mxu1 (%p625_p0), %vm128_vm0, %v837_v47 }
 0x172   :  { %1803 = vmatmul.msk.f32.gmra.mxu0 (%p625_p0), %vm128_vm0, %v838_v48 }
 0x173   :  { %1811 = vmatmul.msk.f32.gmra.mxu1 (%p625_p0), %vm128_vm0, %v838_v48 }
 0x17a   :  { %1804 = vmatmul.msk.f32.gmra.mxu0 (%p625_p0), %vm128_vm0, %v839_v49 }
 0x17b   :  { %1812 = vmatmul.msk.f32.gmra.mxu1 (%p625_p0), %vm128_vm0, %v839_v49 }
 0x182   :  { %1805 = vmatmul.msk.f32.gmra.mxu0 (%p625_p0), %vm128_vm0, %v840_v50 }
 0x183   :  { %1813 = vmatmul.msk.f32.gmra.mxu1 (%p625_p0), %vm128_vm0, %v840_v50 }
 0x18a   :  { %1806 = vmatmul.msk.f32.gmra.mxu0 (%p625_p0), %vm128_vm0, %v841_v51 }
 0x18b   :  { %1814 = vmatmul.msk.f32.gmra.mxu1 (%p625_p0), %vm128_vm0, %v841_v51 }
 0x192   :  { %1807 = vmatmul.msk.f32.gmra.mxu0 (%p625_p0), %vm128_vm0, %v842_v52 }
 0x193   :  { %1815 = vmatmul.msk.f32.gmra.mxu1 (%p625_p0), %vm128_vm0, %v842_v52 }
 0x1c4   : > { %v817_v25 = vpop.permute.xlu0 %816 }
 0x1cc   : > { %v676_v5 = vpop.f32.mrf.mxu0 }
 0x1cd   : > { %v739_v16 = vadd.f32 %v676_v5, %v2810_v6  ;;  %v696_v20 = vpop.f32.mrf.mxu1 }
 0x1ce   : > { %v740_v3 = vadd.f32 %v696_v20, %v656_v1 }
 0x1cf   : > { %v1795_v21 = vmul.f32 -1.442695, %v739_v16 }
 0x1d0   : > { %v1796_v22 = vmul.f32 -1.442695, %v740_v3 }
 0x1d1   : > { %1921 = vpow2.f32 %v1795_v21 }
 0x1d2   : > { %1923 = vpow2.f32 %v1796_v22 }
 0x1d3   : > { %v736_v14 = vpop.f32.mrf.mxu3 }
 0x1d4   : > { %v742_v15 = vadd.f32 %v736_v14, %v658_v18  ;;  %v822_v18 = vpop.permute.xlu0 %821 }
 0x1d5   : > { %v716_v10 = vpop.f32.mrf.mxu2 }
 0x1d6   : > { %v1797_v23 = vmul.f32 -1.442695, %v742_v15  ;;  %v741_v6 = vadd.f32 %v716_v10, %v657_v19  ;;  %v824_v19 = vsel %vm618_vm1, %v817_v25, %v822_v18 }
 0x1d7   : > { %v1922_v24 = vpop.eup %1921  ;;  %v826_v28 = vsub.f32 1.0, %v824_v19  ;;  %v910_v58 = vpop.f32.mrf.mxu0 (%p625_p0) }
 0x1d8   : > { %v1924_v0 = vpop.eup %1923  ;;  %v746_v2 = vadd.f32 1.0, %v1922_v24  ;;  %1925 = vpow2.f32 %v1797_v23  ;;  %v951_v59 = vpop.f32.mrf.mxu1 (%p625_p0)  ;;  %v911_v60 = vadd.f32 (%p625_p0), %v910_v58, %v3003_v54  ;;  %v3065_v58 = vld [vmem:[#allocation4 + $0x88] sm:$0xff] (%p625_p0) }
 0x1d9   : > { %v765_v7 = vadd.f32 1.0, %v1924_v0  ;;  %v830_v32 = vmul.f32 %v2030_v9, %v826_v28  ;;  %v952_v61 = vadd.f32 (%p625_p0), %v951_v59, %v3005_v55  ;;  %v3067_v59 = vld [vmem:[#allocation4 + $0x90] sm:$0xff] (%p625_p0) }
 0x1da   : > { %1927 = vrcp.f32 %v746_v2  ;;  %v758_v3 = vand.u32 2147483648, %v746_v2  ;;  %v756_v23 = vand.u32 2147483647, %v746_v2  ;;  %vm752_vm7 = vweird.f32 %v746_v2  ;;  %1057 = vst [vmem:[#allocation3] sm:$0xff] (%p625_p0), %v911_v60  ;;  %v3069_v60 = vld [vmem:[#allocation4 + $0x98] sm:$0xff] (%p625_p0) }
 0x1db   : > { %1929 = vrcp.f32 %v765_v7  ;;  %v777_v14 = vand.u32 2147483648, %v765_v7  ;;  %v775_v0 = vand.u32 2147483647, %v765_v7  ;;  %vm771_vm9 = vweird.f32 %v765_v7  ;;  %1058 = vst [vmem:[#allocation3 + $0x8] sm:$0xff] (%p625_p0), %v952_v61  ;;  %v3071_v61 = vld [vmem:[#allocation4 + $0xa0] sm:$0xff] (%p625_p0) }
 0x1dc   : > { %vm757_vm10 = vcmp.eq.f32.partialorder %v756_v23, 8.507059e+37  ;;  %3751 = vst [vmem:[#allocation23_spill] sm:$0xff] (%p625_p0), %v3067_v59 }
 0x1dd   : > { %vm776_vm12 = vcmp.eq.f32.partialorder %v775_v0, 8.507059e+37 }
 0x1de   : > { %v1926_v4 = vpop.eup %1925 }
 0x1df   : > { %v785_v8 = vadd.f32 1.0, %v1926_v4 }
 0x1e0   : > { %v1928_v20 = vpop.eup %1927 }
 0x1e1   : > { %v1930_v16 = vpop.eup %1929  ;;  %v748_v1 = vmul.f32 %v1928_v20, %v746_v2  ;;  %1931 = vrcp.f32 %v785_v8  ;;  %vm753_vm5 = vweird.f32 %v1928_v20  ;;  %vm791_vm14 = vweird.f32 %v785_v8 }
 0x1e2   : > { %v767_v21 = vmul.f32 %v1930_v16, %v765_v7  ;;  %1933 = vtanh.f32 %v741_v6  ;;  %vm772_vm6 = vweird.f32 %v1930_v16  ;;  %vm754_vm8 = vmor %vm752_vm7, %vm753_vm5  ;;  %v759_v6 = vor.u32 1.1754944e-38, %v758_v3 }
 0x1e3   : > { %v749_v22 = vsub.f32 1.0, %v748_v1  ;;  %vm773_vm11 = vmor %vm771_vm9, %vm772_vm6  ;;  %v797_v7 = vand.u32 2147483648, %v785_v8  ;;  %v795_v23 = vand.u32 2147483647, %v785_v8 }
 0x1e4   : > { %v768_v5 = vsub.f32 1.0, %v767_v21 }
 0x1e5   : > { %v750_v24 = vmul.f32 %v1928_v20, %v749_v22  ;;  %v778_v22 = vor.u32 1.1754944e-38, %v777_v14  ;;  %vm796_vm5 = vcmp.eq.f32.partialorder %v795_v23, 8.507059e+37 }
 0x1e6   : > { %v769_v15 = vmul.f32 %v1930_v16, %v768_v5 }
 0x1e7   : > { %v1932_v10 = vpop.eup %1931  ;;  %v751_v4 = vadd.f32 %v1928_v20, %v750_v24 }
 0x1e8   : > { %v1934_v26 = vpop.eup %1933  ;;  %v787_v27 = vmul.f32 %v1932_v10, %v785_v8  ;;  %v770_v1 = vadd.f32 %v1930_v16, %v769_v15  ;;  %vm792_vm13 = vweird.f32 %v1932_v10  ;;  %v832_v15 = vmul.f32 -10000.0, %v826_v28  ;;  %v853_v8 = vld [vmem:[%s3611_s7 + $0x50] sm:$0xff] (%p625_p0) }
 0x1e9   : > { %v755_v21 = vsel %vm754_vm8, %v1928_v20, %v751_v4  ;;  %vm793_vm15 = vmor %vm791_vm14, %vm792_vm13 }
 0x1ea   : > { %v788_v5 = vsub.f32 1.0, %v787_v27  ;;  %v760_v29 = vsel %vm757_vm10, %v759_v6, %v755_v21  ;;  %v774_v30 = vsel %vm773_vm11, %v1930_v16, %v770_v1  ;;  %v798_v16 = vor.u32 1.1754944e-38, %v797_v7 }
 0x1eb   : > { %v779_v31 = vsel %vm776_vm12, %v778_v22, %v774_v30  ;;  %v802_v25 = vmul.f32 %v1934_v26, %v760_v29 }
 0x1ec   : > { %v789_v18 = vmul.f32 %v1932_v10, %v788_v5  ;;  %v801_v2 = vmul.f32 %v2030_v9, %v779_v31  ;;  %v827_v31 = vmul.f32 %v2034_v17, %v826_v28  ;;  %v857_v28 = vld [vmem:[%s3611_s7 + $0x70] sm:$0xff] (%p625_p0) }
 0x1ed   :  { %987 = vmatpush.msra.mxu2 (%p625_p0), %v857_v28  ;;  %v3027_v28 = vld [vmem:[#allocation4] sm:$0xff] (%p625_p0) }
 0x1ee   : > { %v803_v24 = vadd.f32 %v802_v25, %v801_v2  ;;  %v790_v3 = vadd.f32 %v1932_v10, %v789_v18  ;;  %3735 = vst [vmem:[#allocation7_spill] sm:$0xff] (%p625_p0), %v3027_v28  ;;  %v3153_v28 = vld [vmem:[#allocation4 + $0x1d0] sm:$0xff] (%p625_p0) }
 0x1ef   :  { %988 = vmatpush.msra.mxu2 (%p625_p0), %v853_v8  ;;  %v3031_v8 = vld [vmem:[#allocation4 + $0x10] sm:$0xff] (%p625_p0) }
 0x1f0   : > { %1935 = vtanh.f32 %v803_v24  ;;  %v829_v20 = vmul.f32 %v824_v19, %v803_v24  ;;  %v794_v27 = vsel %vm793_vm15, %v1932_v10, %v790_v3  ;;  %v954_v10 = vpop.f32.mrf.mxu1 (%p625_p0)  ;;  %3737 = vst [vmem:[#allocation9_spill] sm:$0xff] (%p625_p0), %v3031_v8  ;;  %v3147_v8 = vld [vmem:[#allocation4 + $0x1c0] sm:$0xff] (%p625_p0) }
 0x1f1   : > { %v799_v26 = vsel %vm796_vm5, %v798_v16, %v794_v27  ;;  %989 = vmatpush.msra.mxu2 (%p625_p0), %v849_v33  ;;  %v955_v1 = vadd.f32 (%p625_p0), %v954_v10, %v3005_v55  ;;  %v3035_v33 = vld [vmem:[#allocation4 + $0x20] sm:$0xff] (%p625_p0)  ;;  %v3083_v10 = vld [vmem:[#allocation4 + $0xd0] sm:$0xff] (%p625_p0)  ;;  %3764 = vst [vmem:[#allocation36_spill] sm:$0xff] (%p625_p0), %v3147_v8 }
 0x1f2   : > { %v831_v9 = vadd.f32 %v830_v32, %v829_v20   ;;  %v858_v32 = vld [vmem:[%s3611_s7 + $0x78] sm:$0xff] (%p625_p0)  ;;  %3739 = vst [vmem:[#allocation11_spill] sm:$0xff] (%p625_p0), %v3035_v33  ;;  %v3157_v33 = vld [vmem:[#allocation4 + $0x1e0] sm:$0xff] (%p625_p0) }
 0x1f3   :  { %1028 = vmatpush.msra.mxu3 (%p625_p0), %v858_v32  ;;  %990 = vmatpush.msra.mxu2 (%p625_p0), %v845_v38  ;;  %1062 = vst [vmem:[#allocation3 + $0x28] sm:$0xff] (%p625_p0), %v955_v1  ;;  %v3029_v32 = vld [vmem:[#allocation4 + $0x8] sm:$0xff] (%p625_p0)  ;;  %v3041_v38 = vld [vmem:[#allocation4 + $0x38] sm:$0xff] (%p625_p0)  ;;  %v3087_v1 = vld [vmem:[#allocation4 + $0xe0] sm:$0xff] (%p625_p0) }
 0x1f4   :  { %1816 = vmatmul.msk.f32.vlgmr.msra.gmra.mxu2 (%p625_p0), %vm128_vm0, %v835_v41  ;;  %3736 = vst [vmem:[#allocation8_spill] sm:$0xff] (%p625_p0), %v3029_v32  ;;  %v3151_v32 = vld [vmem:[#allocation4 + $0x1c8] sm:$0xff] (%p625_p0) }
 0x1f5   :  { %3742 = vst [vmem:[#allocation14_spill] sm:$0xff] (%p625_p0), %v3041_v38 }
 0x1f6   : > { %v1936_v30 = vpop.eup %1935  ;;  %3754 = vst [vmem:[#allocation26_spill] sm:$0xff] (%p625_p0), %v3083_v10 }
 0x1f7   : > { %v805_v29 = vmul.f32 %v1936_v30, %v799_v26  ;;  %3756 = vst [vmem:[#allocation28_spill] sm:$0xff] (%p625_p0), %v3087_v1 }
 0x1f8   :  { %v957_v2 = vpop.f32.mrf.mxu1 (%p625_p0) }
 0x1f9   : > { %v825_v14 = vmul.f32 %v824_v19, %v805_v29  ;;  %v913_v19 = vpop.f32.mrf.mxu0 (%p625_p0)  ;;  %v958_v3 = vadd.f32 (%p625_p0), %v957_v2, %v3005_v55  ;;  %v3095_v2 = vld [vmem:[#allocation4 + $0x100] sm:$0xff] (%p625_p0) }
 0x1fa   :  { %v914_v6 = vadd.f32 (%p625_p0), %v913_v19, %v3003_v54  ;;  %v3081_v19 = vld [vmem:[#allocation4 + $0xc8] sm:$0xff] (%p625_p0)  ;;  %3757 = vst [vmem:[#allocation29_spill] sm:$0xff] (%p625_p0), %v3095_v2 }
 0x1fb   : > { %v828_v17 = vadd.f32 %v827_v31, %v825_v14   ;;  %v833_v0 = vadd.f32 %v832_v15, %v825_v14  ;;  %1066 = vst [vmem:[#allocation3 + $0x48] sm:$0xff] (%p625_p0), %v958_v3 }
 0x1fc   :  { %627 = sbr.rel (!%p625_p0) target bundleno = 304 (0x130), region = 138  ;;  %v854_v17 = vld [vmem:[%s3611_s7 + $0x58] sm:$0xff] (%p625_p0)  ;;  %1817 = vmatmul.msk.f32.gmra.mxu2 (%p625_p0), %vm128_vm0, %v836_v46  ;;  %1061 = vst [vmem:[#allocation3 + $0x20] sm:$0xff] (%p625_p0), %v914_v6 }
 0x1fd   : > { %v2884_v11 = vmax.f32 %v2026_v11, %v833_v0   ;;  %1029 = vmatpush.msra.mxu3 (%p625_p0), %v854_v17  ;;  %v3033_v17 = vld [vmem:[#allocation4 + $0x18] sm:$0xff] (%p625_p0) }
 0x1fe   :  { %3738 = vst [vmem:[#allocation10_spill] sm:$0xff] (%p625_p0), %v3033_v17  ;;  %v3085_v6 = vld [vmem:[#allocation4 + $0xd8] sm:$0xff] (%p625_p0) }
 0x1ff   : > { %3731 = vst [vmem:[#allocation44_spill] sm:$0xff] %v2884_v11  ;;  %v3732_v4 = vmov %v2884_v11  ;;  %1030 = vmatpush.msra.mxu3 (%p625_p0), %v850_v34  ;;  %v3037_v34 = vld [vmem:[#allocation4 + $0x28] sm:$0xff] (%p625_p0) }
 0x200   : > { %v3733_v11 = vmov %v3732_v4  ;;  %v960_v30 = vpop.f32.mrf.mxu1 (%p625_p0)  ;;  %3740 = vst [vmem:[#allocation12_spill] sm:$0xff] (%p625_p0), %v3037_v34  ;;  %v3143_v4 = vld [vmem:[#allocation4 + $0x1b0] sm:$0xff] (%p625_p0) }
 0x201   :  { %1031 = vmatpush.msra.mxu3 %v846_v39  ;;  %v916_v18 = vpop.f32.mrf.mxu0  ;;  %v961_v29 = vadd.f32 %v960_v30, %v3005_v55  ;;  %v3043_v39 = vld [vmem:[#allocation4 + $0x40] sm:$0xff]  ;;  %3755 = vst [vmem:[#allocation27_spill] sm:$0xff] %v3085_v6 }
 0x202   :  { %1824 = vmatmul.msk.f32.vlgmr.msra.gmra.mxu3 %vm128_vm0, %v835_v41  ;;  %v917_v24 = vadd.f32 %v916_v18, %v3003_v54  ;;  %3743 = vst [vmem:[#allocation15_spill] sm:$0xff] %v3043_v39  ;;  %v3093_v18 = vld [vmem:[#allocation4 + $0xf8] sm:$0xff]  ;;  %v3105_v30 = vld [vmem:[#allocation4 + $0x120] sm:$0xff] }
 0x203   :  { %1070 = vst [vmem:[#allocation3 + $0x68] sm:$0xff] %v961_v29  ;;  %v3109_v29 = vld [vmem:[#allocation4 + $0x130] sm:$0xff] }
 0x204   :  { %1818 = vmatmul.msk.f32.gmra.mxu2 %vm128_vm0, %v837_v47  ;;  %1065 = vst [vmem:[#allocation3 + $0x40] sm:$0xff] %v917_v24 }
 0x205   :  { %3762 = vst [vmem:[#allocation34_spill] sm:$0xff] %v3143_v4 }
 0x208   :  { %v963_v36 = vpop.f32.mrf.mxu1 }
 0x209   :  { %v919_v16 = vpop.f32.mrf.mxu0  ;;  %v964_v41 = vadd.f32 %v963_v36, %v3005_v55  ;;  %v3119_v36 = vld [vmem:[#allocation4 + $0x150] sm:$0xff] }
 0x20a   :  { %1825 = vmatmul.msk.f32.gmra.mxu3 %vm128_vm0, %v836_v46  ;;  %v920_v26 = vadd.f32 %v919_v16, %v3003_v54 }
 0x20b   :  { %1074 = vst [vmem:[#allocation3 + $0x88] sm:$0xff] %v964_v41  ;;  %v3123_v41 = vld [vmem:[#allocation4 + $0x160] sm:$0xff] }
 0x20c   :  { %1819 = vmatmul.msk.f32.gmra.mxu2 %vm128_vm0, %v838_v48  ;;  %1069 = vst [vmem:[#allocation3 + $0x60] sm:$0xff] %v920_v26  ;;  %v3107_v26 = vld [vmem:[#allocation4 + $0x128] sm:$0xff] }
 0x211   :  { %v922_v35 = vpop.f32.mrf.mxu0 }
 0x212   :  { %1826 = vmatmul.msk.f32.gmra.mxu3 %vm128_vm0, %v837_v47  ;;  %v923_v40 = vadd.f32 %v922_v35, %v3003_v54  ;;  %v3053_v47 = vld [vmem:[#allocation4 + $0x60] sm:$0xff]  ;;  %v3117_v35 = vld [vmem:[#allocation4 + $0x148] sm:$0xff] }
 0x213   :  { %3747 = vst [vmem:[#allocation19_spill] sm:$0xff] %v3053_v47 }
 0x214   :  { %1820 = vmatmul.msk.f32.gmra.mxu2 %vm128_vm0, %v839_v49  ;;  %1073 = vst [vmem:[#allocation3 + $0x80] sm:$0xff] %v923_v40  ;;  %v3121_v40 = vld [vmem:[#allocation4 + $0x158] sm:$0xff] }
 0x21a   :  { %1827 = vmatmul.msk.f32.gmra.mxu3 %vm128_vm0, %v838_v48  ;;  %v3055_v48 = vld [vmem:[#allocation4 + $0x68] sm:$0xff] }
 0x21b   :  { %3748 = vst [vmem:[#allocation20_spill] sm:$0xff] %v3055_v48 }
 0x21c   :  { %1821 = vmatmul.msk.f32.gmra.mxu2 %vm128_vm0, %v840_v50 }
 0x222   :  { %1828 = vmatmul.msk.f32.gmra.mxu3 %vm128_vm0, %v839_v49  ;;  %v3057_v49 = vld [vmem:[#allocation4 + $0x70] sm:$0xff] }
 0x223   :  { %3749 = vst [vmem:[#allocation21_spill] sm:$0xff] %v3057_v49 }
 0x224   :  { %1822 = vmatmul.msk.f32.gmra.mxu2 %vm128_vm0, %v841_v51 }
 0x22a   :  { %1829 = vmatmul.msk.f32.gmra.mxu3 %vm128_vm0, %v840_v50 }
 0x22c   :  { %1823 = vmatmul.msk.f32.gmra.mxu2 %vm128_vm0, %v842_v52 }
 0x232   :  { %1830 = vmatmul.msk.f32.gmra.mxu3 %vm128_vm0, %v841_v51 }
 0x23a   :  { %1831 = vmatmul.msk.f32.gmra.mxu3 %vm128_vm0, %v842_v52  ;;  %v3061_v52 = vld [vmem:[#allocation4 + $0x78] sm:$0xff] }
 0x23b   :  { %3750 = vst [vmem:[#allocation22_spill] sm:$0xff] %v3061_v52 }
 0x277   :  { %v992_v62 = vpop.f32.mrf.mxu2 }
 0x278   :  { %v993_v11 = vadd.f32 %v992_v62, %v3007_v56  ;;  %v3073_v62 = vld [vmem:[#allocation4 + $0xa8] sm:$0xff] }
 0x27a   :  { %1059 = vst [vmem:[#allocation3 + $0x10] sm:$0xff] %v993_v11  ;;  %v3077_v11 = vld [vmem:[#allocation4 + $0xb8] sm:$0xff] }
 0x27b   :  { %3752 = vst [vmem:[#allocation24_spill] sm:$0xff] %v3077_v11 }
 0x27f   :  { %v995_v21 = vpop.f32.mrf.mxu2 }
 0x280   :  { %v996_v5 = vadd.f32 %v995_v21, %v3007_v56  ;;  %v3089_v21 = vld [vmem:[#allocation4 + $0xe8] sm:$0xff] }
 0x282   :  { %1063 = vst [vmem:[#allocation3 + $0x30] sm:$0xff] %v996_v5  ;;  %v966_v5 = vpop.f32.mrf.mxu1 }
 0x283   :  { %v967_v3 = vadd.f32 %v966_v5, %v3005_v55  ;;  %v3135_v5 = vld [vmem:[#allocation4 + $0x190] sm:$0xff] }
 0x284   :  { %3760 = vst [vmem:[#allocation32_spill] sm:$0xff] %v3135_v5 }
 0x285   :  { %v1033_v63 = vpop.f32.mrf.mxu3  ;;  %1078 = vst [vmem:[#allocation3 + $0xa8] sm:$0xff] %v967_v3  ;;  %v3139_v3 = vld [vmem:[#allocation4 + $0x1a0] sm:$0xff] }
 0x286   :  { %v1034_v9 = vadd.f32 %v1033_v63, %v3009_v57  ;;  %v3075_v63 = vld [vmem:[#allocation4 + $0xb0] sm:$0xff]  ;;  %3761 = vst [vmem:[#allocation33_spill] sm:$0xff] %v3139_v3 }
 0x287   :  { %v998_v7 = vpop.f32.mrf.mxu2 }
 0x288   :  { %1060 = vst [vmem:[#allocation3 + $0x18] sm:$0xff] %v1034_v9  ;;  %v999_v23 = vadd.f32 %v998_v7, %v3007_v56  ;;  %v3079_v9 = vld [vmem:[#allocation4 + $0xc0] sm:$0xff]  ;;  %v3099_v7 = vld [vmem:[#allocation4 + $0x108] sm:$0xff] }
 0x289   :  { %3753 = vst [vmem:[#allocation25_spill] sm:$0xff] %v3079_v9 }
 0x28a   :  { %1067 = vst [vmem:[#allocation3 + $0x50] sm:$0xff] %v999_v23  ;;  %v3103_v23 = vld [vmem:[#allocation4 + $0x118] sm:$0xff] }
 0x28b   :  { %3758 = vst [vmem:[#allocation30_spill] sm:$0xff] %v3099_v7 }
 0x28d   :  { %v1036_v22 = vpop.f32.mrf.mxu3 }
 0x28e   :  { %v1037_v25 = vadd.f32 %v1036_v22, %v3009_v57  ;;  %v925_v22 = vpop.f32.mrf.mxu0 }
 0x28f   :  { %v1001_v14 = vpop.f32.mrf.mxu2  ;;  %v926_v24 = vadd.f32 %v925_v22, %v3003_v54  ;;  %v3133_v22 = vld [vmem:[#allocation4 + $0x188] sm:$0xff] }
 0x290   :  { %1064 = vst [vmem:[#allocation3 + $0x38] sm:$0xff] %v1037_v25  ;;  %v1002_v15 = vadd.f32 %v1001_v14, %v3007_v56  ;;  %v3091_v25 = vld [vmem:[#allocation4 + $0xf0] sm:$0xff] }
 0x291   :  { %1077 = vst [vmem:[#allocation3 + $0xa0] sm:$0xff] %v926_v24  ;;  %v3137_v24 = vld [vmem:[#allocation4 + $0x198] sm:$0xff] }
 0x292   :  { %1071 = vst [vmem:[#allocation3 + $0x70] sm:$0xff] %v1002_v15  ;;  %v3113_v15 = vld [vmem:[#allocation4 + $0x138] sm:$0xff] }
 0x295   :  { %v1039_v20 = vpop.f32.mrf.mxu3 }
 0x296   :  { %v1040_v27 = vadd.f32 %v1039_v20, %v3009_v57  ;;  %v3101_v20 = vld [vmem:[#allocation4 + $0x110] sm:$0xff] }
 0x297   :  { %v1004_v45 = vpop.f32.mrf.mxu2 }
 0x298   :  { %1068 = vst [vmem:[#allocation3 + $0x58] sm:$0xff] %v1040_v27  ;;  %v1005_v50 = vadd.f32 %v1004_v45, %v3007_v56  ;;  %v3125_v45 = vld [vmem:[#allocation4 + $0x168] sm:$0xff] }
 0x29a   :  { %1075 = vst [vmem:[#allocation3 + $0x90] sm:$0xff] %v1005_v50  ;;  %v3129_v50 = vld [vmem:[#allocation4 + $0x178] sm:$0xff] }
 0x29d   :  { %v1042_v31 = vpop.f32.mrf.mxu3 }
 0x29e   :  { %v1043_v0 = vadd.f32 %v1042_v31, %v3009_v57 }
 0x29f   :  { %v1007_v27 = vpop.f32.mrf.mxu2 }
 0x2a0   :  { %1072 = vst [vmem:[#allocation3 + $0x78] sm:$0xff] %v1043_v0  ;;  %v1008_v14 = vadd.f32 %v1007_v27, %v3007_v56  ;;  %v3115_v0 = vld [vmem:[#allocation4 + $0x140] sm:$0xff]  ;;  %v3141_v27 = vld [vmem:[#allocation4 + $0x1a8] sm:$0xff] }
 0x2a1   :  { %3759 = vst [vmem:[#allocation31_spill] sm:$0xff] %v3115_v0 }
 0x2a2   :  { %1079 = vst [vmem:[#allocation3 + $0xb0] sm:$0xff] %v1008_v14  ;;  %v969_v14 = vpop.f32.mrf.mxu1 }
 0x2a3   :  { %v970_v17 = vadd.f32 %v969_v14, %v3005_v55  ;;  %v3165_v14 = vld [vmem:[#allocation4 + $0x1f8] sm:$0xff] }
 0x2a4   :  { %3765 = vst [vmem:[#allocation37_spill] sm:$0xff] %v3165_v14 }
 0x2a5   :  { %v1045_v46 = vpop.f32.mrf.mxu3  ;;  %1082 = vst [vmem:[#allocation3 + $0xc8] sm:$0xff] %v970_v17  ;;  %v3173_v17 = vmov 0.0  }
 0x2a6   :  { %v1046_v51 = vadd.f32 %v1045_v46, %v3009_v57  ;;  %v3127_v46 = vld [vmem:[#allocation4 + $0x170] sm:$0xff] }
 0x2a7   :  { %v1010_v38 = vpop.f32.mrf.mxu2 }
 0x2a8   :  { %1076 = vst [vmem:[#allocation3 + $0x98] sm:$0xff] %v1046_v51  ;;  %v3131_v51 = vld [vmem:[#allocation4 + $0x180] sm:$0xff]  ;;  %v1011_v42 = vadd.f32 %v1010_v38, %v3007_v56 }
 0x2aa   :  { %1083 = vst [vmem:[#allocation3 + $0xd0] sm:$0xff] %v1011_v42  ;;  %v972_v49 = vpop.f32.mrf.mxu1  ;;  %v3175_v42 = vmov 0.0  }
 0x2ab   :  { %v973_v48 = vadd.f32 %v972_v49, %v3005_v55 }
 0x2ad   :  { %v1048_v16 = vpop.f32.mrf.mxu3  ;;  %1086 = vst [vmem:[#allocation3 + $0xe8] sm:$0xff] %v973_v48 }
 0x2ae   :  { %v1049_v31 = vadd.f32 %v1048_v16, %v3009_v57  ;;  %v928_v16 = vpop.f32.mrf.mxu0 }
 0x2af   :  { %v1013_v47 = vpop.f32.mrf.mxu2 }
 0x2b0   :  { %1080 = vst [vmem:[#allocation3 + $0xb8] sm:$0xff] %v1049_v31  ;;  %v929_v31 = vadd.f32 %v928_v16, %v3003_v54 }
 0x2b2   :  { %1081 = vst [vmem:[#allocation3 + $0xc0] sm:$0xff] %v929_v31  ;;  %v1014_v31 = vadd.f32 %v1013_v47, %v3007_v56 }
 0x2b4   :  { %1087 = vst [vmem:[#allocation3 + $0xf0] sm:$0xff] %v1014_v31 }
 0x2b5   :  { %v1051_v34 = vpop.f32.mrf.mxu3 }
 0x2b6   :  { %v1052_v16 = vadd.f32 %v1051_v34, %v3009_v57  ;;  %v931_v39 = vpop.f32.mrf.mxu0  ;;  %v3171_v34 = vmov -10000.0  }
 0x2b7   :  { %v932_v52 = vadd.f32 %v931_v39, %v3003_v54 }
 0x2b8   :  { %1084 = vst [vmem:[#allocation3 + $0xd8] sm:$0xff] %v1052_v16 }
 0x2b9   :  { %1085 = vst [vmem:[#allocation3 + $0xe0] sm:$0xff] %v932_v52 }
 0x2bd   :  { %v1054_v59 = vpop.f32.mrf.mxu3 }
 0x2be   :  { %v1055_v38 = vadd.f32 %v1054_v59, %v3009_v57 }
 0x2c0   :  { %1088 = vst [vmem:[#allocation3 + $0xf8] sm:$0xff] %v1055_v38 }
 0x2c1 LB: > { %1189 = vmatpush.msra.mxu0 %v3157_v33  ;;  %1209 = vmatpush.msra.mxu1 %v3159_v43  ;;  %v3767_v14 = vld [vmem:[#allocation37_spill] sm:$0xff]  ;;  %v3768_v8 = vld [vmem:[#allocation36_spill] sm:$0xff]  ;;  %s1847_s28 = sshll.u32 %s2054_s9, 5  ;;  %s1162_s6 = ssub.s32 7, %s2054_s9  ;;  %v3770_v13 = vld [vmem:[#allocation35_spill] sm:$0xff]  ;;  %v2042_v34 = vphi %v3171_v34, %v3803_v34   ;;  %s2054_s9 = sphi %s3177_s9, %s1158_s9   ;;  %v2050_v42 = vphi %v3175_v42, %v1358_v42   ;;  %v2046_v17 = vphi %v3173_v17, %v1361_v17  }
 0x2c2   : > { %1249 = vmatpush.msra.mxu3 %v3767_v14  ;;  %1229 = vmatpush.msra.mxu2 %v3161_v44  ;;  %v3769_v3 = vld [vmem:[#allocation33_spill] sm:$0xff]  ;;  %v3771_v4 = vld [vmem:[#allocation34_spill] sm:$0xff]  ;;  %s1848_s25 = sshll.u32 %s1162_s6, 5  ;;  %v3772_v5 = vld [vmem:[#allocation32_spill] sm:$0xff]  ;;  %s3217_s7 = scalar_lea.vmem [#allocation3], %s1847_s28 }
 0x2c3   : > { %1190 = vmatpush.msra.mxu0 %v3768_v8  ;;  %1210 = vmatpush.msra.mxu1 %v3151_v32  ;;  %v3773_v0 = vld [vmem:[#allocation31_spill] sm:$0xff]  ;;  %s3220_s26 = scalar_lea.vmem [#allocation3], %s1848_s25  ;;  %v3774_v2 = vld [vmem:[#allocation29_spill] sm:$0xff]  ;;  %v3775_v7 = vld [vmem:[#allocation30_spill] sm:$0xff]  ;;  %s1839_s2 = sshll.u32 %s2054_s9, 3 }
 0x2c4   : > { %1250 = vmatpush.msra.mxu3 %v3155_v37  ;;  %1230 = vmatpush.msra.mxu2 %v3153_v28  ;;  %v3776_v1 = vld [vmem:[#allocation28_spill] sm:$0xff]  ;;  %v3777_v9 = vld [vmem:[#allocation25_spill] sm:$0xff]  ;;  %v3778_v6 = vld [vmem:[#allocation27_spill] sm:$0xff]  ;;  %s3792_s3 = sld [smem:[#allocation48_spill]]  ;;  %s1840_s4 = sshll.u32 %s1162_s6, 3 }
 0x2c5   : > { %1191 = vmatpush.msra.mxu0 %v3769_v3  ;;  %1211 = vmatpush.msra.mxu1 %v3141_v27  ;;  %v3779_v10 = vld [vmem:[#allocation26_spill] sm:$0xff]  ;;  %v3780_v11 = vld [vmem:[#allocation24_spill] sm:$0xff]  ;;  %v3781_v57 = vld [vmem:[#allocation23_spill] sm:$0xff]  ;;  %s1158_s9 = sadd.s32 1, %s2054_s9  }
 0x2c6   : > { %1251 = vmatpush.msra.mxu3 %v3770_v13  ;;  %1231 = vmatpush.msra.mxu2 %v3771_v4  ;;  %v3782_v39 = vld [vmem:[#allocation19_spill] sm:$0xff]  ;;  %v3783_v47 = vld [vmem:[#allocation20_spill] sm:$0xff]  ;;  %v3784_v48 = vld [vmem:[#allocation22_spill] sm:$0xff]  ;;  %p1155_p1 = scmp.ge.s32.totalorder %s1158_s9, 8  }
 0x2c7   : > { %1192 = vmatpush.msra.mxu0 %v3131_v51  ;;  %1212 = vmatpush.msra.mxu1 %v3133_v22  ;;  %v1166_v54 = vld [vmem:[%s3217_s7] sm:$0xff]  ;;  %v3785_v49 = vld [vmem:[#allocation21_spill] sm:$0xff]  ;;  %v3787_v59 = vld [vmem:[#allocation16_spill] sm:$0xff]  ;;  %s3804_s29 = sld [smem:[#allocation47_spill]] (%p1155_p1) }
 0x2c8   : > { %1252 = vmatpush.msra.mxu3 %v3137_v24  ;;  %1232 = vmatpush.msra.mxu2 %v3772_v5  ;;  %v1173_v55 = vld [vmem:[%s3220_s26] sm:$0xff]  ;;  %v3788_v16 = vld [vmem:[#allocation18_spill] sm:$0xff]  ;;  %v3789_v31 = vld [vmem:[#allocation17_spill] sm:$0xff]  ;;  %s3805_s0 = sld [smem:[#allocation45_spill]] (%p1155_p1) }
 0x2c9   : > { %1193 = vmatpush.msra.mxu0 %v3123_v41  ;;  %1213 = vmatpush.msra.mxu1 %v3125_v45  ;;  %v3227_v56 = vsel %vm618_vm1, %v1166_v54, %v1173_v55  ;;  %v3786_v52 = vld [vmem:[#allocation15_spill] sm:$0xff]  ;;  %v3791_v54 = vld [vmem:[#allocation12_spill] sm:$0xff]  ;;  %v3793_v55 = vld [vmem:[#allocation14_spill] sm:$0xff] }
 0x2ca   : > { %1253 = vmatpush.msra.mxu3 %v3129_v50  ;;  %1233 = vmatpush.msra.mxu2 %v3127_v46  ;;  %v3790_v38 = vld [vmem:[#allocation11_spill] sm:$0xff]  ;;  %s1337_s30 = scalar_lea.vmem %s3792_s3, %s1839_s2  ;;  %s1340_s1 = scalar_lea.vmem %s3792_s3, %s1840_s4  ;;  %v1520_v28 = vld [vmem:[%s3619_s15 + $0x8] sm:$0xff] (%p1155_p1) }
 0x2cb   : > { %1194 = vmatpush.msra.mxu0 %v3773_v0  ;;  %1214 = vmatpush.msra.mxu1 %v3117_v35  ;;  %v1516_v32 = vld [vmem:[%s3618_s14 + $0x8] sm:$0xff] (%p1155_p1)  ;;  %v1519_v33 = vld [vmem:[%s3619_s15] sm:$0xff] (%p1155_p1) }
 0x2cc   : > { %1254 = vmatpush.msra.mxu3 %v3121_v40  ;;  %1234 = vmatpush.msra.mxu2 %v3119_v36  ;;  %v1515_v37 = vld [vmem:[%s3618_s14] sm:$0xff] (%p1155_p1) }
 0x2cd   : > { %1195 = vmatpush.msra.mxu0 %v3105_v30  ;;  %1215 = vmatpush.msra.mxu1 %v3107_v26  ;;  %v1492_v43 = vld [vmem:[%s3804_s29] sm:$0xff] (%p1155_p1)  ;;  %v1493_v44 = vld [vmem:[%s3804_s29 + $0x8] sm:$0xff] (%p1155_p1) }
 0x2ce   : > { %1255 = vmatpush.msra.mxu3 %v3113_v15  ;;  %1235 = vmatpush.msra.mxu2 %v3109_v29  ;;  %v1445_v26 = vld [vmem:[%s3805_s0] sm:$0xff] (%p1155_p1)  ;;  %v1446_v29 = vld [vmem:[%s3805_s0 + $0x8] sm:$0xff] (%p1155_p1)  ;;  %v1447_v41 = vld [vmem:[%s3805_s0 + $0x10] sm:$0xff] (%p1155_p1) }
 0x2cf   : > { %1196 = vmatpush.msra.mxu0 %v3774_v2  ;;  %1216 = vmatpush.msra.mxu1 %v3775_v7  ;;  %v1448_v45 = vld [vmem:[%s3805_s0 + $0x18] sm:$0xff] (%p1155_p1)  ;;  %v1449_v46 = vld [vmem:[%s3805_s0 + $0x20] sm:$0xff] (%p1155_p1)  ;;  %v1450_v51 = vld [vmem:[%s3805_s0 + $0x28] sm:$0xff] (%p1155_p1)  ;;  %v1461_v27 = vsel (%p1155_p1), %vm128_vm0, %v1445_v26, -inf }
 0x2d0   : > { %1256 = vmatpush.msra.mxu3 %v3103_v23  ;;  %1236 = vmatpush.msra.mxu2 %v3101_v20  ;;  %v1451_v22 = vld [vmem:[%s3805_s0 + $0x30] sm:$0xff] (%p1155_p1)  ;;  %v1452_v24 = vld [vmem:[%s3805_s0 + $0x38] sm:$0xff] (%p1155_p1) }
 0x2d1   : > { %1197 = vmatpush.msra.mxu0 %v3776_v1  ;;  %1217 = vmatpush.msra.mxu1 %v3089_v21  ;;  %v1619_v26 = vld [vmem:[%s3623_s19 + $0x38] sm:$0xff] (%p1155_p1) }
 0x2d2   : > { %1257 = vmatpush.msra.mxu3 %v3093_v18  ;;  %1237 = vmatpush.msra.mxu2 %v3091_v25  ;;  %v1499_v18 = vld [vmem:[%s3804_s29 + $0x38] sm:$0xff] (%p1155_p1) }
 0x2d3   : > { %1198 = vmatpush.msra.mxu0 %v3777_v9  ;;  %1218 = vmatpush.msra.mxu1 %v3081_v19  ;;  %v1501_v19 = vsel (%p1155_p1), %vm128_vm0, %v1493_v44, -inf  ;;  %v1510_v40 = vsel (%p1155_p1), %vm128_vm0, %v1499_v18, -inf  ;;  %v1578_v18 = vld [vmem:[%s3621_s17 + $0x18] sm:$0xff] (%p1155_p1) }
 0x2d4   : > { %1258 = vmatpush.msra.mxu3 %v3778_v6  ;;  %1238 = vmatpush.msra.mxu2 %v3779_v10 }
 0x2d5   : > { %1199 = vmatpush.msra.mxu0 %v3071_v61  ;;  %1219 = vmatpush.msra.mxu1 %v3073_v62  ;;  %v1496_v61 = vld [vmem:[%s3804_s29 + $0x20] sm:$0xff] (%p1155_p1)  ;;  %v1497_v62 = vld [vmem:[%s3804_s29 + $0x28] sm:$0xff] (%p1155_p1) }
 0x2d6   : > { %1259 = vmatpush.msra.mxu3 %v3780_v11  ;;  %1239 = vmatpush.msra.mxu2 %v3075_v63  ;;  %v1498_v63 = vld [vmem:[%s3804_s29 + $0x30] sm:$0xff] (%p1155_p1)  ;;  %v1504_v20 = vsel (%p1155_p1), %vm128_vm0, %v1496_v61, -inf  ;;  %v1506_v23 = vsel (%p1155_p1), %vm128_vm0, %v1497_v62, -inf }
 0x2d7   : > { %1200 = vmatpush.msra.mxu0 %v3063_v53  ;;  %1220 = vmatpush.msra.mxu1 %v3065_v58  ;;  %v1494_v53 = vld [vmem:[%s3804_s29 + $0x10] sm:$0xff] (%p1155_p1)  ;;  %v1495_v58 = vld [vmem:[%s3804_s29 + $0x18] sm:$0xff] (%p1155_p1)  ;;  %v1508_v30 = vsel (%p1155_p1), %vm128_vm0, %v1498_v63, -inf  ;;  %v1507_v35 = vmax.f32 (%p1155_p1), %v1501_v19, %v1506_v23  ;;  %v1579_v19 = vld [vmem:[%s3621_s17 + $0x20] sm:$0xff] (%p1155_p1) }
 0x2d8   : > { %1260 = vmatpush.msra.mxu3 %v3069_v60  ;;  %1240 = vmatpush.msra.mxu2 %v3781_v57  ;;  %v3794_v57 = vld [vmem:[#allocation13_spill] sm:$0xff]  ;;  %v1500_v60 = vsel (%p1155_p1), %vm128_vm0, %v1492_v43, -inf  ;;  %v1502_v21 = vsel (%p1155_p1), %vm128_vm0, %v1494_v53, -inf  ;;  %v1503_v25 = vsel (%p1155_p1), %vm128_vm0, %v1495_v58, -inf  ;;  %v1576_v23 = vld [vmem:[%s3621_s17 + $0x8] sm:$0xff] (%p1155_p1) }
 0x2d9   : > { %1201 = vmatpush.msra.mxu0 %v3782_v39  ;;  %1221 = vmatpush.msra.mxu1 %v3783_v47  ;;  %v3795_v39 = vld [vmem:[#allocation7_spill] sm:$0xff]  ;;  %v3796_v47 = vld [vmem:[#allocation8_spill] sm:$0xff]  ;;  %v1505_v15 = vmax.f32 (%p1155_p1), %v1500_v60, %v1504_v20  ;;  %v1509_v36 = vmax.f32 (%p1155_p1), %v1502_v21, %v1508_v30  ;;  %v1511_v50 = vmax.f32 (%p1155_p1), %v1503_v25, %v1510_v40  ;;  %v1577_v20 = vld [vmem:[%s3621_s17 + $0x10] sm:$0xff] (%p1155_p1) }
 0x2da   : > { %1261 = vmatpush.msra.mxu3 %v3784_v48  ;;  %1241 = vmatpush.msra.mxu2 %v3785_v49  ;;  %v3797_v48 = vld [vmem:[#allocation10_spill] sm:$0xff]  ;;  %v1338_v49 = vld [vmem:[%s1337_s30] sm:$0xff] }
 0x2db   : > { %1202 = vmatpush.msra.mxu0 %v3786_v52  ;;  %1222 = vmatpush.msra.mxu1 %v3787_v59  ;;  %v3798_v52 = vld [vmem:[#allocation9_spill] sm:$0xff]  ;;  %v2060_v59 = vmov 0   ;;  %v1575_v30 = vld [vmem:[%s3621_s17] sm:$0xff] (%p1155_p1) }
 0x2dc   : > { %1262 = vmatpush.msra.mxu3 %v3788_v16  ;;  %1242 = vmatpush.msra.mxu2 %v3789_v31  ;;  %v1341_v16 = vld [vmem:[%s1340_s1] sm:$0xff]  ;;  %v1167_v31 = vld [vmem:[%s3217_s7 + $0x8] sm:$0xff] }
 0x2dd   : > { %1203 = vmatpush.msra.mxu0 %v3790_v38  ;;  %1223 = vmatpush.msra.mxu1 %v3791_v54  ;;  %v1174_v38 = vld [vmem:[%s3220_s26 + $0x8] sm:$0xff] }
 0x2de   : > { %1263 = vmatpush.msra.mxu3 %v3793_v55  ;;  %1243 = vmatpush.msra.mxu2 %v3794_v57  ;;  %v1186_v55 = vsel %vm2726_vm2, %v1167_v31, %v1174_v38  ;;  %v1169_v57 = vld [vmem:[%s3217_s7 + $0x18] sm:$0xff]  ;;  %vm1671_vm2 = vcmask (%p1155_p1), 31744  }
 0x2df   : > { %1204 = vmatpush.msra.mxu0 %v3795_v39  ;;  %1224 = vmatpush.msra.mxu1 %v3796_v47  ;;  %v1176_v39 = vld [vmem:[%s3220_s26 + $0x18] sm:$0xff] }
 0x2e0   : > { %1264 = vmatpush.msra.mxu3 %v3797_v48  ;;  %1205 = vmatmul.f32.vlgmr.msra.gmra.mxu0 %v2050_v42  ;;  %v1188_v48 = vsel %vm2734_vm4, %v1169_v57, %v1176_v39 }
 0x2e1   : > { %1225 = vmatmul.f32.vlgmr.msra.gmra.mxu1 %v2050_v42  ;;  %1265 = vmatmul.f32.vlgmr.msra.gmra.mxu3 %v2050_v42 }
 0x2e2   : > { %1244 = vmatpush.msra.mxu2 %v3798_v52  ;;  %1937 = vset.pattern.permute.xlu0 %v2060_v59  ;;  %v1168_v52 = vld [vmem:[%s3217_s7 + $0x10] sm:$0xff] }
 0x2e3   : > { %1245 = vmatmul.f32.vlgmr.msra.gmra.mxu2 %v2050_v42  ;;  %1346 = vperm.xlu0 %1937, %v1338_v49   ;;  %v1175_v59 = vld [vmem:[%s3220_s26 + $0x10] sm:$0xff] }
 0x2e4   : > { %v1187_v49 = vsel %vm2730_vm3, %v1168_v52, %v1175_v59 }
 0x2eb   : > { %1351 = vperm.xlu0 %1937, %v1341_v16  }
 0x355   : > { %v1347_v7 = vpop.permute.xlu0 %1346 }
 0x35d   : > { %v1206_v1 = vpop.f32.mrf.mxu0 }
 0x35e   : > { %v1269_v2 = vadd.f32 %v1206_v1, %v3227_v56  ;;  %v1226_v3 = vpop.f32.mrf.mxu1 }
 0x35f   : > { %v1270_v16 = vadd.f32 %v1226_v3, %v1186_v55 }
 0x360   : > { %v1836_v4 = vmul.f32 -1.442695, %v1269_v2 }
 0x361   : > { %v1837_v5 = vmul.f32 -1.442695, %v1270_v16 }
 0x362   : > { %1938 = vpow2.f32 %v1836_v4 }
 0x363   : > { %1940 = vpow2.f32 %v1837_v5 }
 0x364   : > { %v1266_v31 = vpop.f32.mrf.mxu3 }
 0x365   : > { %v1272_v38 = vadd.f32 %v1266_v31, %v1188_v48  ;;  %v1352_v48 = vpop.permute.xlu0 %1351 }
 0x366   : > { %v1246_v0 = vpop.f32.mrf.mxu2 }
 0x367   : > { %v1838_v54 = vmul.f32 -1.442695, %v1272_v38  ;;  %v1271_v1 = vadd.f32 %v1246_v0, %v1187_v49  ;;  %v1354_v49 = vsel %vm618_vm1, %v1347_v7, %v1352_v48  ;;  %vm1647_vm1 = vcmask (%p1155_p1), 15360  }
 0x368   : > { %v1939_v6 = vpop.eup %1938  ;;  %v1356_v10 = vsub.f32 1.0, %v1354_v49 }
 0x369   : > { %v1941_v47 = vpop.eup %1940  ;;  %v1276_v57 = vadd.f32 1.0, %v1939_v6  ;;  %1942 = vpow2.f32 %v1838_v54 }
 0x36a   : > { %v1295_v39 = vadd.f32 1.0, %v1941_v47  ;;  %v1360_v14 = vmul.f32 %v2046_v17, %v1356_v10 }
 0x36b   : > { %1944 = vrcp.f32 %v1276_v57  ;;  %v1288_v16 = vand.u32 2147483648, %v1276_v57  ;;  %v1286_v31 = vand.u32 2147483647, %v1276_v57  ;;  %vm1282_vm8 = vweird.f32 %v1276_v57 }
 0x36c   : > { %1946 = vrcp.f32 %v1295_v39  ;;  %v1307_v38 = vand.u32 2147483648, %v1295_v39  ;;  %v1305_v47 = vand.u32 2147483647, %v1295_v39  ;;  %vm1301_vm10 = vweird.f32 %v1295_v39 }
 0x36d   : > { %vm1287_vm11 = vcmp.eq.f32.partialorder %v1286_v31, 8.507059e+37 }
 0x36e   : > { %vm1306_vm13 = vcmp.eq.f32.partialorder %v1305_v47, 8.507059e+37 }
 0x36f   : > { %v1943_v52 = vpop.eup %1942 }
 0x370   : > { %v1315_v56 = vadd.f32 1.0, %v1943_v52 }
 0x371   : > { %v1945_v3 = vpop.eup %1944 }
 0x372   : > { %v1947_v2 = vpop.eup %1946  ;;  %v1278_v55 = vmul.f32 %v1945_v3, %v1276_v57  ;;  %1948 = vrcp.f32 %v1315_v56  ;;  %vm1283_vm6 = vweird.f32 %v1945_v3  ;;  %vm1321_vm15 = vweird.f32 %v1315_v56 }
 0x373   : > { %v1297_v4 = vmul.f32 %v1947_v2, %v1295_v39  ;;  %1950 = vtanh.f32 %v1271_v1  ;;  %vm1302_vm7 = vweird.f32 %v1947_v2  ;;  %vm1284_vm9 = vmor %vm1282_vm8, %vm1283_vm6  ;;  %v1289_v1 = vor.u32 1.1754944e-38, %v1288_v16 }
 0x374   : > { %v1279_v5 = vsub.f32 1.0, %v1278_v55  ;;  %vm1303_vm12 = vmor %vm1301_vm10, %vm1302_vm7  ;;  %v1327_v39 = vand.u32 2147483648, %v1315_v56  ;;  %v1325_v31 = vand.u32 2147483647, %v1315_v56 }
 0x375   : > { %v1298_v59 = vsub.f32 1.0, %v1297_v4 }
 0x376   : > { %v1280_v6 = vmul.f32 %v1945_v3, %v1279_v5  ;;  %v1308_v5 = vor.u32 1.1754944e-38, %v1307_v38  ;;  %vm1326_vm6 = vcmp.eq.f32.partialorder %v1325_v31, 8.507059e+37  ;;  %v1459_v31 = vld [vmem:[%s3805_s0 + $0x70] sm:$0xff] (%p1155_p1) }
 0x377   : > { %v1299_v54 = vmul.f32 %v1947_v2, %v1298_v59  ;;  %v1485_v58 = vsel (%p1155_p1), %vm128_vm0, %v1459_v31, -inf  ;;  %v1376_v31 = vld [vmem:[%s3614_s10 + $0x58] sm:$0xff] (%p1155_p1) }
 0x378   : > { %v1949_v0 = vpop.eup %1948  ;;  %v1281_v52 = vadd.f32 %v1945_v3, %v1280_v6 }
 0x379   : > { %v1951_v8 = vpop.eup %1950  ;;  %v1317_v9 = vmul.f32 %v1949_v0, %v1315_v56  ;;  %v1300_v55 = vadd.f32 %v1947_v2, %v1299_v54  ;;  %vm1322_vm14 = vweird.f32 %v1949_v0  ;;  %v1362_v54 = vmul.f32 -10000.0, %v1356_v10  ;;  %v1521_v56 = vld [vmem:[%s3619_s15 + $0x10] sm:$0xff] (%p1155_p1) }
 0x37a   : > { %v1285_v4 = vsel %vm1284_vm9, %v1945_v3, %v1281_v52  ;;  %vm1323_vm5 = vmor %vm1321_vm15, %vm1322_vm14 }
 0x37b   : > { %v1318_v59 = vsub.f32 1.0, %v1317_v9  ;;  %v1290_v11 = vsel %vm1287_vm11, %v1289_v1, %v1285_v4  ;;  %v1304_v13 = vsel %vm1303_vm12, %v1947_v2, %v1300_v55  ;;  %v1328_v2 = vor.u32 1.1754944e-38, %v1327_v39  ;;  %v1454_v1 = vld [vmem:[%s3805_s0 + $0x48] sm:$0xff] (%p1155_p1)  ;;  %v1455_v55 = vld [vmem:[%s3805_s0 + $0x50] sm:$0xff] (%p1155_p1) }
 0x37c   : > { %v1309_v12 = vsel %vm1306_vm13, %v1308_v5, %v1304_v13  ;;  %v1332_v7 = vmul.f32 %v1951_v8, %v1290_v11  ;;  %v1464_v4 = vsel (%p1155_p1), %vm128_vm0, %v1448_v45, -inf  ;;  %v1465_v5 = vsel (%p1155_p1), %vm128_vm0, %v1449_v46, -inf }
 0x37d   : > { %v1319_v48 = vmul.f32 %v1949_v0, %v1318_v59  ;;  %v1331_v57 = vmul.f32 %v2046_v17, %v1309_v12  ;;  %v1357_v12 = vmul.f32 %v2050_v42, %v1356_v10  ;;  %v1522_v10 = vld [vmem:[%s3619_s15 + $0x18] sm:$0xff] (%p1155_p1)  ;;  %v1467_v59 = vsel (%p1155_p1), %vm128_vm0, %v1450_v51, -inf }
 0x37e   :  { %1538 = vmatpush.msra.mxu2 (%p1155_p1), %v1522_v10 }
 0x37f   : > { %v1333_v6 = vadd.f32 %v1332_v7, %v1331_v57  ;;  %v1320_v16 = vadd.f32 %v1949_v0, %v1319_v48  ;;  %v1513_v7 = vmax.f32 (%p1155_p1), %v1509_v36, %v1511_v50  ;;  %v1456_v48 = vld [vmem:[%s3805_s0 + $0x58] sm:$0xff] (%p1155_p1)  ;;  %v1457_v57 = vld [vmem:[%s3805_s0 + $0x60] sm:$0xff] (%p1155_p1) }
 0x380   :  { %1539 = vmatpush.msra.mxu2 (%p1155_p1), %v1521_v56  ;;  %v1580_v56 = vld [vmem:[%s3621_s17 + $0x28] sm:$0xff] (%p1155_p1)  ;;  %v1615_v36 = vld [vmem:[%s3623_s19 + $0x18] sm:$0xff] (%p1155_p1) }
 0x381   : > { %1952 = vtanh.f32 %v1333_v6  ;;  %v1359_v3 = vmul.f32 %v1354_v49, %v1333_v6  ;;  %v1324_v9 = vsel %vm1323_vm5, %v1949_v0, %v1320_v16  ;;  %v1453_v0 = vld [vmem:[%s3805_s0 + $0x40] sm:$0xff] (%p1155_p1)  ;;  %v1458_v6 = vld [vmem:[%s3805_s0 + $0x68] sm:$0xff] (%p1155_p1)  ;;  %v1466_v16 = vmax.f32 (%p1155_p1), %v1461_v27, %v1465_v5 }
 0x382   : > { %v1329_v8 = vsel %vm1326_vm6, %v1328_v2, %v1324_v9  ;;  %1540 = vmatpush.msra.mxu2 (%p1155_p1), %v1520_v28  ;;  %v1471_v2 = vsel (%p1155_p1), %vm128_vm0, %v1452_v24, -inf  ;;  %v1479_v28 = vsel (%p1155_p1), %vm128_vm0, %v1456_v48, -inf  ;;  %v1613_v24 = vld [vmem:[%s3623_s19 + $0x8] sm:$0xff] (%p1155_p1)  ;;  %v1612_v27 = vld [vmem:[%s3623_s19] sm:$0xff] (%p1155_p1)  ;;  %v1420_v48 = vld [vmem:[%s3616_s12 + $0x78] sm:$0xff] (%p1155_p1) }
 0x383   : > { %v1361_v17 = vadd.f32 %v1360_v14, %v1359_v3   ;;  %v1518_v14 = vld [vmem:[%s3618_s14 + $0x18] sm:$0xff] (%p1155_p1)  ;;  %v1469_v3 = vsel (%p1155_p1), %vm128_vm0, %v1451_v22, -inf  ;;  %v1614_v22 = vld [vmem:[%s3623_s19 + $0x10] sm:$0xff] (%p1155_p1)  ;;  %1425 = vmatpush.msra.mxu1 (%p1155_p1), %v1420_v48 }
 0x384   :  { %1561 = vmatpush.msra.mxu3 (%p1155_p1), %v1518_v14  ;;  %1541 = vmatpush.msra.mxu2 (%p1155_p1), %v1519_v33  ;;  %v1463_v17 = vsel (%p1155_p1), %vm128_vm0, %v1447_v41, -inf  ;;  %v1581_v14 = vld [vmem:[%s3621_s17 + $0x30] sm:$0xff] (%p1155_p1)  ;;  %v1483_v33 = vsel (%p1155_p1), %vm128_vm0, %v1458_v6, -inf  ;;  %v1957_v41 = vld [vmem:[%s3620_s16] ss:$0 sm:$0xff] (%p1155_p1) }
 0x385   :  { %v1470_v9 = vmax.f32 (%p1155_p1), %v1463_v17, %v1469_v3  ;;  %v1419_v6 = vld [vmem:[%s3616_s12 + $0x70] sm:$0xff] (%p1155_p1)  ;;  %v1417_v3 = vld [vmem:[%s3616_s12 + $0x60] sm:$0xff] (%p1155_p1) }
 0x386   :  { %1426 = vmatpush.msra.mxu1 (%p1155_p1), %v1419_v6 }
 0x387   : > { %v1953_v13 = vpop.eup %1952 }
 0x388   : > { %v1335_v11 = vmul.f32 %v1953_v13, %v1329_v8  ;;  %v1473_v13 = vsel (%p1155_p1), %vm128_vm0, %v1453_v0, -inf  ;;  %v1475_v8 = vsel (%p1155_p1), %vm128_vm0, %v1454_v1, -inf  ;;  %v1959_v1 = vld [vmem:[%s3624_s20] ss:$0 sm:$0xff] (%p1155_p1) }
 0x38a   : > { %v1355_v38 = vmul.f32 %v1354_v49, %v1335_v11  ;;  %v1512_v49 = vmax.f32 (%p1155_p1), %v1505_v15, %v1507_v35  ;;  %v1582_v11 = vld [vmem:[%s3621_s17 + $0x38] sm:$0xff] (%p1155_p1)  ;;  %v1617_v15 = vld [vmem:[%s3623_s19 + $0x28] sm:$0xff] (%p1155_p1)  ;;  %v1616_v35 = vld [vmem:[%s3623_s19 + $0x20] sm:$0xff] (%p1155_p1) }
 0x38b   :  { %1599 = vmatpush.msrb.mxu2 (%p1155_p1), %v1582_v11  ;;  %v1414_v11 = vld [vmem:[%s3616_s12 + $0x48] sm:$0xff] (%p1155_p1) }
 0x38c   : > { %v1358_v42 = vadd.f32 %v1357_v12, %v1355_v38   ;;  %v1363_v47 = vadd.f32 %v1362_v54, %v1355_v38  ;;  %v1514_v38 = vmax.f32 (%p1155_p1), %v1512_v49, %v1513_v7  ;;  %v1460_v12 = vld [vmem:[%s3805_s0 + $0x78] sm:$0xff] (%p1155_p1)  ;;  %v1472_v54 = vmax.f32 (%p1155_p1), %v1464_v4, %v1471_v2  ;;  %v1379_v7 = vld [vmem:[%s3614_s10 + $0x70] sm:$0xff] (%p1155_p1) }
 0x38d   :  { %1157 = sbr.rel (!%p1155_p1) target bundleno = 705 (0x2c1), region = 149  ;;  %v1517_v42 = vld [vmem:[%s3618_s14 + $0x10] sm:$0xff] (%p1155_p1)  ;;  %v1487_v60 = vsel (%p1155_p1), %vm128_vm0, %v1460_v12, -inf  ;;  %1600 = vmatpush.msrb.mxu2 (%p1155_p1), %v1581_v14  ;;  %v1413_v12 = vld [vmem:[%s3616_s12 + $0x40] sm:$0xff] (%p1155_p1) }
 0x38e   : > { %v3301_v34 = vmax.f32 %v2042_v34, %v1363_v47   ;;  %1562 = vmatpush.msra.mxu3 (%p1155_p1), %v1517_v42  ;;  %v1474_v47 = vmax.f32 (%p1155_p1), %v1466_v16, %v1473_v13  ;;  %v1477_v42 = vsel (%p1155_p1), %vm128_vm0, %v1455_v55, -inf  ;;  %1841 = vmatmul.msk.f32.vlgmr.msra.gmra.mxu2 (%p1155_p1), %vm128_vm0, %v1514_v38  ;;  %v1480_v43 = vmax.f32 (%p1155_p1), %v1472_v54, %v1479_v28  ;;  %v1418_v16 = vld [vmem:[%s3616_s12 + $0x68] sm:$0xff] (%p1155_p1)  ;;  %v1375_v2 = vld [vmem:[%s3614_s10 + $0x50] sm:$0xff] (%p1155_p1)  ;;  %v1373_v38 = vld [vmem:[%s3614_s10 + $0x40] sm:$0xff] (%p1155_p1) }
 0x38f   :  { %1601 = vmatpush.msrb.mxu2 (%p1155_p1), %v1580_v56  ;;  %1427 = vmatpush.msra.mxu1 (%p1155_p1), %v1418_v16  ;;  %v1415_v13 = vld [vmem:[%s3616_s12 + $0x50] sm:$0xff] (%p1155_p1)  ;;  %v1372_v54 = vld [vmem:[%s3614_s10 + $0x38] sm:$0xff] (%p1155_p1)  ;;  %v1370_v56 = vld [vmem:[%s3614_s10 + $0x28] sm:$0xff] (%p1155_p1) }
 0x390   : > { %v3802_v52 = vmov %v3301_v34  ;;  %1563 = vmatpush.msra.mxu3 (%p1155_p1), %v1516_v32  ;;  %v1481_v32 = vsel (%p1155_p1), %vm128_vm0, %v1457_v57, -inf  ;;  %v1488_v62 = vmax.f32 (%p1155_p1), %v1480_v43, %v1487_v60  ;;  %v1378_v57 = vld [vmem:[%s3614_s10 + $0x68] sm:$0xff] (%p1155_p1)  ;;  %v1411_v14 = vld [vmem:[%s3616_s12 + $0x30] sm:$0xff] (%p1155_p1) }
 0x391   : > { %v3803_v34 = vmov %v3802_v52  ;;  %v1482_v44 = vmax.f32 (%p1155_p1), %v1474_v47, %v1481_v32  ;;  %1602 = vmatpush.msrb.mxu2 (%p1155_p1), %v1579_v19  ;;  %1428 = vmatpush.msra.mxu1 (%p1155_p1), %v1417_v3  ;;  %v1412_v47 = vld [vmem:[%s3616_s12 + $0x38] sm:$0xff] (%p1155_p1)  ;;  %v1410_v28 = vld [vmem:[%s3616_s12 + $0x28] sm:$0xff] (%p1155_p1) }
 0x392   :  { %1564 = vmatpush.msra.mxu3 %v1515_v37  ;;  %v1462_v34 = vsel %vm128_vm0, %v1446_v29, -inf  ;;  %v1478_v37 = vmax.f32 %v1470_v9, %v1477_v42  ;;  %v1618_v29 = vld [vmem:[%s3623_s19 + $0x30] sm:$0xff]  ;;  %v1416_v9 = vld [vmem:[%s3616_s12 + $0x58] sm:$0xff]  ;;  %v1366_v60 = vld [vmem:[%s3614_s10 + $0x8] sm:$0xff] }
 0x393   :  { %v1468_v39 = vmax.f32 %v1462_v34, %v1467_v59  ;;  %1603 = vmatpush.msrb.mxu2 %v1578_v18  ;;  %v1958_v34 = vld [vmem:[%s3622_s18] ss:$0 sm:$0xff]  ;;  %v1380_v59 = vld [vmem:[%s3614_s10 + $0x78] sm:$0xff]  ;;  %1429 = vmatpush.msra.mxu1 %v1416_v9  ;;  %v3806_v19 = vld [vmem:[#allocation44_spill] sm:$0xff] }
 0x394   :  { %v1486_v61 = vmax.f32 %v1478_v37, %v1485_v58  ;;  %1635 = vmatpush.msrb.mxu3 %v1619_v26  ;;  %1385 = vmatpush.msra.mxu0 %v1380_v59  ;;  %v1409_v37 = vld [vmem:[%s3616_s12 + $0x20] sm:$0xff]  ;;  %v1367_v58 = vld [vmem:[%s3614_s10 + $0x10] sm:$0xff] }
 0x395   :  { %v1476_v10 = vmax.f32 %v1468_v39, %v1475_v8  ;;  %1604 = vmatpush.msrb.mxu2 %v1577_v20  ;;  %v1377_v39 = vld [vmem:[%s3614_s10 + $0x60] sm:$0xff]  ;;  %v1374_v8 = vld [vmem:[%s3614_s10 + $0x48] sm:$0xff]  ;;  %1430 = vmatpush.msra.mxu1 %v1415_v13  ;;  %v2061_v20 = vmov 0  }
 0x396   :  { %v1490_v21 = vmax.f32 %v1486_v61, %v1488_v62  ;;  %1636 = vmatpush.msrb.mxu3 %v1618_v29  ;;  %1386 = vmatpush.msra.mxu0 %v1379_v7  ;;  %v1365_v61 = vld [vmem:[%s3614_s10] sm:$0xff] }
 0x397   :  { %v1484_v53 = vmax.f32 %v1476_v10, %v1483_v33  ;;  %1605 = vmatpush.msrb.mxu2 %v1576_v23  ;;  %1431 = vmatpush.msra.mxu1 %v1414_v11  ;;  %v1371_v10 = vld [vmem:[%s3614_s10 + $0x30] sm:$0xff]  ;;  %v1369_v33 = vld [vmem:[%s3614_s10 + $0x20] sm:$0xff]  ;;  %v2062_v23 = vmov 1  }
 0x398   :  { %1637 = vmatpush.msrb.mxu3 %v1617_v15  ;;  %1387 = vmatpush.msra.mxu0 %v1378_v57  ;;  %v1405_v18 = vld [vmem:[%s3616_s12] sm:$0xff] }
 0x399   :  { %v1489_v63 = vmax.f32 %v1482_v44, %v1484_v53  ;;  %1606 = vmatpush.msrb.mxu2 %v1575_v30  ;;  %1432 = vmatpush.msra.mxu1 %v1413_v12  ;;  %v1368_v44 = vld [vmem:[%s3614_s10 + $0x18] sm:$0xff]  ;;  %v1961_v15 = vld [vmem:[%s3617_s13] ss:$0 sm:$0xff] }
 0x39a   :  { %1638 = vmatpush.msrb.mxu3 %v1616_v35  ;;  %1388 = vmatpush.msra.mxu0 %v1377_v39  ;;  %v1408_v53 = vld [vmem:[%s3616_s12 + $0x18] sm:$0xff] }
 0x39b   :  { %v1491_v25 = vmax.f32 %v1489_v63, %v1490_v21  ;;  %1433 = vmatpush.msra.mxu1 %v1412_v47  ;;  %v1407_v21 = vld [vmem:[%s3616_s12 + $0x10] sm:$0xff]  ;;  %1954 = vset.pattern.permute.xlu1 %v2061_v20 }
 0x39c   :  { %1639 = vmatpush.msrb.mxu3 %v1615_v36  ;;  %1389 = vmatpush.msra.mxu0 %v1376_v31 }
 0x39d   :  { %1842 = vmatmul.msk.f32.vlgmr.msra.gmra.mxu3 %vm128_vm0, %v1491_v25  ;;  %vm1587_vm0 = vcmask 523264   ;;  %1434 = vmatpush.msra.mxu1 %v1411_v14  ;;  %v1406_v25 = vld [vmem:[%s3616_s12 + $0x8] sm:$0xff] }
 0x39e   :  { %1640 = vmatpush.msrb.mxu3 %v1614_v22  ;;  %1390 = vmatpush.msra.mxu0 %v1375_v2 }
 0x39f   :  { %1435 = vmatpush.msra.mxu1 %v1410_v28  ;;  %1956 = vset.pattern.permute.xlu0 %v2062_v23 }
 0x3a0   :  { %1641 = vmatpush.msrb.mxu3 %v1613_v24  ;;  %1391 = vmatpush.msra.mxu0 %v1374_v8 }
 0x3a1   :  { %1436 = vmatpush.msra.mxu1 %v1409_v37 }
 0x3a2   :  { %1642 = vmatpush.msrb.mxu3 %v1612_v27  ;;  %1392 = vmatpush.msra.mxu0 %v1373_v38 }
 0x3a3   :  { %1437 = vmatpush.msra.mxu1 %v1408_v53 }
 0x3a4   :  { %1393 = vmatpush.msra.mxu0 %v1372_v54 }
 0x3a5   :  { %1438 = vmatpush.msra.mxu1 %v1407_v21 }
 0x3a6   :  { %1394 = vmatpush.msra.mxu0 %v1371_v10 }
 0x3a7   :  { %1439 = vmatpush.msra.mxu1 %v1406_v25 }
 0x3a8   :  { %1395 = vmatpush.msra.mxu0 %v1370_v56 }
 0x3a9   :  { %1440 = vmatpush.msra.mxu1 %v1405_v18 }
 0x3aa   :  { %1396 = vmatpush.msra.mxu0 %v1369_v33  ;;  %1441 = vmatmul.f32.vlgmr.msra.gmra.mxu1 %v3802_v52 }
 0x3ac   :  { %1397 = vmatpush.msra.mxu0 %v1368_v44 }
 0x3ae   :  { %1398 = vmatpush.msra.mxu0 %v1367_v58 }
 0x3b0   :  { %1399 = vmatpush.msra.mxu0 %v1366_v60 }
 0x3b2   :  { %1400 = vmatpush.msra.mxu0 %v1365_v61 }
 0x3b3   :  { %1401 = vmatmul.f32.vlgmr.msra.gmra.mxu0 %v3806_v19 }
 0x411   :  { %v1543_v40 = vpop.f32.mrf.mxu2 }
 0x420   :  { %v1566_v45 = vpop.f32.mrf.mxu3 }
 0x421   :  { %v1567_v46 = vadd.f32 %v1566_v45, %v1543_v40  ;;  %v1960_v40 = vld [vmem:[%s3615_s11] ss:$0 sm:$0xff] }
 0x423   :  { %v1573_v50 = vadd.f32 %v1957_v41, %v1567_v46 }
 0x425   :  { %v1574_v51 = vmax.f32 %v1573_v50, 0.0 }
 0x427   :  { %1843 = vmatmul.msk.f32.vlgmr.msrb.gmra.mxu2 %vm1587_vm0, %v1574_v51  ;;  %v1442_v35 = vpop.f32.mrf.mxu1 }
 0x428   :  { %v1443_v36 = vadd.f32 %v1961_v15, %v1442_v35 }
 0x42a   :  { %1673 = vst.msk [vmem:[%s3626_s22] sm:$0xff] %vm1671_vm2, %v1443_v36 }
 0x430   :  { %v1402_v41 = vpop.f32.mrf.mxu0 }
 0x431   :  { %v1403_v45 = vadd.f32 %v1960_v40, %v1402_v41 }
 0x4aa   :  { %v1608_v17 = vpop.f32.mrf.mxu2 }
 0x4ab   :  { %v1609_v49 = vadd.f32 %v1958_v34, %v1608_v17 }
 0x4ad   :  { %v1611_v0 = vmax.f32 %v1609_v49, 0.0 }
 0x4af   :  { %1844 = vmatmul.msk.f32.vlgmr.msrb.gmra.mxu3 %vm1587_vm0, %v1611_v0 }
 0x532   :  { %v1644_v55 = vpop.f32.mrf.mxu3 }
 0x533   :  { %v1645_v4 = vadd.f32 %v1959_v1, %v1644_v55 }
 0x535   :  { %v1648_v5 = vsel %vm1647_vm1, %v1645_v4, -inf }
 0x536   :  { %1649 = vmax.xlane.f32.xlu0 %v1648_v5 }
 0x5a9   :  { %v1650_v42 = vpop.xlane.xlu0 %1649 }
 0x5aa   :  { %v1651_v32 = vsub.f32 %v1645_v4, %v1650_v42 }
 0x5ac   :  { %v1652_v43 = vmul.f32 1.442695, %v1651_v32 }
 0x5ae   :  { %1962 = vpow2.f32 %v1652_v43 }
 0x5b4   :  { %v1963_v62 = vpop.eup %1962 }
 0x5b5   :  { %v1654_v63 = vsel %vm1647_vm1, %v1963_v62, 0.0 }
 0x5b6   :  { %1655 = vadd.xlane.f32.xlu0 %v1654_v63 }
 0x629   :  { %v1656_v30 = vpop.xlane.xlu0 %1655 }
 0x62a   :  { %1964 = vrcp.f32 %v1656_v30 }
 0x630   :  { %v1965_v26 = vpop.eup %1964 }
 0x631   :  { %v1658_v29 = vmul.f32 %v1965_v26, %v1963_v62 }
 0x633   :  { %1661 = vperm.xlu1 %1954, %v1658_v29  }
 0x63b   :  { %1955 = vset.pattern.permute.xlu1 %v2062_v23 }
 0x63c   :  { %1666 = vperm.xlu1 %1955, %v1658_v29  }
 0x6a5   :  { %v1662_v52 = vpop.permute.xlu1 %1661 }
 0x6a6   :  { %v1664_v50 = vmul.f32 %v1662_v52, %v1403_v45 }
 0x6ae   :  { %v1667_v46 = vpop.permute.xlu1 %1666 }
 0x6af   :  { %v1669_v51 = vmul.f32 %v1667_v46, %v1443_v36 }
 0x6b1   :  { %v1670_v22 = vadd.f32 %v1669_v51, %v1664_v50 }
 0x6b3   :  { %1672 = vst.msk [vmem:[%s3625_s21] sm:$0xff] %vm1671_vm2, %v1670_v22 }
 0x6b4   :  { %1682 = vsyncpa [#allocation5], 1 }

</bundles_post_ra>
